<compile_context>
chip_gen: v5e
topology: v5e:2x2
jax: 0.10.0
libtpu: 0.0.40
codegen_flags: <defaults>
</compile_context>

<pallas_src>
import jax
import jax.numpy as jnp
from jax.experimental import pallas as pl
from jax.experimental.pallas import tpu as pltpu


def _diffusion_net_layer_kernel(x_ref, w1_ref, b1_ref, w2_ref, b2_ref, o_ref):
    # x_ref:  (tm, C_in)        point tile (input dtype)
    # w1_ref: (C_in, C_out)     pre-transposed (TN) weights, compute dtype
    # b1_ref: (1, C_out)        f32
    # w2_ref: (C_out, C_out)    pre-transposed (TN) weights, compute dtype
    # b2_ref: (1, C_out)        f32
    # o_ref:  (tm, C_out)       output tile (input dtype)
    x = x_ref[...].astype(w1_ref.dtype)
    h = jnp.dot(x, w1_ref[...], preferred_element_type=jnp.float32)
    h = jnp.maximum(h + b1_ref[...], 0.0)          # bias + ReLU in f32
    # Feed the hidden activation straight into the second MXU pass -- no VMEM
    # scratch round-trip.
    y = jnp.dot(h.astype(w2_ref.dtype), w2_ref[...],
                preferred_element_type=jnp.float32)
    y = jnp.maximum(y + b2_ref[...], 0.0)
    o_ref[...] = y.astype(o_ref.dtype)
    # TODO(synk): if the deployed C_out is < 128 the store above is a masked
    # vst; a lane-dense output relayout would remove that.  Typical
    # DiffusionNet widths (>=128) already store unmasked.


def diffusion_net_layer(x, cells, w1, b1, w2, b2, *, tm=None,
                        compute_dtype=jnp.bfloat16):
    """Fused mlp2(mlp1(x)) with ReLUs (torch Linear semantics y = x @ W^T + b).

    x:  (..., C_in)
    w1: (C_out, C_in), b1: (C_out,)   -- torch nn.Linear layout, NOT transposed
    w2: (C_out, C_out), b2: (C_out,)
    cells is ignored (matches the PyTorch forward).

    compute_dtype=bfloat16 (default): bf16 MXU operands, f32 accumulation.
    compute_dtype=float32: bit-careful path (avoid on v5e for very large m --
    the multi-pass f32 MXU tips it from HBM-bound to MXU-bound).
    """
    del cells  # unused by the reference forward

    orig_shape = x.shape
    c_in = orig_shape[-1]
    c_out = w1.shape[0]

    x2d = x.reshape(-1, c_in)
    m = x2d.shape[0]

    x_item = x2d.dtype.itemsize
    c_item = jnp.dtype(compute_dtype).itemsize

    try:
        vmem_cap = int(pltpu.get_tpu_info().vmem_capacity_bytes)
    except Exception:
        vmem_cap = 64 * 1024 * 1024               # v7x-safe fallback
    budget = vmem_cap // 2                        # headroom for Mosaic scratch

    def _vmem_est(rows, weight_bufs):
        return (2 * rows * c_in * x_item           # x tile, double-buffered
                + 2 * rows * c_out * x_item        # out tile, double-buffered
                + 2 * rows * c_out * 4             # f32 matmul temporaries (h, y)
                + rows * c_out * c_item            # h cast for the 2nd MXU pass
                + weight_bufs * (c_in * c_out + c_out * c_out) * c_item
                + weight_bufs * 2 * c_out * 4)     # biases

    # ---- row-tile selection: grow to the VMEM budget, respect megacore ------
    cap = tm if tm is not None else 4096           # cap on the row tile
    MIN_STEPS = 4                                  # >= 2 steps per TC on v7x

    if m <= cap and _vmem_est(m, 1) <= budget:
        tm_eff = m                                 # single full-extent block
    else:
        tm_eff = max(8, (min(cap, m) // 8) * 8)
        # shrink until the footprint (incl. f32 temporaries) fits the budget
        while tm_eff > 256 and _vmem_est(tm_eff, 1) > budget:
            tm_eff = max(256, ((tm_eff // 2) // 8) * 8)
        # keep both TensorCores of a 2-TC chip busy on long point lists,
        # without dropping below 512 rows (per-step overhead amortization)
        if m >= MIN_STEPS * 512:
            while tm_eff > 512 and pl.cdiv(m, tm_eff) < MIN_STEPS:
                tm_eff = max(512, ((tm_eff // 2) // 8) * 8)

    grid = (pl.cdiv(m, tm_eff),)

    # vmem limit: actual footprint (conservatively with double-buffered
    # weights, covering the fallback path) * 1.25 + small slack, clamped.
    vmem_limit = int(min(max(int(_vmem_est(tm_eff, 2) * 1.25) + (2 << 20),
                             8 * 1024 * 1024),
                         int(vmem_cap * 0.9)))

    # One-time XLA-side transpose to TN layout + cast to the compute dtype.
    w1t = w1.T.astype(compute_dtype)               # (C_in, C_out)
    w2t = w2.T.astype(compute_dtype)               # (C_out, C_out)
    b1f = b1.astype(jnp.float32).reshape(1, c_out)
    b2f = b2.astype(jnp.float32).reshape(1, c_out)

    flops = 2 * m * (c_in * c_out + c_out * c_out)
    bytes_accessed = int(m * c_in * x_item + m * c_out * x_item
                         + (c_in * c_out + c_out * c_out) * c_item
                         + 2 * c_out * 4)

    def _build(weight_buffer_count):
        resident_kwargs = {}
        if weight_buffer_count == 1:
            # constant index_map blocks are fetched once; the 2nd buffer is
            # dead VMEM (matters at large C_out on v7x's 64 MiB per-TC VMEM)
            resident_kwargs = dict(pipeline_mode=pl.Buffered(1))
        return pl.pallas_call(
            _diffusion_net_layer_kernel,
            out_shape=jax.ShapeDtypeStruct((m, c_out), x.dtype),
            grid_spec=pltpu.PrefetchScalarGridSpec(
                num_scalar_prefetch=0,
                grid=grid,
                in_specs=[
                    pl.BlockSpec((tm_eff, c_in), lambda i: (i, 0)),     # x tile
                    pl.BlockSpec((c_in, c_out), lambda i: (0, 0),
                                 **resident_kwargs),                    # W1^T
                    pl.BlockSpec((1, c_out), lambda i: (0, 0),
                                 **resident_kwargs),                    # b1
                    pl.BlockSpec((c_out, c_out), lambda i: (0, 0),
                                 **resident_kwargs),                    # W2^T
                    pl.BlockSpec((1, c_out), lambda i: (0, 0),
                                 **resident_kwargs),                    # b2
                ],
                out_specs=pl.BlockSpec((tm_eff, c_out), lambda i: (i, 0)),
            ),
            compiler_params=pltpu.CompilerParams(
                dimension_semantics=("parallel",),   # point tiles shard across TCs
                vmem_limit_bytes=vmem_limit),
            cost_estimate=pl.CostEstimate(
                flops=flops, transcendentals=0, bytes_accessed=bytes_accessed),
        )

    try:
        out = _build(1)(x2d, w1t, b1f, w2t, b2f)
    except Exception:
        # Fallback if the installed Pallas rejects single-buffered resident
        # operands; only costs an extra O(C^2) VMEM buffer.
        out = _build(2)(x2d, w1t, b1f, w2t, b2f)

    return out.reshape(*orig_shape[:-1], c_out)


def init_params(key, in_channels, out_channels):
    """Deterministic init mirroring nn.Linear default (uniform +/- 1/sqrt(fan_in))."""
    k1, k2, k3, k4 = jax.random.split(key, 4)
    bound1 = 1.0 / jnp.sqrt(in_channels)
    bound2 = 1.0 / jnp.sqrt(out_channels)
    w1 = jax.random.uniform(k1, (out_channels, in_channels), jnp.float32,
                            -bound1, bound1)
    b1 = jax.random.uniform(k2, (out_channels,), jnp.float32, -bound1, bound1)
    w2 = jax.random.uniform(k3, (out_channels, out_channels), jnp.float32,
                            -bound2, bound2)
    b2 = jax.random.uniform(k4, (out_channels,), jnp.float32, -bound2, bound2)
    return w1, b1, w2, b2


if __name__ == "__main__":
    key = jax.random.PRNGKey(0)
    k_x, k_p = jax.random.split(key)

    # Small but representative DiffusionNet shapes: C_width=128 (lane-dense),
    # point count chosen so a forced small tile exercises the ragged block.
    batch, n_verts, in_channels, out_channels = 2, 600, 128, 128
    x = jax.random.normal(k_x, (batch, n_verts, in_channels), jnp.float32)
    cells = jnp.zeros((batch, 16, 3), jnp.int32)   # unused by the forward

    w1, b1, w2, b2 = init_params(k_p, in_channels, out_channels)

    # Pure-JAX reference of the fused forward (torch Linear semantics).
    ref = jnp.maximum(jnp.maximum(x @ w1.T + b1, 0.0) @ w2.T + b2, 0.0)

    # 1) Default fast path: bf16 operand loads, f32 accumulation, single block.
    out_bf16 = jax.block_until_ready(
        diffusion_net_layer(x, cells, w1, b1, w2, b2))
    assert out_bf16.shape == (batch, n_verts, out_channels)
    assert out_bf16.dtype == x.dtype
    assert jnp.allclose(out_bf16, ref, atol=5e-2, rtol=5e-2), \
        float(jnp.max(jnp.abs(out_bf16 - ref)))

    # 2) Bit-careful f32 path with a forced small tile (multi-block grid with a
    #    ragged, masked last block).
    out_f32 = jax.block_until_ready(
        diffusion_net_layer(x, cells, w1, b1, w2, b2,
                            tm=512, compute_dtype=jnp.float32))
    assert jnp.allclose(out_f32, ref, atol=1e-3, rtol=1e-3), \
        float(jnp.max(jnp.abs(out_f32 - ref)))

    print("KERNEL_OK")
</pallas_src>

<mosaic_0001>
module attributes {stable_mosaic.version = 11 : i64} {
  func.func @_diffusion_net_layer_kernel(%arg0: i32, %arg1: memref<1200x128xf32, #tpu.memory_space<vmem>>, %arg2: memref<128x128xbf16, #tpu.memory_space<vmem>>, %arg3: memref<1x128xf32, #tpu.memory_space<vmem>>, %arg4: memref<128x128xbf16, #tpu.memory_space<vmem>>, %arg5: memref<1x128xf32, #tpu.memory_space<vmem>>, %arg6: memref<1200x128xf32, #tpu.memory_space<vmem>>) attributes {dimension_semantics = [#tpu.dimension_semantics<parallel>], iteration_bounds = array<i64: 1>, scalar_prefetch = 0 : i64, scratch_operands = 0 : i64, tpu.core_type = #tpu.core_type<tc>, window_params = [{transform_indices = @transform_0, window_bounds = array<i64: 1200, 128>}, {pipeline_mode = #tpu.pipeline_mode<synchronous>, transform_indices = @transform_1, window_bounds = array<i64: 128, 128>}, {pipeline_mode = #tpu.pipeline_mode<synchronous>, transform_indices = @transform_2, window_bounds = array<i64: 1, 128>}, {pipeline_mode = #tpu.pipeline_mode<synchronous>, transform_indices = @transform_3, window_bounds = array<i64: 128, 128>}, {pipeline_mode = #tpu.pipeline_mode<synchronous>, transform_indices = @transform_4, window_bounds = array<i64: 1, 128>}, {transform_indices = @transform_5, window_bounds = array<i64: 1200, 128>}]} {
    %c0 = arith.constant 0 : index
    %c0_0 = arith.constant 0 : index
    %0 = vector.load %arg1[%c0, %c0_0] : memref<1200x128xf32, #tpu.memory_space<vmem>>, vector<1200x128xf32>
    %1 = arith.truncf %0 : vector<1200x128xf32> to vector<1200x128xbf16>
    %c0_1 = arith.constant 0 : index
    %c0_2 = arith.constant 0 : index
    %2 = vector.load %arg2[%c0_1, %c0_2] : memref<128x128xbf16, #tpu.memory_space<vmem>>, vector<128x128xbf16>
    %cst = arith.constant dense<0.000000e+00> : vector<1200x128xf32>
    %3 = tpu.matmul %1, %2, %cst {dimension_numbers = #tpu.dot_dimension_numbers<[1], [0], [0], [1], [0, 0, 1, 1], [], []>} : vector<1200x128xbf16>, vector<128x128xbf16>, vector<1200x128xf32> -> vector<1200x128xf32>
    %c0_3 = arith.constant 0 : index
    %c0_4 = arith.constant 0 : index
    %4 = vector.load %arg3[%c0_3, %c0_4] : memref<1x128xf32, #tpu.memory_space<vmem>>, vector<1x128xf32>
    %5 = vector.broadcast %4 : vector<1x128xf32> to vector<1200x128xf32>
    %6 = arith.addf %3, %5 : vector<1200x128xf32>
    %cst_5 = arith.constant 0.000000e+00 : f32
    %7 = vector.broadcast %cst_5 : f32 to vector<1200x128xf32>
    %8 = arith.maximumf %6, %7 : vector<1200x128xf32>
    %9 = arith.truncf %8 : vector<1200x128xf32> to vector<1200x128xbf16>
    %c0_6 = arith.constant 0 : index
    %c0_7 = arith.constant 0 : index
    %10 = vector.load %arg4[%c0_6, %c0_7] : memref<128x128xbf16, #tpu.memory_space<vmem>>, vector<128x128xbf16>
    %cst_8 = arith.constant dense<0.000000e+00> : vector<1200x128xf32>
    %11 = tpu.matmul %9, %10, %cst_8 {dimension_numbers = #tpu.dot_dimension_numbers<[1], [0], [0], [1], [0, 0, 1, 1], [], []>} : vector<1200x128xbf16>, vector<128x128xbf16>, vector<1200x128xf32> -> vector<1200x128xf32>
    %c0_9 = arith.constant 0 : index
    %c0_10 = arith.constant 0 : index
    %12 = vector.load %arg5[%c0_9, %c0_10] : memref<1x128xf32, #tpu.memory_space<vmem>>, vector<1x128xf32>
    %13 = vector.broadcast %12 : vector<1x128xf32> to vector<1200x128xf32>
    %14 = arith.addf %11, %13 : vector<1200x128xf32>
    %cst_11 = arith.constant 0.000000e+00 : f32
    %15 = vector.broadcast %cst_11 : f32 to vector<1200x128xf32>
    %16 = arith.maximumf %14, %15 : vector<1200x128xf32>
    %c0_12 = arith.constant 0 : index
    %c0_13 = arith.constant 0 : index
    %17 = vector.load %arg6[%c0_12, %c0_13] : memref<1200x128xf32, #tpu.memory_space<vmem>>, vector<1200x128xf32>
    tpu.vector_store %arg6[%c0_12, %c0_13], %16 {strides = array<i32>} : memref<1200x128xf32, #tpu.memory_space<vmem>>, vector<1200x128xf32>,
    return
  }
  func.func @transform_0(%arg0: i32) -> (i32, i32) {
    %c0_i32 = arith.constant 0 : i32
    %c0_i32_0 = arith.constant 0 : i32
    return %arg0, %c0_i32 : i32, i32
  }
  func.func @transform_1(%arg0: i32) -> (i32, i32) {
    %c0_i32 = arith.constant 0 : i32
    %c0_i32_0 = arith.constant 0 : i32
    %c0_i32_1 = arith.constant 0 : i32
    return %c0_i32, %c0_i32_0 : i32, i32
  }
  func.func @transform_2(%arg0: i32) -> (i32, i32) {
    %c0_i32 = arith.constant 0 : i32
    %c0_i32_0 = arith.constant 0 : i32
    %c0_i32_1 = arith.constant 0 : i32
    return %c0_i32, %c0_i32_0 : i32, i32
  }
  func.func @transform_3(%arg0: i32) -> (i32, i32) {
    %c0_i32 = arith.constant 0 : i32
    %c0_i32_0 = arith.constant 0 : i32
    %c0_i32_1 = arith.constant 0 : i32
    return %c0_i32, %c0_i32_0 : i32, i32
  }
  func.func @transform_4(%arg0: i32) -> (i32, i32) {
    %c0_i32 = arith.constant 0 : i32
    %c0_i32_0 = arith.constant 0 : i32
    %c0_i32_1 = arith.constant 0 : i32
    return %c0_i32, %c0_i32_0 : i32, i32
  }
  func.func @transform_5(%arg0: i32) -> (i32, i32) {
    %c0_i32 = arith.constant 0 : i32
    %c0_i32_0 = arith.constant 0 : i32
    return %arg0, %c0_i32 : i32, i32
  }
}

module attributes {stable_mosaic.version = 11 : i64} {
  func.func @_diffusion_net_layer_kernel(%arg0: i32, %arg1: memref<1200x128xf32, #tpu.memory_space<vmem>>, %arg2: memref<128x128xbf16, #tpu.memory_space<vmem>>, %arg3: memref<1x128xf32, #tpu.memory_space<vmem>>, %arg4: memref<128x128xbf16, #tpu.memory_space<vmem>>, %arg5: memref<1x128xf32, #tpu.memory_space<vmem>>, %arg6: memref<1200x128xf32, #tpu.memory_space<vmem>>) attributes {dimension_semantics = [#tpu.dimension_semantics<parallel>], iteration_bounds = array<i64: 1>, scalar_prefetch = 0 : i64, scratch_operands = 0 : i64, tpu.core_type = #tpu.core_type<tc>, window_params = [{transform_indices = @transform_0, window_bounds = array<i64: 1200, 128>}, {pipeline_mode = #tpu.pipeline_mode<synchronous>, transform_indices = @transform_1, window_bounds = array<i64: 128, 128>}, {pipeline_mode = #tpu.pipeline_mode<synchronous>, transform_indices = @transform_2, window_bounds = array<i64: 1, 128>}, {pipeline_mode = #tpu.pipeline_mode<synchronous>, transform_indices = @transform_3, window_bounds = array<i64: 128, 128>}, {pipeline_mode = #tpu.pipeline_mode<synchronous>, transform_indices = @transform_4, window_bounds = array<i64: 1, 128>}, {transform_indices = @transform_5, window_bounds = array<i64: 1200, 128>}]} {
    %c0 = arith.constant 0 : index
    %c0_0 = arith.constant 0 : index
    %0 = vector.load %arg1[%c0, %c0_0] : memref<1200x128xf32, #tpu.memory_space<vmem>>, vector<1200x128xf32>
    %1 = arith.truncf %0 : vector<1200x128xf32> to vector<1200x128xbf16>
    %c0_1 = arith.constant 0 : index
    %c0_2 = arith.constant 0 : index
    %2 = vector.load %arg2[%c0_1, %c0_2] : memref<128x128xbf16, #tpu.memory_space<vmem>>, vector<128x128xbf16>
    %cst = arith.constant dense<0.000000e+00> : vector<1200x128xf32>
    %3 = tpu.matmul %1, %2, %cst {dimension_numbers = #tpu.dot_dimension_numbers<[1], [0], [0], [1], [0, 0, 1, 1], [], []>} : vector<1200x128xbf16>, vector<128x128xbf16>, vector<1200x128xf32> -> vector<1200x128xf32>
    %c0_3 = arith.constant 0 : index
    %c0_4 = arith.constant 0 : index
    %4 = vector.load %arg3[%c0_3, %c0_4] : memref<1x128xf32, #tpu.memory_space<vmem>>, vector<1x128xf32>
    %5 = vector.broadcast %4 : vector<1x128xf32> to vector<1200x128xf32>
    %6 = arith.addf %3, %5 : vector<1200x128xf32>
    %cst_5 = arith.constant 0.000000e+00 : f32
    %7 = vector.broadcast %cst_5 : f32 to vector<1200x128xf32>
    %8 = arith.maximumf %6, %7 : vector<1200x128xf32>
    %9 = arith.truncf %8 : vector<1200x128xf32> to vector<1200x128xbf16>
    %c0_6 = arith.constant 0 : index
    %c0_7 = arith.constant 0 : index
    %10 = vector.load %arg4[%c0_6, %c0_7] : memref<128x128xbf16, #tpu.memory_space<vmem>>, vector<128x128xbf16>
    %cst_8 = arith.constant dense<0.000000e+00> : vector<1200x128xf32>
    %11 = tpu.matmul %9, %10, %cst_8 {dimension_numbers = #tpu.dot_dimension_numbers<[1], [0], [0], [1], [0, 0, 1, 1], [], []>} : vector<1200x128xbf16>, vector<128x128xbf16>, vector<1200x128xf32> -> vector<1200x128xf32>
    %c0_9 = arith.constant 0 : index
    %c0_10 = arith.constant 0 : index
    %12 = vector.load %arg5[%c0_9, %c0_10] : memref<1x128xf32, #tpu.memory_space<vmem>>, vector<1x128xf32>
    %13 = vector.broadcast %12 : vector<1x128xf32> to vector<1200x128xf32>
    %14 = arith.addf %11, %13 : vector<1200x128xf32>
    %cst_11 = arith.constant 0.000000e+00 : f32
    %15 = vector.broadcast %cst_11 : f32 to vector<1200x128xf32>
    %16 = arith.maximumf %14, %15 : vector<1200x128xf32>
    %c0_12 = arith.constant 0 : index
    %c0_13 = arith.constant 0 : index
    %17 = vector.load %arg6[%c0_12, %c0_13] : memref<1200x128xf32, #tpu.memory_space<vmem>>, vector<1200x128xf32>
    tpu.vector_store %arg6[%c0_12, %c0_13], %16 {strides = array<i32>} : memref<1200x128xf32, #tpu.memory_space<vmem>>, vector<1200x128xf32>,
    return
  }
  func.func @transform_0(%arg0: i32) -> (i32, i32) {
    %c0_i32 = arith.constant 0 : i32
    %c0_i32_0 = arith.constant 0 : i32
    return %arg0, %c0_i32 : i32, i32
  }
  func.func @transform_1(%arg0: i32) -> (i32, i32) {
    %c0_i32 = arith.constant 0 : i32
    %c0_i32_0 = arith.constant 0 : i32
    %c0_i32_1 = arith.constant 0 : i32
    return %c0_i32, %c0_i32_0 : i32, i32
  }
  func.func @transform_2(%arg0: i32) -> (i32, i32) {
    %c0_i32 = arith.constant 0 : i32
    %c0_i32_0 = arith.constant 0 : i32
    %c0_i32_1 = arith.constant 0 : i32
    return %c0_i32, %c0_i32_0 : i32, i32
  }
  func.func @transform_3(%arg0: i32) -> (i32, i32) {
    %c0_i32 = arith.constant 0 : i32
    %c0_i32_0 = arith.constant 0 : i32
    %c0_i32_1 = arith.constant 0 : i32
    return %c0_i32, %c0_i32_0 : i32, i32
  }
  func.func @transform_4(%arg0: i32) -> (i32, i32) {
    %c0_i32 = arith.constant 0 : i32
    %c0_i32_0 = arith.constant 0 : i32
    %c0_i32_1 = arith.constant 0 : i32
    return %c0_i32, %c0_i32_0 : i32, i32
  }
  func.func @transform_5(%arg0: i32) -> (i32, i32) {
    %c0_i32 = arith.constant 0 : i32
    %c0_i32_0 = arith.constant 0 : i32
    return %arg0, %c0_i32 : i32, i32
  }
}

</mosaic_0001>

<bundles_post_ra>
// kernel: tpu_custom_call.1
= control target key start
LH: loop header
LB: loop body
LE: loop exit
PB: predicated region body
PF: predicated region fallthrough
CT: control target
= control target key end

     0   :  { %10 = vsyncpa [#allocation3], 0  ;;  %s2343_s0 = inlined_call_operand.hbm [shape: f32[1200,128], index: 0, kind: input, shape index: {}]   ;;  %s2344_s1 = inlined_call_operand.hbm [shape: bf16[128,128], index: 1, kind: input, shape index: {}]   ;;  %s2345_s2 = inlined_call_operand.vmem [shape: f32[1,128], index: 2, kind: input, shape index: {}]   ;;  %s2346_s3 = inlined_call_operand.hbm [shape: bf16[128,128], index: 3, kind: input, shape index: {}]   ;;  %s2347_s4 = inlined_call_operand.vmem [shape: f32[1,128], index: 4, kind: input, shape index: {}]   ;;  %s2348_s5 = inlined_call_operand.hbm [shape: f32[1200,128], index: 5, kind: output, shape index: {}]  }
   0x1   :  { %11 = vsyncpa [#allocation6], 0  ;;  %s30_s20 = sshll.u32 %s2344_s1, 4  ;;  %s31_s20 = int_to_ptr.hbm [resolvable:$true] %s30_s20 }
   0x2   :  { %12 = vsyncpa [#allocation4], 0  ;;  %s1954_s21 = smov [#allocation5]   ;;  %s17_s25 = sshll.u32 %s2343_s0, 4  ;;  %s18_s25 = int_to_ptr.hbm [resolvable:$true] %s17_s25 }
   0x3   :  { %s32_s22 = sshll.u32 %s1954_s21, 4  ;;  %s1955_s26 = smov 64   ;;  %s33_s22 = int_to_ptr.vmem [resolvable:$true] %s32_s22 }
   0x4   :  { %s1956_s27 = smov 4   ;;  %s1957_s28 = smov [#allocation2]  }
   0x5   :  { %38 = dma.hbm_to_vmem [thread:$0]  %s31_s20, 1024, %s33_s22, [#allocation6], %s1955_s26, %s1955_s26, %s1956_s27  }
   0x6   :  { %s19_s29 = sshll.u32 %s1957_s28, 4  ;;  %s1958_s30 = smov 128   ;;  %s20_s29 = int_to_ptr.vmem [resolvable:$true] %s19_s29 }
   0x7   :  { %s1959_s6 = smov 8   ;;  %s45_s8 = sshll.u32 %s2346_s3, 4  ;;  %s46_s8 = int_to_ptr.hbm [resolvable:$true] %s45_s8 }
   0x8   :  { %25 = dma.hbm_to_vmem [thread:$0]  %s18_s25, 19200, %s20_s29, [#allocation3], %s1958_s30, %s1958_s30, %s1959_s6  }
   0x9   :  { %s1960_s9 = smov [#allocation7]  }
   0xa   :  { %s47_s0 = sshll.u32 %s1960_s9, 4  ;;  %s48_s0 = int_to_ptr.vmem [resolvable:$true] %s47_s0 }
   0xb   :  { %53 = dma.hbm_to_vmem [thread:$0]  %s46_s8, 1024, %s48_s0, [#allocation6], %s1955_s26, %s1955_s26, %s1956_s27  }
   0xc   :  { %1948 = dma.done.wait [#allocation3], 19200  }
   0xd   :  { %1949 = vsyncadd [#allocation3], 4294948096 }
   0xe   :  { %1950 = dma.done.wait [#allocation6], 2048  }
   0xf   :  { %1951 = vsyncadd [#allocation6], 4294965248  ;;  %v1813_v0 = vld [vmem:[#allocation5 + $0x38] sm:$0xff]  ;;  %v1812_v1 = vld [vmem:[#allocation5 + $0x30] sm:$0xff]  ;;  %s1728_s23 = sshll.u32 %s2348_s5, 4  ;;  %s1729_s23 = int_to_ptr.hbm [resolvable:$true] %s1728_s23 }
  0x10   :  { %361 = vmatpush.bf16.msra.mxu0 %v1813_v0  ;;  %1822 = vmatpush.bf16.msra.mxu2 %v1813_v0  ;;  %v1811_v2 = vld [vmem:[#allocation5 + $0x28] sm:$0xff]  ;;  %v1810_v3 = vld [vmem:[#allocation5 + $0x20] sm:$0xff]  ;;  %v1809_v4 = vld [vmem:[#allocation5 + $0x18] sm:$0xff] }
  0x11   :  { %v1808_v5 = vld [vmem:[#allocation5 + $0x10] sm:$0xff]  ;;  %v1807_v6 = vld [vmem:[#allocation5 + $0x8] sm:$0xff]  ;;  %v1806_v7 = vld [vmem:[#allocation5] sm:$0xff] }
  0x12   :  { %v68_v8 = vld [vmem:[#allocation2] sm:$0xff]  ;;  %v69_v9 = vld [vmem:[#allocation2 + $0x8] sm:$0xff]  ;;  %v142_v10 = vld [vmem:[#allocation2 + $0x250] sm:$0xff] }
  0x13   :  { %v143_v11 = vld [vmem:[#allocation2 + $0x258] sm:$0xff]  ;;  %v218_v12 = vpack.c.bf16 %v69_v9, %v68_v8  ;;  %v70_v14 = vld [vmem:[#allocation2 + $0x10] sm:$0xff]  ;;  %v144_v16 = vld [vmem:[#allocation2 + $0x260] sm:$0xff] }
  0x14   :  { %362 = vmatpush.bf16.msra.mxu0 %v1812_v1  ;;  %1823 = vmatpush.bf16.msra.mxu2 %v1812_v1  ;;  %v255_v13 = vpack.c.bf16 %v143_v11, %v142_v10  ;;  %v71_v15 = vld [vmem:[#allocation2 + $0x18] sm:$0xff]  ;;  %v145_v17 = vld [vmem:[#allocation2 + $0x268] sm:$0xff]  ;;  %v72_v20 = vld [vmem:[#allocation2 + $0x20] sm:$0xff] }
  0x15   :  { %v219_v18 = vpack.c.bf16 %v71_v15, %v70_v14  ;;  %v256_v19 = vpack.c.bf16 %v145_v17, %v144_v16  ;;  %v73_v21 = vld [vmem:[#allocation2 + $0x28] sm:$0xff]  ;;  %v146_v22 = vld [vmem:[#allocation2 + $0x270] sm:$0xff]  ;;  %v147_v23 = vld [vmem:[#allocation2 + $0x278] sm:$0xff] }
  0x16   :  { %v220_v24 = vpack.c.bf16 %v73_v21, %v72_v20  ;;  %v257_v25 = vpack.c.bf16 %v147_v23, %v146_v22  ;;  %v74_v26 = vld [vmem:[#allocation2 + $0x30] sm:$0xff]  ;;  %v75_v27 = vld [vmem:[#allocation2 + $0x38] sm:$0xff]  ;;  %v148_v28 = vld [vmem:[#allocation2 + $0x280] sm:$0xff] }
  0x17   :  { %v149_v29 = vld [vmem:[#allocation2 + $0x288] sm:$0xff]  ;;  %v221_v30 = vpack.c.bf16 %v75_v27, %v74_v26  ;;  %v76_v32 = vld [vmem:[#allocation2 + $0x40] sm:$0xff]  ;;  %v150_v34 = vld [vmem:[#allocation2 + $0x290] sm:$0xff] }
  0x18   :  { %363 = vmatpush.bf16.msra.mxu0 %v1811_v2  ;;  %1824 = vmatpush.bf16.msra.mxu2 %v1811_v2  ;;  %v258_v31 = vpack.c.bf16 %v149_v29, %v148_v28  ;;  %v77_v33 = vld [vmem:[#allocation2 + $0x48] sm:$0xff]  ;;  %v151_v35 = vld [vmem:[#allocation2 + $0x298] sm:$0xff]  ;;  %v78_v39 = vld [vmem:[#allocation2 + $0x50] sm:$0xff] }
  0x19   :  { %v222_v36 = vpack.c.bf16 %v77_v33, %v76_v32  ;;  %v259_v37 = vpack.c.bf16 %v151_v35, %v150_v34  ;;  %v1821_v38 = vld [vmem:[#allocation7 + $0x38] sm:$0xff]  ;;  %v79_v40 = vld [vmem:[#allocation2 + $0x58] sm:$0xff]  ;;  %v152_v41 = vld [vmem:[#allocation2 + $0x2a0] sm:$0xff] }
  0x1a   :  { %1038 = vmatpush.bf16.msra.mxu1 %v1821_v38  ;;  %1830 = vmatpush.bf16.msra.mxu3 %v1821_v38  ;;  %v153_v42 = vld [vmem:[#allocation2 + $0x2a8] sm:$0xff]  ;;  %v223_v43 = vpack.c.bf16 %v79_v40, %v78_v39  ;;  %v1820_v45 = vld [vmem:[#allocation7 + $0x30] sm:$0xff]  ;;  %v1819_v46 = vld [vmem:[#allocation7 + $0x28] sm:$0xff] }
  0x1b   :  { %v260_v44 = vpack.c.bf16 %v153_v42, %v152_v41  ;;  %v1818_v47 = vld [vmem:[#allocation7 + $0x20] sm:$0xff]  ;;  %v80_v48 = vld [vmem:[#allocation2 + $0x60] sm:$0xff]  ;;  %v81_v49 = vld [vmem:[#allocation2 + $0x68] sm:$0xff] }
  0x1c   :  { %364 = vmatpush.bf16.msra.mxu0 %v1810_v3  ;;  %1825 = vmatpush.bf16.msra.mxu2 %v1810_v3  ;;  %v154_v50 = vld [vmem:[#allocation2 + $0x2b0] sm:$0xff]  ;;  %v155_v51 = vld [vmem:[#allocation2 + $0x2b8] sm:$0xff]  ;;  %v1817_v52 = vld [vmem:[#allocation7 + $0x18] sm:$0xff]  ;;  %v224_v53 = vpack.c.bf16 %v81_v49, %v80_v48 }
  0x1d   :  { %v261_v54 = vpack.c.bf16 %v155_v51, %v154_v50  ;;  %v1816_v55 = vld [vmem:[#allocation7 + $0x10] sm:$0xff]  ;;  %v1815_v56 = vld [vmem:[#allocation7 + $0x8] sm:$0xff]  ;;  %v1814_v57 = vld [vmem:[#allocation7] sm:$0xff] }
  0x1e   :  { %1039 = vmatpush.bf16.msra.mxu1 %v1820_v45  ;;  %1831 = vmatpush.bf16.msra.mxu3 %v1820_v45  ;;  %v82_v58 = vld [vmem:[#allocation2 + $0x70] sm:$0xff]  ;;  %v83_v59 = vld [vmem:[#allocation2 + $0x78] sm:$0xff]  ;;  %v156_v60 = vld [vmem:[#allocation2 + $0x2c0] sm:$0xff] }
  0x1f   :  { %v157_v61 = vld [vmem:[#allocation2 + $0x2c8] sm:$0xff]  ;;  %v225_v62 = vpack.c.bf16 %v83_v59, %v82_v58  ;;  %v84_v0 = vld [vmem:[#allocation2 + $0x80] sm:$0xff]  ;;  %v158_v2 = vld [vmem:[#allocation2 + $0x2d0] sm:$0xff] }
  0x20   :  { %365 = vmatpush.bf16.msra.mxu0 %v1809_v4  ;;  %1826 = vmatpush.bf16.msra.mxu2 %v1809_v4  ;;  %v262_v63 = vpack.c.bf16 %v157_v61, %v156_v60  ;;  %v85_v1 = vld [vmem:[#allocation2 + $0x88] sm:$0xff]  ;;  %v159_v3 = vld [vmem:[#allocation2 + $0x2d8] sm:$0xff]  ;;  %v86_v14 = vld [vmem:[#allocation2 + $0x90] sm:$0xff] }
  0x21   :  { %v226_v4 = vpack.c.bf16 %v85_v1, %v84_v0  ;;  %v87_v15 = vld [vmem:[#allocation2 + $0x98] sm:$0xff]  ;;  %v160_v16 = vld [vmem:[#allocation2 + $0x2e0] sm:$0xff]  ;;  %v161_v17 = vld [vmem:[#allocation2 + $0x2e8] sm:$0xff] }
  0x22   :  { %1040 = vmatpush.bf16.msra.mxu1 %v1819_v46  ;;  %1832 = vmatpush.bf16.msra.mxu3 %v1819_v46  ;;  %v227_v22 = vpack.c.bf16 %v87_v15, %v86_v14  ;;  %v264_v23 = vpack.c.bf16 %v161_v17, %v160_v16  ;;  %v88_v34 = vld [vmem:[#allocation2 + $0xa0] sm:$0xff]  ;;  %v89_v35 = vld [vmem:[#allocation2 + $0xa8] sm:$0xff]  ;;  %v167_v14 = vld [vmem:[#allocation2 + $0x318] sm:$0xff] }
  0x23   :  { %v228_v42 = vpack.c.bf16 %v89_v35, %v88_v34  ;;  %v168_v34 = vld [vmem:[#allocation2 + $0x320] sm:$0xff]  ;;  %v169_v35 = vld [vmem:[#allocation2 + $0x328] sm:$0xff] }
  0x24   :  { %366 = vmatpush.bf16.msra.mxu0 %v1808_v5  ;;  %1827 = vmatpush.bf16.msra.mxu2 %v1808_v5  ;;  %v263_v5 = vpack.c.bf16 %v159_v3, %v158_v2 }
  0x26   :  { %1041 = vmatpush.bf16.msra.mxu1 %v1818_v47  ;;  %1833 = vmatpush.bf16.msra.mxu3 %v1818_v47 }
  0x28   :  { %367 = vmatpush.bf16.msra.mxu0 %v1807_v6  ;;  %1828 = vmatpush.bf16.msra.mxu2 %v1807_v6 }
  0x2a   :  { %1042 = vmatpush.bf16.msra.mxu1 %v1817_v52  ;;  %1834 = vmatpush.bf16.msra.mxu3 %v1817_v52 }
  0x2c   :  { %368 = vmatpush.bf16.msra.mxu0 %v1806_v7  ;;  %1829 = vmatpush.bf16.msra.mxu2 %v1806_v7  ;;  %v2007_v7 = vld [vmem:[%s2345_s2] ss:$0 sm:$0xff] }
  0x2e   :  { %1043 = vmatpush.bf16.msra.mxu1 %v1816_v55  ;;  %1835 = vmatpush.bf16.msra.mxu3 %v1816_v55  ;;  %v91_v55 = vld [vmem:[#allocation2 + $0xb8] sm:$0xff] }
  0x2f   :  { %369 = vmatmul.bf16.vlgmr.msra.gmra.mxu0 %v218_v12  ;;  %554 = vmatmul.bf16.vlgmr.msra.gmra.mxu2 %v255_v13 }
  0x32   :  { %1044 = vmatpush.bf16.msra.mxu1 %v1815_v56  ;;  %1836 = vmatpush.bf16.msra.mxu3 %v1815_v56  ;;  %v164_v56 = vld [vmem:[#allocation2 + $0x300] sm:$0xff] }
  0x36   :  { %1045 = vmatpush.bf16.msra.mxu1 %v1814_v57  ;;  %1837 = vmatpush.bf16.msra.mxu3 %v1814_v57  ;;  %v165_v57 = vld [vmem:[#allocation2 + $0x308] sm:$0xff] }
  0x3f   :  { %374 = vmatmul.bf16.gmra.mxu0 %v219_v18  ;;  %559 = vmatmul.bf16.gmra.mxu2 %v256_v19 }
  0x4f   :  { %379 = vmatmul.bf16.gmra.mxu0 %v220_v24  ;;  %564 = vmatmul.bf16.gmra.mxu2 %v257_v25 }
  0x5f   :  { %384 = vmatmul.bf16.gmra.mxu0 %v221_v30  ;;  %569 = vmatmul.bf16.gmra.mxu2 %v258_v31 }
  0x6f   :  { %389 = vmatmul.bf16.gmra.mxu0 %v222_v36  ;;  %574 = vmatmul.bf16.gmra.mxu2 %v259_v37  ;;  %v162_v36 = vld [vmem:[#allocation2 + $0x2f0] sm:$0xff]  ;;  %v163_v37 = vld [vmem:[#allocation2 + $0x2f8] sm:$0xff] }
  0x7f   :  { %394 = vmatmul.bf16.gmra.mxu0 %v223_v43  ;;  %579 = vmatmul.bf16.gmra.mxu2 %v260_v44  ;;  %v265_v43 = vpack.c.bf16 %v163_v37, %v162_v36 }
  0x8f   :  { %399 = vmatmul.bf16.gmra.mxu0 %v224_v53  ;;  %584 = vmatmul.bf16.gmra.mxu2 %v261_v54  ;;  %v90_v54 = vld [vmem:[#allocation2 + $0xb0] sm:$0xff] }
  0x9f   :  { %404 = vmatmul.bf16.gmra.mxu0 %v225_v62  ;;  %589 = vmatmul.bf16.gmra.mxu2 %v262_v63  ;;  %v229_v62 = vpack.c.bf16 %v91_v55, %v90_v54  ;;  %v266_v63 = vpack.c.bf16 %v165_v57, %v164_v56  ;;  %v170_v54 = vld [vmem:[#allocation2 + $0x330] sm:$0xff]  ;;  %v171_v55 = vld [vmem:[#allocation2 + $0x338] sm:$0xff] }
  0xac   :  { %v370_v6 = vpop.f32.mrf.mxu0 }
  0xad   :  { %v371_v8 = vadd.f32 %v2007_v7, %v370_v6 }
  0xaf   :  { %409 = vmatmul.bf16.gmra.mxu0 %v226_v4  ;;  %594 = vmatmul.bf16.gmra.mxu2 %v263_v5  ;;  %v745_v11 = vmax.f32 %v371_v8, 0.0 }
  0xb2   :  { %v555_v9 = vpop.f32.mrf.mxu2 }
  0xb3   :  { %v556_v18 = vadd.f32 %v2007_v7, %v555_v9 }
  0xb4   :  { %v372_v10 = vpop.f32.mrf.mxu0 }
  0xb5   :  { %v373_v12 = vadd.f32 %v2007_v7, %v372_v10  ;;  %v819_v25 = vmax.f32 %v556_v18, 0.0 }
  0xb7   :  { %v746_v13 = vmax.f32 %v373_v12, 0.0  ;;  %v93_v12 = vld [vmem:[#allocation2 + $0xc8] sm:$0xff] }
  0xb9   :  { %v895_v19 = vpack.c.bf16 %v746_v13, %v745_v11  ;;  %v92_v11 = vld [vmem:[#allocation2 + $0xc0] sm:$0xff]  ;;  %v166_v13 = vld [vmem:[#allocation2 + $0x310] sm:$0xff] }
  0xba   :  { %v557_v20 = vpop.f32.mrf.mxu2 }
  0xbb   :  { %v558_v21 = vadd.f32 %v2007_v7, %v557_v20  ;;  %1046 = vmatmul.bf16.vlgmr.msra.gmra.mxu1 %v895_v19  ;;  %v230_v19 = vpack.c.bf16 %v93_v12, %v92_v11  ;;  %v267_v20 = vpack.c.bf16 %v167_v14, %v166_v13  ;;  %v172_v11 = vld [vmem:[#allocation2 + $0x340] sm:$0xff]  ;;  %v173_v12 = vld [vmem:[#allocation2 + $0x348] sm:$0xff] }
  0xbc   :  { %v375_v24 = vpop.f32.mrf.mxu0 }
  0xbd   :  { %v820_v26 = vmax.f32 %v558_v21, 0.0  ;;  %v376_v28 = vadd.f32 %v2007_v7, %v375_v24 }
  0xbf   :  { %414 = vmatmul.bf16.gmra.mxu0 %v227_v22  ;;  %599 = vmatmul.bf16.gmra.mxu2 %v264_v23  ;;  %v2013_v27 = vpack.c.bf16 %v820_v26, %v819_v25  ;;  %v747_v31 = vmax.f32 %v376_v28, 0.0 }
  0xc2   :  { %v560_v29 = vpop.f32.mrf.mxu2 }
  0xc3   :  { %v561_v38 = vadd.f32 %v2007_v7, %v560_v29 }
  0xc4   :  { %v377_v30 = vpop.f32.mrf.mxu0 }
  0xc5   :  { %v378_v32 = vadd.f32 %v2007_v7, %v377_v30  ;;  %v821_v45 = vmax.f32 %v561_v38, 0.0 }
  0xc7   :  { %v748_v33 = vmax.f32 %v378_v32, 0.0  ;;  %v94_v32 = vld [vmem:[#allocation2 + $0xd0] sm:$0xff] }
  0xc9   :  { %v896_v39 = vpack.c.bf16 %v748_v33, %v747_v31  ;;  %v95_v33 = vld [vmem:[#allocation2 + $0xd8] sm:$0xff] }
  0xca   :  { %v562_v40 = vpop.f32.mrf.mxu2 }
  0xcb   :  { %v563_v41 = vadd.f32 %v2007_v7, %v562_v40  ;;  %1051 = vmatmul.bf16.gmra.mxu1 %v896_v39  ;;  %v231_v40 = vpack.c.bf16 %v95_v33, %v94_v32  ;;  %v174_v32 = vld [vmem:[#allocation2 + $0x350] sm:$0xff]  ;;  %v175_v33 = vld [vmem:[#allocation2 + $0x358] sm:$0xff] }
  0xcc   :  { %v380_v44 = vpop.f32.mrf.mxu0 }
  0xcd   :  { %v822_v46 = vmax.f32 %v563_v41, 0.0  ;;  %v381_v48 = vadd.f32 %v2007_v7, %v380_v44  ;;  %v268_v41 = vpack.c.bf16 %v169_v35, %v168_v34 }
  0xcf   :  { %419 = vmatmul.bf16.gmra.mxu0 %v228_v42  ;;  %604 = vmatmul.bf16.gmra.mxu2 %v265_v43  ;;  %v933_v47 = vpack.c.bf16 %v822_v46, %v821_v45  ;;  %v749_v51 = vmax.f32 %v381_v48, 0.0 }
  0xd1   :  { %1236 = vmatmul.bf16.vlgmr.msra.gmra.mxu3 %v933_v47 }
  0xd2   :  { %v565_v49 = vpop.f32.mrf.mxu2 }
  0xd3   :  { %v566_v58 = vadd.f32 %v2007_v7, %v565_v49 }
  0xd4   :  { %v382_v50 = vpop.f32.mrf.mxu0 }
  0xd5   :  { %v383_v52 = vadd.f32 %v2007_v7, %v382_v50  ;;  %v823_v1 = vmax.f32 %v566_v58, 0.0 }
  0xd7   :  { %v750_v53 = vmax.f32 %v383_v52, 0.0  ;;  %v96_v52 = vld [vmem:[#allocation2 + $0xe0] sm:$0xff] }
  0xd9   :  { %v897_v59 = vpack.c.bf16 %v750_v53, %v749_v51  ;;  %v97_v53 = vld [vmem:[#allocation2 + $0xe8] sm:$0xff] }
  0xda   :  { %v567_v60 = vpop.f32.mrf.mxu2 }
  0xdb   :  { %v568_v61 = vadd.f32 %v2007_v7, %v567_v60  ;;  %1056 = vmatmul.bf16.gmra.mxu1 %v897_v59  ;;  %v232_v60 = vpack.c.bf16 %v97_v53, %v96_v52  ;;  %v103_v53 = vld [vmem:[#allocation2 + $0x118] sm:$0xff] }
  0xdc   :  { %v385_v0 = vpop.f32.mrf.mxu0 }
  0xdd   :  { %v824_v2 = vmax.f32 %v568_v61, 0.0  ;;  %v386_v4 = vadd.f32 %v2007_v7, %v385_v0  ;;  %v269_v61 = vpack.c.bf16 %v171_v55, %v170_v54  ;;  %v176_v54 = vld [vmem:[#allocation2 + $0x360] sm:$0xff]  ;;  %v177_v55 = vld [vmem:[#allocation2 + $0x368] sm:$0xff] }
  0xdf   :  { %424 = vmatmul.bf16.gmra.mxu0 %v229_v62  ;;  %609 = vmatmul.bf16.gmra.mxu2 %v266_v63  ;;  %v934_v3 = vpack.c.bf16 %v824_v2, %v823_v1  ;;  %v751_v8 = vmax.f32 %v386_v4, 0.0 }
  0xe1   :  { %1241 = vmatmul.bf16.gmra.mxu3 %v934_v3 }
  0xe2   :  { %v570_v5 = vpop.f32.mrf.mxu2 }
  0xe3   :  { %v571_v15 = vadd.f32 %v2007_v7, %v570_v5 }
  0xe4   :  { %v387_v6 = vpop.f32.mrf.mxu0 }
  0xe5   :  { %v388_v9 = vadd.f32 %v2007_v7, %v387_v6  ;;  %v825_v22 = vmax.f32 %v571_v15, 0.0 }
  0xe7   :  { %v752_v10 = vmax.f32 %v388_v9, 0.0  ;;  %v98_v9 = vld [vmem:[#allocation2 + $0xf0] sm:$0xff] }
  0xe9   :  { %v898_v16 = vpack.c.bf16 %v752_v10, %v751_v8  ;;  %v99_v10 = vld [vmem:[#allocation2 + $0xf8] sm:$0xff] }
  0xea   :  { %v572_v17 = vpop.f32.mrf.mxu2 }
  0xeb   :  { %v573_v18 = vadd.f32 %v2007_v7, %v572_v17  ;;  %1061 = vmatmul.bf16.gmra.mxu1 %v898_v16  ;;  %v233_v17 = vpack.c.bf16 %v99_v10, %v98_v9 }
  0xec   :  { %v390_v21 = vpop.f32.mrf.mxu0 }
  0xed   :  { %v826_v23 = vmax.f32 %v573_v18, 0.0  ;;  %v391_v25 = vadd.f32 %v2007_v7, %v390_v21  ;;  %v270_v18 = vpack.c.bf16 %v173_v12, %v172_v11 }
  0xef   :  { %429 = vmatmul.bf16.gmra.mxu0 %v230_v19  ;;  %614 = vmatmul.bf16.gmra.mxu2 %v267_v20  ;;  %v935_v24 = vpack.c.bf16 %v826_v23, %v825_v22  ;;  %v753_v29 = vmax.f32 %v391_v25, 0.0 }
  0xf1   :  { %1246 = vmatmul.bf16.gmra.mxu3 %v935_v24 }
  0xf2   :  { %v575_v26 = vpop.f32.mrf.mxu2 }
  0xf3   :  { %v576_v36 = vadd.f32 %v2007_v7, %v575_v26 }
  0xf4   :  { %v392_v28 = vpop.f32.mrf.mxu0 }
  0xf5   :  { %v393_v30 = vadd.f32 %v2007_v7, %v392_v28  ;;  %v827_v43 = vmax.f32 %v576_v36, 0.0 }
  0xf7   :  { %v754_v31 = vmax.f32 %v393_v30, 0.0  ;;  %v100_v30 = vld [vmem:[#allocation2 + $0x100] sm:$0xff] }
  0xf9   :  { %v899_v37 = vpack.c.bf16 %v754_v31, %v753_v29  ;;  %v101_v31 = vld [vmem:[#allocation2 + $0x108] sm:$0xff] }
  0xfa   :  { %v577_v38 = vpop.f32.mrf.mxu2 }
  0xfb   :  { %v578_v39 = vadd.f32 %v2007_v7, %v577_v38  ;;  %1066 = vmatmul.bf16.gmra.mxu1 %v899_v37  ;;  %v234_v38 = vpack.c.bf16 %v101_v31, %v100_v30 }
  0xfc   :  { %v395_v42 = vpop.f32.mrf.mxu0 }
  0xfd   :  { %v828_v44 = vmax.f32 %v578_v39, 0.0  ;;  %v396_v46 = vadd.f32 %v2007_v7, %v395_v42  ;;  %v271_v39 = vpack.c.bf16 %v175_v33, %v174_v32 }
  0xff   :  { %434 = vmatmul.bf16.gmra.mxu0 %v231_v40  ;;  %619 = vmatmul.bf16.gmra.mxu2 %v268_v41  ;;  %v936_v45 = vpack.c.bf16 %v828_v44, %v827_v43  ;;  %v755_v49 = vmax.f32 %v396_v46, 0.0 }
 0x101   :  { %1251 = vmatmul.bf16.gmra.mxu3 %v936_v45 }
 0x102   :  { %v580_v47 = vpop.f32.mrf.mxu2 }
 0x103   :  { %v581_v56 = vadd.f32 %v2007_v7, %v580_v47 }
 0x104   :  { %v397_v48 = vpop.f32.mrf.mxu0 }
 0x105   :  { %v398_v50 = vadd.f32 %v2007_v7, %v397_v48  ;;  %v829_v63 = vmax.f32 %v581_v56, 0.0 }
 0x107   :  { %v756_v51 = vmax.f32 %v398_v50, 0.0 }
 0x109   :  { %v900_v57 = vpack.c.bf16 %v756_v51, %v755_v49  ;;  %v2048_v49 = vld [vmem:[%s2347_s4] ss:$0 sm:$0xff]  ;;  %v102_v51 = vld [vmem:[#allocation2 + $0x110] sm:$0xff] }
 0x10a   :  { %v582_v58 = vpop.f32.mrf.mxu2 }
 0x10b   :  { %v583_v59 = vadd.f32 %v2007_v7, %v582_v58  ;;  %1071 = vmatmul.bf16.gmra.mxu1 %v900_v57 }
 0x10c   :  { %v400_v62 = vpop.f32.mrf.mxu0 }
 0x10d   :  { %v830_v0 = vmax.f32 %v583_v59, 0.0  ;;  %v401_v2 = vadd.f32 %v2007_v7, %v400_v62  ;;  %v235_v62 = vpack.c.bf16 %v103_v53, %v102_v51 }
 0x10f   :  { %439 = vmatmul.bf16.gmra.mxu0 %v232_v60  ;;  %624 = vmatmul.bf16.gmra.mxu2 %v269_v61  ;;  %v937_v1 = vpack.c.bf16 %v830_v0, %v829_v63  ;;  %v757_v5 = vmax.f32 %v401_v2, 0.0  ;;  %v272_v63 = vpack.c.bf16 %v177_v55, %v176_v54 }
 0x111   :  { %1256 = vmatmul.bf16.gmra.mxu3 %v937_v1 }
 0x112   :  { %v585_v3 = vpop.f32.mrf.mxu2 }
 0x113   :  { %v586_v13 = vadd.f32 %v2007_v7, %v585_v3 }
 0x114   :  { %v402_v4 = vpop.f32.mrf.mxu0 }
 0x115   :  { %v403_v6 = vadd.f32 %v2007_v7, %v402_v4  ;;  %v831_v20 = vmax.f32 %v586_v13, 0.0 }
 0x117   :  { %v758_v8 = vmax.f32 %v403_v6, 0.0 }
 0x119   :  { %v901_v14 = vpack.c.bf16 %v758_v8, %v757_v5 }
 0x11a   :  { %v587_v15 = vpop.f32.mrf.mxu2 }
 0x11b   :  { %v588_v16 = vadd.f32 %v2007_v7, %v587_v15  ;;  %1076 = vmatmul.bf16.gmra.mxu1 %v901_v14  ;;  %v104_v14 = vld [vmem:[#allocation2 + $0x120] sm:$0xff] }
 0x11c   :  { %v405_v19 = vpop.f32.mrf.mxu0 }
 0x11d   :  { %v832_v21 = vmax.f32 %v588_v16, 0.0  ;;  %v406_v23 = vadd.f32 %v2007_v7, %v405_v19  ;;  %v105_v16 = vld [vmem:[#allocation2 + $0x128] sm:$0xff] }
 0x11f   :  { %444 = vmatmul.bf16.gmra.mxu0 %v233_v17  ;;  %629 = vmatmul.bf16.gmra.mxu2 %v270_v18  ;;  %v938_v22 = vpack.c.bf16 %v832_v21, %v831_v20  ;;  %v759_v26 = vmax.f32 %v406_v23, 0.0  ;;  %v178_v17 = vld [vmem:[#allocation2 + $0x370] sm:$0xff]  ;;  %v179_v18 = vld [vmem:[#allocation2 + $0x378] sm:$0xff] }
 0x121   :  { %1261 = vmatmul.bf16.gmra.mxu3 %v938_v22 }
 0x122   :  { %v590_v24 = vpop.f32.mrf.mxu2 }
 0x123   :  { %v591_v34 = vadd.f32 %v2007_v7, %v590_v24 }
 0x124   :  { %v407_v25 = vpop.f32.mrf.mxu0 }
 0x125   :  { %v408_v28 = vadd.f32 %v2007_v7, %v407_v25  ;;  %v833_v41 = vmax.f32 %v591_v34, 0.0  ;;  %v236_v25 = vpack.c.bf16 %v105_v16, %v104_v14  ;;  %v108_v14 = vld [vmem:[#allocation2 + $0x140] sm:$0xff]  ;;  %v109_v16 = vld [vmem:[#allocation2 + $0x148] sm:$0xff] }
 0x127   :  { %v760_v29 = vmax.f32 %v408_v28, 0.0 }
 0x129   :  { %v902_v35 = vpack.c.bf16 %v760_v29, %v759_v26  ;;  %v273_v26 = vpack.c.bf16 %v179_v18, %v178_v17  ;;  %v182_v17 = vld [vmem:[#allocation2 + $0x390] sm:$0xff]  ;;  %v183_v18 = vld [vmem:[#allocation2 + $0x398] sm:$0xff] }
 0x12a   :  { %v592_v36 = vpop.f32.mrf.mxu2 }
 0x12b   :  { %v593_v37 = vadd.f32 %v2007_v7, %v592_v36  ;;  %1081 = vmatmul.bf16.gmra.mxu1 %v902_v35 }
 0x12c   :  { %v410_v40 = vpop.f32.mrf.mxu0 }
 0x12d   :  { %v834_v42 = vmax.f32 %v593_v37, 0.0  ;;  %v411_v44 = vadd.f32 %v2007_v7, %v410_v40 }
 0x12f   :  { %449 = vmatmul.bf16.gmra.mxu0 %v234_v38  ;;  %634 = vmatmul.bf16.gmra.mxu2 %v271_v39  ;;  %v939_v43 = vpack.c.bf16 %v834_v42, %v833_v41  ;;  %v761_v47 = vmax.f32 %v411_v44, 0.0  ;;  %v106_v44 = vld [vmem:[#allocation2 + $0x130] sm:$0xff] }
 0x131   :  { %1266 = vmatmul.bf16.gmra.mxu3 %v939_v43 }
 0x132   :  { %v595_v45 = vpop.f32.mrf.mxu2 }
 0x133   :  { %v596_v56 = vadd.f32 %v2007_v7, %v595_v45 }
 0x134   :  { %v412_v46 = vpop.f32.mrf.mxu0 }
 0x135   :  { %v413_v48 = vadd.f32 %v2007_v7, %v412_v46  ;;  %v835_v1 = vmax.f32 %v596_v56, 0.0  ;;  %v107_v46 = vld [vmem:[#allocation2 + $0x138] sm:$0xff] }
 0x136   :  { %v237_v56 = vpack.c.bf16 %v107_v46, %v106_v44 }
 0x137   :  { %v762_v50 = vmax.f32 %v413_v48, 0.0  ;;  %v181_v48 = vld [vmem:[#allocation2 + $0x388] sm:$0xff] }
 0x138   :  { %v1047_v52 = vpop.f32.mrf.mxu1 }
 0x139   :  { %v1048_v57 = vadd.f32 %v2048_v49, %v1047_v52  ;;  %v903_v58 = vpack.c.bf16 %v762_v50, %v761_v47  ;;  %v180_v47 = vld [vmem:[#allocation2 + $0x380] sm:$0xff] }
 0x13a   :  { %v597_v59 = vpop.f32.mrf.mxu2 }
 0x13b   :  { %v1422_v60 = vmax.f32 %v1048_v57, 0.0  ;;  %v598_v61 = vadd.f32 %v2007_v7, %v597_v59  ;;  %1086 = vmatmul.bf16.gmra.mxu1 %v903_v58  ;;  %v274_v57 = vpack.c.bf16 %v181_v48, %v180_v47  ;;  %v110_v47 = vld [vmem:[#allocation2 + $0x150] sm:$0xff] }
 0x13c   :  { %v415_v0 = vpop.f32.mrf.mxu0 }
 0x13d   :  { %1572 = vst [vmem:[#allocation8] sm:$0xff] %v1422_v60  ;;  %v836_v2 = vmax.f32 %v598_v61, 0.0  ;;  %v416_v5 = vadd.f32 %v2007_v7, %v415_v0 }
 0x13f   :  { %454 = vmatmul.bf16.gmra.mxu0 %v235_v62  ;;  %639 = vmatmul.bf16.gmra.mxu2 %v272_v63  ;;  %v940_v3 = vpack.c.bf16 %v836_v2, %v835_v1  ;;  %v763_v11 = vmax.f32 %v416_v5, 0.0 }
 0x140   :  { %v1049_v4 = vpop.f32.mrf.mxu1 }
 0x141   :  { %v1050_v6 = vadd.f32 %v2048_v49, %v1049_v4  ;;  %1271 = vmatmul.bf16.gmra.mxu3 %v940_v3 }
 0x142   :  { %v600_v8 = vpop.f32.mrf.mxu2 }
 0x143   :  { %v1423_v9 = vmax.f32 %v1050_v6, 0.0  ;;  %v601_v19 = vadd.f32 %v2007_v7, %v600_v8 }
 0x144   :  { %v417_v10 = vpop.f32.mrf.mxu0 }
 0x145   :  { %1573 = vst [vmem:[#allocation8 + $0x8] sm:$0xff] %v1423_v9  ;;  %v418_v12 = vadd.f32 %v2007_v7, %v417_v10  ;;  %v837_v29 = vmax.f32 %v601_v19, 0.0 }
 0x147   :  { %v764_v13 = vmax.f32 %v418_v12, 0.0 }
 0x148   :  { %v1052_v15 = vpop.f32.mrf.mxu1 }
 0x149   :  { %v1053_v20 = vadd.f32 %v2048_v49, %v1052_v15  ;;  %v904_v21 = vpack.c.bf16 %v764_v13, %v763_v11 }
 0x14a   :  { %v602_v22 = vpop.f32.mrf.mxu2 }
 0x14b   :  { %v1424_v23 = vmax.f32 %v1053_v20, 0.0  ;;  %v603_v24 = vadd.f32 %v2007_v7, %v602_v22  ;;  %1091 = vmatmul.bf16.gmra.mxu1 %v904_v21 }
 0x14c   :  { %v420_v28 = vpop.f32.mrf.mxu0 }
 0x14d   :  { %1574 = vst [vmem:[#allocation8 + $0x10] sm:$0xff] %v1424_v23  ;;  %v838_v30 = vmax.f32 %v603_v24, 0.0  ;;  %v421_v33 = vadd.f32 %v2007_v7, %v420_v28 }
 0x14f   :  { %459 = vmatmul.bf16.gmra.mxu0 %v236_v25  ;;  %644 = vmatmul.bf16.gmra.mxu2 %v273_v26  ;;  %v941_v31 = vpack.c.bf16 %v838_v30, %v837_v29  ;;  %v765_v39 = vmax.f32 %v421_v33, 0.0  ;;  %v238_v25 = vpack.c.bf16 %v109_v16, %v108_v14  ;;  %v275_v26 = vpack.c.bf16 %v183_v18, %v182_v17  ;;  %v112_v17 = vld [vmem:[#allocation2 + $0x160] sm:$0xff] }
 0x150   :  { %v1054_v32 = vpop.f32.mrf.mxu1 }
 0x151   :  { %v1055_v34 = vadd.f32 %v2048_v49, %v1054_v32  ;;  %1276 = vmatmul.bf16.gmra.mxu3 %v941_v31 }
 0x152   :  { %v605_v35 = vpop.f32.mrf.mxu2 }
 0x153   :  { %v1425_v36 = vmax.f32 %v1055_v34, 0.0  ;;  %v606_v50 = vadd.f32 %v2007_v7, %v605_v35 }
 0x154   :  { %v422_v37 = vpop.f32.mrf.mxu0  ;;  %v1237_v38 = vpop.f32.mrf.mxu3 }
 0x155   :  { %1575 = vst [vmem:[#allocation8 + $0x18] sm:$0xff] %v1425_v36  ;;  %v423_v40 = vadd.f32 %v2007_v7, %v422_v37  ;;  %v1238_v41 = vadd.f32 %v2048_v49, %v1237_v38  ;;  %v839_v60 = vmax.f32 %v606_v50, 0.0  ;;  %v111_v50 = vld [vmem:[#allocation2 + $0x158] sm:$0xff] }
 0x157   :  { %v766_v42 = vmax.f32 %v423_v40, 0.0  ;;  %v1498_v43 = vmax.f32 %v1238_v41, 0.0 }
 0x158   :  { %v1057_v45 = vpop.f32.mrf.mxu1 }
 0x159   :  { %1648 = vst [vmem:[#allocation8 + $0x260] sm:$0xff] %v1498_v43  ;;  %v1058_v51 = vadd.f32 %v2048_v49, %v1057_v45  ;;  %v905_v52 = vpack.c.bf16 %v766_v42, %v765_v39 }
 0x15a   :  { %v607_v53 = vpop.f32.mrf.mxu2 }
 0x15b   :  { %v1426_v54 = vmax.f32 %v1058_v51, 0.0  ;;  %v608_v55 = vadd.f32 %v2007_v7, %v607_v53  ;;  %1096 = vmatmul.bf16.gmra.mxu1 %v905_v52  ;;  %v184_v51 = vld [vmem:[#allocation2 + $0x3a0] sm:$0xff]  ;;  %v185_v52 = vld [vmem:[#allocation2 + $0x3a8] sm:$0xff] }
 0x15c   :  { %v425_v58 = vpop.f32.mrf.mxu0  ;;  %v1239_v59 = vpop.f32.mrf.mxu3 }
 0x15d   :  { %1576 = vst [vmem:[#allocation8 + $0x20] sm:$0xff] %v1426_v54  ;;  %v840_v61 = vmax.f32 %v608_v55, 0.0  ;;  %v1240_v62 = vadd.f32 %v2048_v49, %v1239_v59  ;;  %v426_v2 = vadd.f32 %v2007_v7, %v425_v58  ;;  %v239_v59 = vpack.c.bf16 %v111_v50, %v110_v47 }
 0x15f   :  { %v1499_v63 = vmax.f32 %v1240_v62, 0.0  ;;  %464 = vmatmul.bf16.gmra.mxu0 %v237_v56  ;;  %649 = vmatmul.bf16.gmra.mxu2 %v274_v57  ;;  %v942_v0 = vpack.c.bf16 %v840_v61, %v839_v60  ;;  %v767_v9 = vmax.f32 %v426_v2, 0.0  ;;  %v276_v60 = vpack.c.bf16 %v185_v52, %v184_v51  ;;  %v114_v51 = vld [vmem:[#allocation2 + $0x170] sm:$0xff] }
 0x160   :  { %v1059_v1 = vpop.f32.mrf.mxu1 }
 0x161   :  { %1649 = vst [vmem:[#allocation8 + $0x268] sm:$0xff] %v1499_v63  ;;  %v1060_v3 = vadd.f32 %v2048_v49, %v1059_v1  ;;  %1281 = vmatmul.bf16.gmra.mxu3 %v942_v0 }
 0x162   :  { %v610_v4 = vpop.f32.mrf.mxu2 }
 0x163   :  { %v1427_v5 = vmax.f32 %v1060_v3, 0.0  ;;  %v611_v19 = vadd.f32 %v2007_v7, %v610_v4 }
 0x164   :  { %v427_v6 = vpop.f32.mrf.mxu0  ;;  %v1242_v8 = vpop.f32.mrf.mxu3 }
 0x165   :  { %1577 = vst [vmem:[#allocation8 + $0x28] sm:$0xff] %v1427_v5  ;;  %v428_v10 = vadd.f32 %v2007_v7, %v427_v6  ;;  %v1243_v11 = vadd.f32 %v2048_v49, %v1242_v8  ;;  %v841_v30 = vmax.f32 %v611_v19, 0.0  ;;  %v113_v19 = vld [vmem:[#allocation2 + $0x168] sm:$0xff] }
 0x167   :  { %v768_v12 = vmax.f32 %v428_v10, 0.0  ;;  %v1500_v13 = vmax.f32 %v1243_v11, 0.0 }
 0x168   :  { %v1062_v15 = vpop.f32.mrf.mxu1 }
 0x169   :  { %1650 = vst [vmem:[#allocation8 + $0x270] sm:$0xff] %v1500_v13  ;;  %v1063_v20 = vadd.f32 %v2048_v49, %v1062_v15  ;;  %v906_v21 = vpack.c.bf16 %v768_v12, %v767_v9 }
 0x16a   :  { %v612_v22 = vpop.f32.mrf.mxu2 }
 0x16b   :  { %v1428_v23 = vmax.f32 %v1063_v20, 0.0  ;;  %v613_v24 = vadd.f32 %v2007_v7, %v612_v22  ;;  %1101 = vmatmul.bf16.gmra.mxu1 %v906_v21  ;;  %v186_v20 = vld [vmem:[#allocation2 + $0x3b0] sm:$0xff]  ;;  %v187_v21 = vld [vmem:[#allocation2 + $0x3b8] sm:$0xff] }
 0x16c   :  { %v430_v28 = vpop.f32.mrf.mxu0  ;;  %v1244_v29 = vpop.f32.mrf.mxu3 }
 0x16d   :  { %1578 = vst [vmem:[#allocation8 + $0x30] sm:$0xff] %v1428_v23  ;;  %v842_v31 = vmax.f32 %v613_v24, 0.0  ;;  %v1245_v32 = vadd.f32 %v2048_v49, %v1244_v29  ;;  %v431_v36 = vadd.f32 %v2007_v7, %v430_v28  ;;  %v240_v29 = vpack.c.bf16 %v113_v19, %v112_v17 }
 0x16f   :  { %v1501_v33 = vmax.f32 %v1245_v32, 0.0  ;;  %469 = vmatmul.bf16.gmra.mxu0 %v238_v25  ;;  %654 = vmatmul.bf16.gmra.mxu2 %v275_v26  ;;  %v943_v34 = vpack.c.bf16 %v842_v31, %v841_v30  ;;  %v769_v42 = vmax.f32 %v431_v36, 0.0  ;;  %v277_v30 = vpack.c.bf16 %v187_v21, %v186_v20  ;;  %v116_v20 = vld [vmem:[#allocation2 + $0x180] sm:$0xff] }
 0x170   :  { %v1064_v35 = vpop.f32.mrf.mxu1 }
 0x171   :  { %1651 = vst [vmem:[#allocation8 + $0x278] sm:$0xff] %v1501_v33  ;;  %v1065_v37 = vadd.f32 %v2048_v49, %v1064_v35  ;;  %1286 = vmatmul.bf16.gmra.mxu3 %v943_v34 }
 0x172   :  { %v615_v38 = vpop.f32.mrf.mxu2 }
 0x173   :  { %v1429_v39 = vmax.f32 %v1065_v37, 0.0  ;;  %v616_v53 = vadd.f32 %v2007_v7, %v615_v38 }
 0x174   :  { %v432_v40 = vpop.f32.mrf.mxu0  ;;  %v1247_v41 = vpop.f32.mrf.mxu3 }
 0x175   :  { %1579 = vst [vmem:[#allocation8 + $0x38] sm:$0xff] %v1429_v39  ;;  %v433_v43 = vadd.f32 %v2007_v7, %v432_v40  ;;  %v1248_v44 = vadd.f32 %v2048_v49, %v1247_v41  ;;  %v843_v63 = vmax.f32 %v616_v53, 0.0  ;;  %v115_v53 = vld [vmem:[#allocation2 + $0x178] sm:$0xff] }
 0x177   :  { %v770_v45 = vmax.f32 %v433_v43, 0.0  ;;  %v1502_v46 = vmax.f32 %v1248_v44, 0.0 }
 0x178   :  { %v1067_v48 = vpop.f32.mrf.mxu1 }
 0x179   :  { %1652 = vst [vmem:[#allocation8 + $0x280] sm:$0xff] %v1502_v46  ;;  %v1068_v54 = vadd.f32 %v2048_v49, %v1067_v48  ;;  %v907_v55 = vpack.c.bf16 %v770_v45, %v769_v42 }
 0x17a   :  { %v617_v56 = vpop.f32.mrf.mxu2 }
 0x17b   :  { %v1430_v57 = vmax.f32 %v1068_v54, 0.0  ;;  %v618_v58 = vadd.f32 %v2007_v7, %v617_v56  ;;  %1106 = vmatmul.bf16.gmra.mxu1 %v907_v55  ;;  %v188_v54 = vld [vmem:[#allocation2 + $0x3c0] sm:$0xff]  ;;  %v189_v55 = vld [vmem:[#allocation2 + $0x3c8] sm:$0xff] }
 0x17c   :  { %v435_v61 = vpop.f32.mrf.mxu0  ;;  %v1249_v62 = vpop.f32.mrf.mxu3 }
 0x17d   :  { %1580 = vst [vmem:[#allocation8 + $0x40] sm:$0xff] %v1430_v57  ;;  %v844_v0 = vmax.f32 %v618_v58, 0.0  ;;  %v1250_v1 = vadd.f32 %v2048_v49, %v1249_v62  ;;  %v436_v5 = vadd.f32 %v2007_v7, %v435_v61  ;;  %v241_v62 = vpack.c.bf16 %v115_v53, %v114_v51 }
 0x17f   :  { %v1503_v2 = vmax.f32 %v1250_v1, 0.0  ;;  %474 = vmatmul.bf16.gmra.mxu0 %v239_v59  ;;  %659 = vmatmul.bf16.gmra.mxu2 %v276_v60  ;;  %v944_v3 = vpack.c.bf16 %v844_v0, %v843_v63  ;;  %v771_v12 = vmax.f32 %v436_v5, 0.0  ;;  %v278_v63 = vpack.c.bf16 %v189_v55, %v188_v54  ;;  %v118_v54 = vld [vmem:[#allocation2 + $0x190] sm:$0xff] }
 0x180   :  { %v1069_v4 = vpop.f32.mrf.mxu1 }
 0x181   :  { %1653 = vst [vmem:[#allocation8 + $0x288] sm:$0xff] %v1503_v2  ;;  %v1070_v6 = vadd.f32 %v2048_v49, %v1069_v4  ;;  %1291 = vmatmul.bf16.gmra.mxu3 %v944_v3 }
 0x182   :  { %v620_v8 = vpop.f32.mrf.mxu2 }
 0x183   :  { %v1431_v9 = vmax.f32 %v1070_v6, 0.0  ;;  %v621_v22 = vadd.f32 %v2007_v7, %v620_v8 }
 0x184   :  { %v437_v10 = vpop.f32.mrf.mxu0  ;;  %v1252_v11 = vpop.f32.mrf.mxu3 }
 0x185   :  { %1581 = vst [vmem:[#allocation8 + $0x48] sm:$0xff] %v1431_v9  ;;  %v438_v13 = vadd.f32 %v2007_v7, %v437_v10  ;;  %v1253_v14 = vadd.f32 %v2048_v49, %v1252_v11  ;;  %v845_v33 = vmax.f32 %v621_v22, 0.0  ;;  %v117_v22 = vld [vmem:[#allocation2 + $0x188] sm:$0xff] }
 0x187   :  { %v772_v15 = vmax.f32 %v438_v13, 0.0  ;;  %v1504_v16 = vmax.f32 %v1253_v14, 0.0 }
 0x188   :  { %v1072_v18 = vpop.f32.mrf.mxu1 }
 0x189   :  { %1654 = vst [vmem:[#allocation8 + $0x290] sm:$0xff] %v1504_v16  ;;  %v1073_v23 = vadd.f32 %v2048_v49, %v1072_v18  ;;  %v908_v24 = vpack.c.bf16 %v772_v15, %v771_v12 }
 0x18a   :  { %v622_v25 = vpop.f32.mrf.mxu2 }
 0x18b   :  { %v1432_v26 = vmax.f32 %v1073_v23, 0.0  ;;  %v623_v28 = vadd.f32 %v2007_v7, %v622_v25  ;;  %1111 = vmatmul.bf16.gmra.mxu1 %v908_v24  ;;  %v190_v23 = vld [vmem:[#allocation2 + $0x3d0] sm:$0xff]  ;;  %v191_v24 = vld [vmem:[#allocation2 + $0x3d8] sm:$0xff] }
 0x18c   :  { %v440_v31 = vpop.f32.mrf.mxu0  ;;  %v1254_v32 = vpop.f32.mrf.mxu3 }
 0x18d   :  { %1582 = vst [vmem:[#allocation8 + $0x50] sm:$0xff] %v1432_v26  ;;  %v846_v34 = vmax.f32 %v623_v28, 0.0  ;;  %v1255_v35 = vadd.f32 %v2048_v49, %v1254_v32  ;;  %v441_v39 = vadd.f32 %v2007_v7, %v440_v31  ;;  %v242_v32 = vpack.c.bf16 %v117_v22, %v116_v20 }
 0x18f   :  { %v1505_v36 = vmax.f32 %v1255_v35, 0.0  ;;  %479 = vmatmul.bf16.gmra.mxu0 %v240_v29  ;;  %664 = vmatmul.bf16.gmra.mxu2 %v277_v30  ;;  %v945_v37 = vpack.c.bf16 %v846_v34, %v845_v33  ;;  %v773_v45 = vmax.f32 %v441_v39, 0.0  ;;  %v279_v33 = vpack.c.bf16 %v191_v24, %v190_v23  ;;  %v120_v23 = vld [vmem:[#allocation2 + $0x1a0] sm:$0xff] }
 0x190   :  { %v1074_v38 = vpop.f32.mrf.mxu1 }
 0x191   :  { %1655 = vst [vmem:[#allocation8 + $0x298] sm:$0xff] %v1505_v36  ;;  %v1075_v40 = vadd.f32 %v2048_v49, %v1074_v38  ;;  %1296 = vmatmul.bf16.gmra.mxu3 %v945_v37 }
 0x192   :  { %v625_v41 = vpop.f32.mrf.mxu2 }
 0x193   :  { %v1433_v42 = vmax.f32 %v1075_v40, 0.0  ;;  %v626_v56 = vadd.f32 %v2007_v7, %v625_v41 }
 0x194   :  { %v442_v43 = vpop.f32.mrf.mxu0  ;;  %v1257_v44 = vpop.f32.mrf.mxu3 }
 0x195   :  { %1583 = vst [vmem:[#allocation8 + $0x58] sm:$0xff] %v1433_v42  ;;  %v443_v46 = vadd.f32 %v2007_v7, %v442_v43  ;;  %v1258_v47 = vadd.f32 %v2048_v49, %v1257_v44  ;;  %v847_v2 = vmax.f32 %v626_v56, 0.0  ;;  %v119_v56 = vld [vmem:[#allocation2 + $0x198] sm:$0xff] }
 0x197   :  { %v774_v48 = vmax.f32 %v443_v46, 0.0  ;;  %v1506_v50 = vmax.f32 %v1258_v47, 0.0 }
 0x198   :  { %v1077_v52 = vpop.f32.mrf.mxu1 }
 0x199   :  { %1656 = vst [vmem:[#allocation8 + $0x2a0] sm:$0xff] %v1506_v50  ;;  %v1078_v57 = vadd.f32 %v2048_v49, %v1077_v52  ;;  %v909_v58 = vpack.c.bf16 %v774_v48, %v773_v45 }
 0x19a   :  { %v627_v59 = vpop.f32.mrf.mxu2 }
 0x19b   :  { %v1434_v60 = vmax.f32 %v1078_v57, 0.0  ;;  %v628_v61 = vadd.f32 %v2007_v7, %v627_v59  ;;  %1116 = vmatmul.bf16.gmra.mxu1 %v909_v58  ;;  %v192_v57 = vld [vmem:[#allocation2 + $0x3e0] sm:$0xff]  ;;  %v193_v58 = vld [vmem:[#allocation2 + $0x3e8] sm:$0xff] }
 0x19c   :  { %v445_v0 = vpop.f32.mrf.mxu0  ;;  %v1259_v1 = vpop.f32.mrf.mxu3  ;;  %v2114_v59 = vld [vmem:[%s2345_s2] ss:$0 sm:$0xff] }
 0x19d   :  { %1584 = vst [vmem:[#allocation8 + $0x60] sm:$0xff] %v1434_v60  ;;  %v848_v3 = vmax.f32 %v628_v61, 0.0  ;;  %v1260_v4 = vadd.f32 %v2048_v49, %v1259_v1  ;;  %v446_v9 = vadd.f32 %v2007_v7, %v445_v0  ;;  %v243_v1 = vpack.c.bf16 %v119_v56, %v118_v54 }
 0x19f   :  { %v1507_v5 = vmax.f32 %v1260_v4, 0.0  ;;  %484 = vmatmul.bf16.gmra.mxu0 %v241_v62  ;;  %669 = vmatmul.bf16.gmra.mxu2 %v278_v63  ;;  %v946_v6 = vpack.c.bf16 %v848_v3, %v847_v2  ;;  %v775_v15 = vmax.f32 %v446_v9, 0.0  ;;  %v280_v2 = vpack.c.bf16 %v193_v58, %v192_v57  ;;  %v122_v57 = vld [vmem:[#allocation2 + $0x1b0] sm:$0xff] }
 0x1a0   :  { %v1079_v8 = vpop.f32.mrf.mxu1 }
 0x1a1   :  { %1657 = vst [vmem:[#allocation8 + $0x2a8] sm:$0xff] %v1507_v5  ;;  %v1080_v10 = vadd.f32 %v2048_v49, %v1079_v8  ;;  %1301 = vmatmul.bf16.gmra.mxu3 %v946_v6 }
 0x1a2   :  { %v630_v11 = vpop.f32.mrf.mxu2 }
 0x1a3   :  { %v1435_v12 = vmax.f32 %v1080_v10, 0.0  ;;  %v631_v25 = vadd.f32 %v2007_v7, %v630_v11 }
 0x1a4   :  { %v447_v13 = vpop.f32.mrf.mxu0  ;;  %v1262_v14 = vpop.f32.mrf.mxu3 }
 0x1a5   :  { %1585 = vst [vmem:[#allocation8 + $0x68] sm:$0xff] %v1435_v12  ;;  %v448_v16 = vadd.f32 %v2007_v7, %v447_v13  ;;  %v1263_v17 = vadd.f32 %v2048_v49, %v1262_v14  ;;  %v849_v36 = vmax.f32 %v631_v25, 0.0  ;;  %v121_v25 = vld [vmem:[#allocation2 + $0x1a8] sm:$0xff] }
 0x1a7   :  { %v776_v18 = vmax.f32 %v448_v16, 0.0  ;;  %v1508_v19 = vmax.f32 %v1263_v17, 0.0 }
 0x1a8   :  { %v1082_v21 = vpop.f32.mrf.mxu1 }
 0x1a9   :  { %1658 = vst [vmem:[#allocation8 + $0x2b0] sm:$0xff] %v1508_v19  ;;  %v1083_v26 = vadd.f32 %v2048_v49, %v1082_v21  ;;  %v910_v28 = vpack.c.bf16 %v776_v18, %v775_v15 }
 0x1aa   :  { %v632_v29 = vpop.f32.mrf.mxu2 }
 0x1ab   :  { %v1436_v30 = vmax.f32 %v1083_v26, 0.0  ;;  %v633_v31 = vadd.f32 %v2007_v7, %v632_v29  ;;  %1121 = vmatmul.bf16.gmra.mxu1 %v910_v28  ;;  %v194_v26 = vld [vmem:[#allocation2 + $0x3f0] sm:$0xff]  ;;  %v195_v28 = vld [vmem:[#allocation2 + $0x3f8] sm:$0xff] }
 0x1ac   :  { %v450_v34 = vpop.f32.mrf.mxu0  ;;  %v1264_v35 = vpop.f32.mrf.mxu3 }
 0x1ad   :  { %1586 = vst [vmem:[#allocation8 + $0x70] sm:$0xff] %v1436_v30  ;;  %v850_v37 = vmax.f32 %v633_v31, 0.0  ;;  %v1265_v38 = vadd.f32 %v2048_v49, %v1264_v35  ;;  %v451_v42 = vadd.f32 %v2007_v7, %v450_v34  ;;  %v244_v35 = vpack.c.bf16 %v121_v25, %v120_v23 }
 0x1af   :  { %v1509_v39 = vmax.f32 %v1265_v38, 0.0  ;;  %489 = vmatmul.bf16.gmra.mxu0 %v242_v32  ;;  %674 = vmatmul.bf16.gmra.mxu2 %v279_v33  ;;  %v947_v40 = vpack.c.bf16 %v850_v37, %v849_v36  ;;  %v777_v48 = vmax.f32 %v451_v42, 0.0  ;;  %v281_v36 = vpack.c.bf16 %v195_v28, %v194_v26  ;;  %v124_v26 = vld [vmem:[#allocation2 + $0x1c0] sm:$0xff] }
 0x1b0   :  { %v1084_v41 = vpop.f32.mrf.mxu1 }
 0x1b1   :  { %1659 = vst [vmem:[#allocation8 + $0x2b8] sm:$0xff] %v1509_v39  ;;  %v1085_v43 = vadd.f32 %v2048_v49, %v1084_v41  ;;  %1306 = vmatmul.bf16.gmra.mxu3 %v947_v40 }
 0x1b2   :  { %v635_v44 = vpop.f32.mrf.mxu2 }
 0x1b3   :  { %v1437_v45 = vmax.f32 %v1085_v43, 0.0  ;;  %v636_v60 = vadd.f32 %v2114_v59, %v635_v44 }
 0x1b4   :  { %v452_v46 = vpop.f32.mrf.mxu0  ;;  %v1267_v47 = vpop.f32.mrf.mxu3 }
 0x1b5   :  { %1587 = vst [vmem:[#allocation8 + $0x78] sm:$0xff] %v1437_v45  ;;  %v453_v50 = vadd.f32 %v2007_v7, %v452_v46  ;;  %v1268_v51 = vadd.f32 %v2048_v49, %v1267_v47  ;;  %v851_v5 = vmax.f32 %v636_v60, 0.0  ;;  %v123_v60 = vld [vmem:[#allocation2 + $0x1b8] sm:$0xff] }
 0x1b7   :  { %v778_v52 = vmax.f32 %v453_v50, 0.0  ;;  %v1510_v53 = vmax.f32 %v1268_v51, 0.0 }
 0x1b8   :  { %v1087_v55 = vpop.f32.mrf.mxu1 }
 0x1b9   :  { %1660 = vst [vmem:[#allocation8 + $0x2c0] sm:$0xff] %v1510_v53  ;;  %v1088_v61 = vadd.f32 %v2048_v49, %v1087_v55  ;;  %v911_v7 = vpack.c.bf16 %v778_v52, %v777_v48 }
 0x1ba   :  { %v637_v62 = vpop.f32.mrf.mxu2 }
 0x1bb   :  { %v1438_v63 = vmax.f32 %v1088_v61, 0.0  ;;  %v638_v0 = vadd.f32 %v2114_v59, %v637_v62  ;;  %1126 = vmatmul.bf16.gmra.mxu1 %v911_v7  ;;  %v196_v61 = vld [vmem:[#allocation2 + $0x400] sm:$0xff]  ;;  %v197_v7 = vld [vmem:[#allocation2 + $0x408] sm:$0xff] }
 0x1bc   :  { %v455_v3 = vpop.f32.mrf.mxu0  ;;  %v1269_v4 = vpop.f32.mrf.mxu3 }
 0x1bd   :  { %1588 = vst [vmem:[#allocation8 + $0x80] sm:$0xff] %v1438_v63  ;;  %v852_v6 = vmax.f32 %v638_v0, 0.0  ;;  %v1270_v8 = vadd.f32 %v2048_v49, %v1269_v4  ;;  %v456_v12 = vadd.f32 %v2114_v59, %v455_v3  ;;  %v245_v4 = vpack.c.bf16 %v123_v60, %v122_v57 }
 0x1bf   :  { %v1511_v9 = vmax.f32 %v1270_v8, 0.0  ;;  %494 = vmatmul.bf16.gmra.mxu0 %v243_v1  ;;  %679 = vmatmul.bf16.gmra.mxu2 %v280_v2  ;;  %v948_v10 = vpack.c.bf16 %v852_v6, %v851_v5  ;;  %v779_v18 = vmax.f32 %v456_v12, 0.0  ;;  %v282_v5 = vpack.c.bf16 %v197_v7, %v196_v61  ;;  %v126_v61 = vld [vmem:[#allocation2 + $0x1d0] sm:$0xff] }
 0x1c0   :  { %v1089_v11 = vpop.f32.mrf.mxu1 }
 0x1c1   :  { %1661 = vst [vmem:[#allocation8 + $0x2c8] sm:$0xff] %v1511_v9  ;;  %v1090_v13 = vadd.f32 %v2048_v49, %v1089_v11  ;;  %1311 = vmatmul.bf16.gmra.mxu3 %v948_v10 }
 0x1c2   :  { %v640_v14 = vpop.f32.mrf.mxu2 }
 0x1c3   :  { %v1439_v15 = vmax.f32 %v1090_v13, 0.0  ;;  %v641_v29 = vadd.f32 %v2114_v59, %v640_v14 }
 0x1c4   :  { %v457_v16 = vpop.f32.mrf.mxu0  ;;  %v1272_v17 = vpop.f32.mrf.mxu3 }
 0x1c5   :  { %1589 = vst [vmem:[#allocation8 + $0x88] sm:$0xff] %v1439_v15  ;;  %v458_v19 = vadd.f32 %v2114_v59, %v457_v16  ;;  %v1273_v20 = vadd.f32 %v2048_v49, %v1272_v17  ;;  %v853_v39 = vmax.f32 %v641_v29, 0.0  ;;  %v125_v29 = vld [vmem:[#allocation2 + $0x1c8] sm:$0xff] }
 0x1c7   :  { %v780_v21 = vmax.f32 %v458_v19, 0.0  ;;  %v1512_v22 = vmax.f32 %v1273_v20, 0.0 }
 0x1c8   :  { %v1092_v24 = vpop.f32.mrf.mxu1 }
 0x1c9   :  { %1662 = vst [vmem:[#allocation8 + $0x2d0] sm:$0xff] %v1512_v22  ;;  %v1093_v30 = vadd.f32 %v2048_v49, %v1092_v24  ;;  %v912_v31 = vpack.c.bf16 %v780_v21, %v779_v18 }
 0x1ca   :  { %v642_v32 = vpop.f32.mrf.mxu2 }
 0x1cb   :  { %v1440_v33 = vmax.f32 %v1093_v30, 0.0  ;;  %v643_v34 = vadd.f32 %v2114_v59, %v642_v32  ;;  %1131 = vmatmul.bf16.gmra.mxu1 %v912_v31  ;;  %v198_v30 = vld [vmem:[#allocation2 + $0x410] sm:$0xff]  ;;  %v199_v31 = vld [vmem:[#allocation2 + $0x418] sm:$0xff] }
 0x1cc   :  { %v460_v37 = vpop.f32.mrf.mxu0  ;;  %v1274_v38 = vpop.f32.mrf.mxu3 }
 0x1cd   :  { %1590 = vst [vmem:[#allocation8 + $0x90] sm:$0xff] %v1440_v33  ;;  %v854_v40 = vmax.f32 %v643_v34, 0.0  ;;  %v1275_v41 = vadd.f32 %v2048_v49, %v1274_v38  ;;  %v461_v45 = vadd.f32 %v2114_v59, %v460_v37  ;;  %v246_v38 = vpack.c.bf16 %v125_v29, %v124_v26 }
 0x1cf   :  { %v1513_v42 = vmax.f32 %v1275_v41, 0.0  ;;  %499 = vmatmul.bf16.gmra.mxu0 %v244_v35  ;;  %684 = vmatmul.bf16.gmra.mxu2 %v281_v36  ;;  %v949_v43 = vpack.c.bf16 %v854_v40, %v853_v39  ;;  %v781_v52 = vmax.f32 %v461_v45, 0.0  ;;  %v283_v39 = vpack.c.bf16 %v199_v31, %v198_v30  ;;  %v128_v30 = vld [vmem:[#allocation2 + $0x1e0] sm:$0xff] }
 0x1d0   :  { %v1094_v44 = vpop.f32.mrf.mxu1 }
 0x1d1   :  { %1663 = vst [vmem:[#allocation8 + $0x2d8] sm:$0xff] %v1513_v42  ;;  %v1095_v46 = vadd.f32 %v2048_v49, %v1094_v44  ;;  %1316 = vmatmul.bf16.gmra.mxu3 %v949_v43 }
 0x1d2   :  { %v645_v47 = vpop.f32.mrf.mxu2 }
 0x1d3   :  { %v1441_v48 = vmax.f32 %v1095_v46, 0.0  ;;  %v646_v62 = vadd.f32 %v2114_v59, %v645_v47 }
 0x1d4   :  { %v462_v50 = vpop.f32.mrf.mxu0  ;;  %v1277_v51 = vpop.f32.mrf.mxu3 }
 0x1d5   :  { %1591 = vst [vmem:[#allocation8 + $0x98] sm:$0xff] %v1441_v48  ;;  %v463_v53 = vadd.f32 %v2114_v59, %v462_v50  ;;  %v1278_v54 = vadd.f32 %v2048_v49, %v1277_v51  ;;  %v855_v9 = vmax.f32 %v646_v62, 0.0  ;;  %v127_v62 = vld [vmem:[#allocation2 + $0x1d8] sm:$0xff] }
 0x1d7   :  { %v782_v55 = vmax.f32 %v463_v53, 0.0  ;;  %v1514_v56 = vmax.f32 %v1278_v54, 0.0 }
 0x1d8   :  { %v1097_v58 = vpop.f32.mrf.mxu1 }
 0x1d9   :  { %1664 = vst [vmem:[#allocation8 + $0x2e0] sm:$0xff] %v1514_v56  ;;  %v1098_v63 = vadd.f32 %v2048_v49, %v1097_v58  ;;  %v913_v0 = vpack.c.bf16 %v782_v55, %v781_v52 }
 0x1da   :  { %v647_v1 = vpop.f32.mrf.mxu2 }
 0x1db   :  { %v1442_v2 = vmax.f32 %v1098_v63, 0.0  ;;  %v648_v3 = vadd.f32 %v2114_v59, %v647_v1  ;;  %1136 = vmatmul.bf16.gmra.mxu1 %v913_v0  ;;  %v200_v63 = vld [vmem:[#allocation2 + $0x420] sm:$0xff]  ;;  %v201_v0 = vld [vmem:[#allocation2 + $0x428] sm:$0xff] }
 0x1dc   :  { %v465_v6 = vpop.f32.mrf.mxu0  ;;  %v1279_v8 = vpop.f32.mrf.mxu3 }
 0x1dd   :  { %1592 = vst [vmem:[#allocation8 + $0xa0] sm:$0xff] %v1442_v2  ;;  %v856_v10 = vmax.f32 %v648_v3, 0.0  ;;  %v1280_v11 = vadd.f32 %v2048_v49, %v1279_v8  ;;  %v466_v15 = vadd.f32 %v2114_v59, %v465_v6  ;;  %v247_v8 = vpack.c.bf16 %v127_v62, %v126_v61 }
 0x1df   :  { %v1515_v12 = vmax.f32 %v1280_v11, 0.0  ;;  %504 = vmatmul.bf16.gmra.mxu0 %v245_v4  ;;  %689 = vmatmul.bf16.gmra.mxu2 %v282_v5  ;;  %v950_v13 = vpack.c.bf16 %v856_v10, %v855_v9  ;;  %v783_v21 = vmax.f32 %v466_v15, 0.0  ;;  %v284_v9 = vpack.c.bf16 %v201_v0, %v200_v63  ;;  %v130_v63 = vld [vmem:[#allocation2 + $0x1f0] sm:$0xff] }
 0x1e0   :  { %v1099_v14 = vpop.f32.mrf.mxu1 }
 0x1e1   :  { %1665 = vst [vmem:[#allocation8 + $0x2e8] sm:$0xff] %v1515_v12  ;;  %v1100_v16 = vadd.f32 %v2048_v49, %v1099_v14  ;;  %1321 = vmatmul.bf16.gmra.mxu3 %v950_v13 }
 0x1e2   :  { %v650_v17 = vpop.f32.mrf.mxu2 }
 0x1e3   :  { %v1443_v18 = vmax.f32 %v1100_v16, 0.0  ;;  %v651_v32 = vadd.f32 %v2114_v59, %v650_v17 }
 0x1e4   :  { %v467_v19 = vpop.f32.mrf.mxu0  ;;  %v1282_v20 = vpop.f32.mrf.mxu3 }
 0x1e5   :  { %1593 = vst [vmem:[#allocation8 + $0xa8] sm:$0xff] %v1443_v18  ;;  %v468_v22 = vadd.f32 %v2114_v59, %v467_v19  ;;  %v1283_v23 = vadd.f32 %v2048_v49, %v1282_v20  ;;  %v857_v42 = vmax.f32 %v651_v32, 0.0  ;;  %v129_v32 = vld [vmem:[#allocation2 + $0x1e8] sm:$0xff] }
 0x1e7   :  { %v784_v24 = vmax.f32 %v468_v22, 0.0  ;;  %v1516_v25 = vmax.f32 %v1283_v23, 0.0 }
 0x1e8   :  { %v1102_v28 = vpop.f32.mrf.mxu1 }
 0x1e9   :  { %1666 = vst [vmem:[#allocation8 + $0x2f0] sm:$0xff] %v1516_v25  ;;  %v1103_v33 = vadd.f32 %v2048_v49, %v1102_v28  ;;  %v914_v34 = vpack.c.bf16 %v784_v24, %v783_v21 }
 0x1ea   :  { %v652_v35 = vpop.f32.mrf.mxu2 }
 0x1eb   :  { %v1444_v36 = vmax.f32 %v1103_v33, 0.0  ;;  %v653_v37 = vadd.f32 %v2114_v59, %v652_v35  ;;  %1141 = vmatmul.bf16.gmra.mxu1 %v914_v34  ;;  %v202_v33 = vld [vmem:[#allocation2 + $0x430] sm:$0xff]  ;;  %v203_v34 = vld [vmem:[#allocation2 + $0x438] sm:$0xff] }
 0x1ec   :  { %v470_v40 = vpop.f32.mrf.mxu0  ;;  %v1284_v41 = vpop.f32.mrf.mxu3 }
 0x1ed   :  { %1594 = vst [vmem:[#allocation8 + $0xb0] sm:$0xff] %v1444_v36  ;;  %v858_v43 = vmax.f32 %v653_v37, 0.0  ;;  %v1285_v44 = vadd.f32 %v2048_v49, %v1284_v41  ;;  %v471_v48 = vadd.f32 %v2114_v59, %v470_v40  ;;  %v2160_v36 = vld [vmem:[%s2347_s4] ss:$0 sm:$0xff]  ;;  %v248_v41 = vpack.c.bf16 %v129_v32, %v128_v30 }
 0x1ef   :  { %v1517_v45 = vmax.f32 %v1285_v44, 0.0  ;;  %509 = vmatmul.bf16.gmra.mxu0 %v246_v38  ;;  %694 = vmatmul.bf16.gmra.mxu2 %v283_v39  ;;  %v951_v46 = vpack.c.bf16 %v858_v43, %v857_v42  ;;  %v785_v55 = vmax.f32 %v471_v48, 0.0  ;;  %v285_v42 = vpack.c.bf16 %v203_v34, %v202_v33  ;;  %v132_v33 = vld [vmem:[#allocation2 + $0x200] sm:$0xff] }
 0x1f0   :  { %v1104_v47 = vpop.f32.mrf.mxu1 }
 0x1f1   :  { %1667 = vst [vmem:[#allocation8 + $0x2f8] sm:$0xff] %v1517_v45  ;;  %v1105_v50 = vadd.f32 %v2048_v49, %v1104_v47  ;;  %1326 = vmatmul.bf16.gmra.mxu3 %v951_v46 }
 0x1f2   :  { %v655_v51 = vpop.f32.mrf.mxu2 }
 0x1f3   :  { %v1445_v52 = vmax.f32 %v1105_v50, 0.0  ;;  %v656_v1 = vadd.f32 %v2114_v59, %v655_v51 }
 0x1f4   :  { %v472_v53 = vpop.f32.mrf.mxu0  ;;  %v1287_v54 = vpop.f32.mrf.mxu3 }
 0x1f5   :  { %1595 = vst [vmem:[#allocation8 + $0xb8] sm:$0xff] %v1445_v52  ;;  %v473_v56 = vadd.f32 %v2114_v59, %v472_v53  ;;  %v1288_v57 = vadd.f32 %v2048_v49, %v1287_v54  ;;  %v859_v12 = vmax.f32 %v656_v1, 0.0  ;;  %v131_v1 = vld [vmem:[#allocation2 + $0x1f8] sm:$0xff] }
 0x1f7   :  { %v786_v58 = vmax.f32 %v473_v56, 0.0  ;;  %v1518_v60 = vmax.f32 %v1288_v57, 0.0 }
 0x1f8   :  { %v1107_v7 = vpop.f32.mrf.mxu1 }
 0x1f9   :  { %1668 = vst [vmem:[#allocation8 + $0x300] sm:$0xff] %v1518_v60  ;;  %v1108_v2 = vadd.f32 %v2048_v49, %v1107_v7  ;;  %v915_v3 = vpack.c.bf16 %v786_v58, %v785_v55 }
 0x1fa   :  { %v657_v4 = vpop.f32.mrf.mxu2 }
 0x1fb   :  { %v1446_v5 = vmax.f32 %v1108_v2, 0.0  ;;  %v658_v6 = vadd.f32 %v2114_v59, %v657_v4  ;;  %1146 = vmatmul.bf16.gmra.mxu1 %v915_v3  ;;  %v204_v2 = vld [vmem:[#allocation2 + $0x440] sm:$0xff]  ;;  %v205_v3 = vld [vmem:[#allocation2 + $0x448] sm:$0xff] }
 0x1fc   :  { %v475_v10 = vpop.f32.mrf.mxu0  ;;  %v1289_v11 = vpop.f32.mrf.mxu3 }
 0x1fd   :  { %1596 = vst [vmem:[#allocation8 + $0xc0] sm:$0xff] %v1446_v5  ;;  %v860_v13 = vmax.f32 %v658_v6, 0.0  ;;  %v1290_v14 = vadd.f32 %v2048_v49, %v1289_v11  ;;  %v476_v18 = vadd.f32 %v2114_v59, %v475_v10  ;;  %v249_v11 = vpack.c.bf16 %v131_v1, %v130_v63 }
 0x1ff   :  { %v1519_v15 = vmax.f32 %v1290_v14, 0.0  ;;  %514 = vmatmul.bf16.gmra.mxu0 %v247_v8  ;;  %699 = vmatmul.bf16.gmra.mxu2 %v284_v9  ;;  %v952_v16 = vpack.c.bf16 %v860_v13, %v859_v12  ;;  %v787_v24 = vmax.f32 %v476_v18, 0.0  ;;  %v286_v12 = vpack.c.bf16 %v205_v3, %v204_v2  ;;  %v134_v2 = vld [vmem:[#allocation2 + $0x210] sm:$0xff] }
 0x200   :  { %v1109_v17 = vpop.f32.mrf.mxu1 }
 0x201   :  { %1669 = vst [vmem:[#allocation8 + $0x308] sm:$0xff] %v1519_v15  ;;  %v1110_v19 = vadd.f32 %v2048_v49, %v1109_v17  ;;  %1331 = vmatmul.bf16.gmra.mxu3 %v952_v16 }
 0x202   :  { %v660_v20 = vpop.f32.mrf.mxu2 }
 0x203   :  { %v1447_v21 = vmax.f32 %v1110_v19, 0.0  ;;  %v661_v35 = vadd.f32 %v2114_v59, %v660_v20 }
 0x204   :  { %v477_v22 = vpop.f32.mrf.mxu0  ;;  %v1292_v23 = vpop.f32.mrf.mxu3 }
 0x205   :  { %1597 = vst [vmem:[#allocation8 + $0xc8] sm:$0xff] %v1447_v21  ;;  %v478_v25 = vadd.f32 %v2114_v59, %v477_v22  ;;  %v1293_v26 = vadd.f32 %v2048_v49, %v1292_v23  ;;  %v861_v45 = vmax.f32 %v661_v35, 0.0  ;;  %v133_v35 = vld [vmem:[#allocation2 + $0x208] sm:$0xff] }
 0x207   :  { %v788_v28 = vmax.f32 %v478_v25, 0.0  ;;  %v1520_v29 = vmax.f32 %v1293_v26, 0.0 }
 0x208   :  { %v1112_v31 = vpop.f32.mrf.mxu1 }
 0x209   :  { %1670 = vst [vmem:[#allocation8 + $0x310] sm:$0xff] %v1520_v29  ;;  %v1113_v37 = vadd.f32 %v2160_v36, %v1112_v31  ;;  %v916_v38 = vpack.c.bf16 %v788_v28, %v787_v24 }
 0x20a   :  { %v662_v39 = vpop.f32.mrf.mxu2 }
 0x20b   :  { %v1448_v49 = vmax.f32 %v1113_v37, 0.0  ;;  %v663_v40 = vadd.f32 %v2114_v59, %v662_v39  ;;  %1151 = vmatmul.bf16.gmra.mxu1 %v916_v38  ;;  %v206_v37 = vld [vmem:[#allocation2 + $0x450] sm:$0xff]  ;;  %v207_v38 = vld [vmem:[#allocation2 + $0x458] sm:$0xff] }
 0x20c   :  { %v480_v43 = vpop.f32.mrf.mxu0  ;;  %v1294_v44 = vpop.f32.mrf.mxu3 }
 0x20d   :  { %1598 = vst [vmem:[#allocation8 + $0xd0] sm:$0xff] %v1448_v49  ;;  %v862_v46 = vmax.f32 %v663_v40, 0.0  ;;  %v1295_v47 = vadd.f32 %v2160_v36, %v1294_v44  ;;  %v481_v52 = vadd.f32 %v2114_v59, %v480_v43  ;;  %v250_v44 = vpack.c.bf16 %v133_v35, %v132_v33 }
 0x20f   :  { %v1521_v48 = vmax.f32 %v1295_v47, 0.0  ;;  %519 = vmatmul.bf16.gmra.mxu0 %v248_v41  ;;  %704 = vmatmul.bf16.gmra.mxu2 %v285_v42  ;;  %v953_v50 = vpack.c.bf16 %v862_v46, %v861_v45  ;;  %v789_v58 = vmax.f32 %v481_v52, 0.0  ;;  %v287_v45 = vpack.c.bf16 %v207_v38, %v206_v37  ;;  %v136_v37 = vld [vmem:[#allocation2 + $0x220] sm:$0xff] }
 0x210   :  { %v1114_v51 = vpop.f32.mrf.mxu1 }
 0x211   :  { %1671 = vst [vmem:[#allocation8 + $0x318] sm:$0xff] %v1521_v48  ;;  %v1115_v53 = vadd.f32 %v2160_v36, %v1114_v51  ;;  %1336 = vmatmul.bf16.gmra.mxu3 %v953_v50 }
 0x212   :  { %v665_v54 = vpop.f32.mrf.mxu2 }
 0x213   :  { %v1449_v55 = vmax.f32 %v1115_v53, 0.0  ;;  %v666_v4 = vadd.f32 %v2114_v59, %v665_v54 }
 0x214   :  { %v482_v56 = vpop.f32.mrf.mxu0  ;;  %v1297_v57 = vpop.f32.mrf.mxu3 }
 0x215   :  { %1599 = vst [vmem:[#allocation8 + $0xd8] sm:$0xff] %v1449_v55  ;;  %v483_v60 = vadd.f32 %v2114_v59, %v482_v56  ;;  %v1298_v61 = vadd.f32 %v2160_v36, %v1297_v57  ;;  %v863_v15 = vmax.f32 %v666_v4, 0.0  ;;  %v135_v4 = vld [vmem:[#allocation2 + $0x218] sm:$0xff] }
 0x217   :  { %v790_v7 = vmax.f32 %v483_v60, 0.0  ;;  %v1522_v62 = vmax.f32 %v1298_v61, 0.0 }
 0x218   :  { %v1117_v0 = vpop.f32.mrf.mxu1 }
 0x219   :  { %1672 = vst [vmem:[#allocation8 + $0x320] sm:$0xff] %v1522_v62  ;;  %v1118_v5 = vadd.f32 %v2160_v36, %v1117_v0  ;;  %v917_v6 = vpack.c.bf16 %v790_v7, %v789_v58 }
 0x21a   :  { %v667_v8 = vpop.f32.mrf.mxu2 }
 0x21b   :  { %v1450_v9 = vmax.f32 %v1118_v5, 0.0  ;;  %v668_v10 = vadd.f32 %v2114_v59, %v667_v8  ;;  %1156 = vmatmul.bf16.gmra.mxu1 %v917_v6  ;;  %v208_v5 = vld [vmem:[#allocation2 + $0x460] sm:$0xff]  ;;  %v209_v6 = vld [vmem:[#allocation2 + $0x468] sm:$0xff] }
 0x21c   :  { %v485_v13 = vpop.f32.mrf.mxu0  ;;  %v1299_v14 = vpop.f32.mrf.mxu3 }
 0x21d   :  { %1600 = vst [vmem:[#allocation8 + $0xe0] sm:$0xff] %v1450_v9  ;;  %v864_v16 = vmax.f32 %v668_v10, 0.0  ;;  %v1300_v17 = vadd.f32 %v2160_v36, %v1299_v14  ;;  %v486_v21 = vadd.f32 %v2114_v59, %v485_v13  ;;  %v251_v14 = vpack.c.bf16 %v135_v4, %v134_v2 }
 0x21f   :  { %v1523_v18 = vmax.f32 %v1300_v17, 0.0  ;;  %524 = vmatmul.bf16.gmra.mxu0 %v249_v11  ;;  %709 = vmatmul.bf16.gmra.mxu2 %v286_v12  ;;  %v954_v19 = vpack.c.bf16 %v864_v16, %v863_v15  ;;  %v791_v28 = vmax.f32 %v486_v21, 0.0  ;;  %v288_v15 = vpack.c.bf16 %v209_v6, %v208_v5  ;;  %v138_v5 = vld [vmem:[#allocation2 + $0x230] sm:$0xff] }
 0x220   :  { %v1119_v20 = vpop.f32.mrf.mxu1 }
 0x221   :  { %1673 = vst [vmem:[#allocation8 + $0x328] sm:$0xff] %v1523_v18  ;;  %v1120_v22 = vadd.f32 %v2160_v36, %v1119_v20  ;;  %1341 = vmatmul.bf16.gmra.mxu3 %v954_v19 }
 0x222   :  { %v670_v23 = vpop.f32.mrf.mxu2 }
 0x223   :  { %v1451_v24 = vmax.f32 %v1120_v22, 0.0  ;;  %v671_v39 = vadd.f32 %v2114_v59, %v670_v23 }
 0x224   :  { %v487_v25 = vpop.f32.mrf.mxu0  ;;  %v1302_v26 = vpop.f32.mrf.mxu3 }
 0x225   :  { %1601 = vst [vmem:[#allocation8 + $0xe8] sm:$0xff] %v1451_v24  ;;  %v488_v29 = vadd.f32 %v2114_v59, %v487_v25  ;;  %v1303_v30 = vadd.f32 %v2160_v36, %v1302_v26  ;;  %v865_v48 = vmax.f32 %v671_v39, 0.0  ;;  %v137_v39 = vld [vmem:[#allocation2 + $0x228] sm:$0xff] }
 0x227   :  { %v792_v31 = vmax.f32 %v488_v29, 0.0  ;;  %v1524_v32 = vmax.f32 %v1303_v30, 0.0 }
 0x228   :  { %v1122_v34 = vpop.f32.mrf.mxu1 }
 0x229   :  { %1674 = vst [vmem:[#allocation8 + $0x330] sm:$0xff] %v1524_v32  ;;  %v1123_v49 = vadd.f32 %v2160_v36, %v1122_v34  ;;  %v918_v40 = vpack.c.bf16 %v792_v31, %v791_v28 }
 0x22a   :  { %v672_v41 = vpop.f32.mrf.mxu2 }
 0x22b   :  { %v1452_v42 = vmax.f32 %v1123_v49, 0.0  ;;  %v673_v43 = vadd.f32 %v2114_v59, %v672_v41  ;;  %1161 = vmatmul.bf16.gmra.mxu1 %v918_v40  ;;  %v210_v49 = vld [vmem:[#allocation2 + $0x470] sm:$0xff]  ;;  %v211_v40 = vld [vmem:[#allocation2 + $0x478] sm:$0xff] }
 0x22c   :  { %v490_v46 = vpop.f32.mrf.mxu0  ;;  %v1304_v47 = vpop.f32.mrf.mxu3 }
 0x22d   :  { %1602 = vst [vmem:[#allocation8 + $0xf0] sm:$0xff] %v1452_v42  ;;  %v866_v50 = vmax.f32 %v673_v43, 0.0  ;;  %v1305_v51 = vadd.f32 %v2160_v36, %v1304_v47  ;;  %v491_v55 = vadd.f32 %v2114_v59, %v490_v46  ;;  %v252_v47 = vpack.c.bf16 %v137_v39, %v136_v37 }
 0x22f   :  { %v1525_v52 = vmax.f32 %v1305_v51, 0.0  ;;  %529 = vmatmul.bf16.gmra.mxu0 %v250_v44  ;;  %714 = vmatmul.bf16.gmra.mxu2 %v287_v45  ;;  %v955_v53 = vpack.c.bf16 %v866_v50, %v865_v48  ;;  %v793_v7 = vmax.f32 %v491_v55, 0.0  ;;  %v289_v48 = vpack.c.bf16 %v211_v40, %v210_v49  ;;  %v140_v49 = vld [vmem:[#allocation2 + $0x240] sm:$0xff] }
 0x230   :  { %v1124_v54 = vpop.f32.mrf.mxu1 }
 0x231   :  { %1675 = vst [vmem:[#allocation8 + $0x338] sm:$0xff] %v1525_v52  ;;  %v1125_v56 = vadd.f32 %v2160_v36, %v1124_v54  ;;  %1346 = vmatmul.bf16.gmra.mxu3 %v955_v53 }
 0x232   :  { %v675_v57 = vpop.f32.mrf.mxu2 }
 0x233   :  { %v1453_v58 = vmax.f32 %v1125_v56, 0.0  ;;  %v676_v8 = vadd.f32 %v2114_v59, %v675_v57 }
 0x234   :  { %v492_v60 = vpop.f32.mrf.mxu0  ;;  %v1307_v61 = vpop.f32.mrf.mxu3 }
 0x235   :  { %1603 = vst [vmem:[#allocation8 + $0xf8] sm:$0xff] %v1453_v58  ;;  %v493_v62 = vadd.f32 %v2114_v59, %v492_v60  ;;  %v1308_v63 = vadd.f32 %v2160_v36, %v1307_v61  ;;  %v867_v18 = vmax.f32 %v676_v8, 0.0  ;;  %v139_v8 = vld [vmem:[#allocation2 + $0x238] sm:$0xff] }
 0x237   :  { %v794_v0 = vmax.f32 %v493_v62, 0.0  ;;  %v1526_v1 = vmax.f32 %v1308_v63, 0.0 }
 0x238   :  { %v1127_v3 = vpop.f32.mrf.mxu1 }
 0x239   :  { %1676 = vst [vmem:[#allocation8 + $0x340] sm:$0xff] %v1526_v1  ;;  %v1128_v9 = vadd.f32 %v2160_v36, %v1127_v3  ;;  %v919_v10 = vpack.c.bf16 %v794_v0, %v793_v7 }
 0x23a   :  { %v677_v11 = vpop.f32.mrf.mxu2 }
 0x23b   :  { %v1454_v12 = vmax.f32 %v1128_v9, 0.0  ;;  %v678_v13 = vadd.f32 %v2114_v59, %v677_v11  ;;  %1166 = vmatmul.bf16.gmra.mxu1 %v919_v10  ;;  %v212_v9 = vld [vmem:[#allocation2 + $0x480] sm:$0xff]  ;;  %v213_v10 = vld [vmem:[#allocation2 + $0x488] sm:$0xff] }
 0x23c   :  { %v495_v16 = vpop.f32.mrf.mxu0  ;;  %v1309_v17 = vpop.f32.mrf.mxu3 }
 0x23d   :  { %1604 = vst [vmem:[#allocation8 + $0x100] sm:$0xff] %v1454_v12  ;;  %v868_v19 = vmax.f32 %v678_v13, 0.0  ;;  %v1310_v20 = vadd.f32 %v2160_v36, %v1309_v17  ;;  %v496_v24 = vadd.f32 %v2114_v59, %v495_v16  ;;  %v253_v17 = vpack.c.bf16 %v139_v8, %v138_v5 }
 0x23f   :  { %v1527_v21 = vmax.f32 %v1310_v20, 0.0  ;;  %534 = vmatmul.bf16.gmra.mxu0 %v251_v14  ;;  %719 = vmatmul.bf16.gmra.mxu2 %v288_v15  ;;  %v956_v22 = vpack.c.bf16 %v868_v19, %v867_v18  ;;  %v795_v31 = vmax.f32 %v496_v24, 0.0  ;;  %v290_v18 = vpack.c.bf16 %v213_v10, %v212_v9  ;;  %v216_v10 = vld [vmem:[#allocation2 + $0x4a0] sm:$0xff] }
 0x240   :  { %v1129_v23 = vpop.f32.mrf.mxu1 }
 0x241   :  { %1677 = vst [vmem:[#allocation8 + $0x348] sm:$0xff] %v1527_v21  ;;  %v1130_v25 = vadd.f32 %v2160_v36, %v1129_v23  ;;  %1351 = vmatmul.bf16.gmra.mxu3 %v956_v22 }
 0x242   :  { %v680_v26 = vpop.f32.mrf.mxu2 }
 0x243   :  { %v1455_v28 = vmax.f32 %v1130_v25, 0.0  ;;  %v681_v41 = vadd.f32 %v2114_v59, %v680_v26 }
 0x244   :  { %v497_v29 = vpop.f32.mrf.mxu0  ;;  %v1312_v30 = vpop.f32.mrf.mxu3 }
 0x245   :  { %1605 = vst [vmem:[#allocation8 + $0x108] sm:$0xff] %v1455_v28  ;;  %v498_v32 = vadd.f32 %v2114_v59, %v497_v29  ;;  %v1313_v33 = vadd.f32 %v2160_v36, %v1312_v30  ;;  %v869_v52 = vmax.f32 %v681_v41, 0.0  ;;  %v141_v41 = vld [vmem:[#allocation2 + $0x248] sm:$0xff] }
 0x247   :  { %v796_v34 = vmax.f32 %v498_v32, 0.0  ;;  %v1528_v35 = vmax.f32 %v1313_v33, 0.0 }
 0x248   :  { %v1132_v38 = vpop.f32.mrf.mxu1 }
 0x249   :  { %v920_v42 = vpack.c.bf16 %v796_v34, %v795_v31  ;;  %1678 = vst [vmem:[#allocation8 + $0x350] sm:$0xff] %v1528_v35  ;;  %v1133_v43 = vadd.f32 %v2160_v36, %v1132_v38 }
 0x24a   :  { %v682_v44 = vpop.f32.mrf.mxu2 }
 0x24b   :  { %v1456_v45 = vmax.f32 %v1133_v43, 0.0  ;;  %v683_v46 = vadd.f32 %v2114_v59, %v682_v44  ;;  %1171 = vmatmul.bf16.gmra.mxu1 %v920_v42  ;;  %v214_v42 = vld [vmem:[#allocation2 + $0x490] sm:$0xff]  ;;  %v215_v43 = vld [vmem:[#allocation2 + $0x498] sm:$0xff] }
 0x24c   :  { %v500_v50 = vpop.f32.mrf.mxu0  ;;  %v1314_v51 = vpop.f32.mrf.mxu3 }
 0x24d   :  { %1606 = vst [vmem:[#allocation8 + $0x110] sm:$0xff] %v1456_v45  ;;  %v870_v53 = vmax.f32 %v683_v46, 0.0  ;;  %v1315_v54 = vadd.f32 %v2160_v36, %v1314_v51  ;;  %v501_v58 = vadd.f32 %v2114_v59, %v500_v50  ;;  %v254_v51 = vpack.c.bf16 %v141_v41, %v140_v49 }
 0x24f   :  { %v1529_v55 = vmax.f32 %v1315_v54, 0.0  ;;  %539 = vmatmul.bf16.gmra.mxu0 %v252_v47  ;;  %724 = vmatmul.bf16.gmra.mxu2 %v289_v48  ;;  %v957_v56 = vpack.c.bf16 %v870_v53, %v869_v52  ;;  %v797_v0 = vmax.f32 %v501_v58, 0.0  ;;  %v291_v52 = vpack.c.bf16 %v215_v43, %v214_v42 }
 0x250   :  { %v1134_v57 = vpop.f32.mrf.mxu1 }
 0x251   :  { %1679 = vst [vmem:[#allocation8 + $0x358] sm:$0xff] %v1529_v55  ;;  %v1135_v60 = vadd.f32 %v2160_v36, %v1134_v57  ;;  %1356 = vmatmul.bf16.gmra.mxu3 %v957_v56 }
 0x252   :  { %v685_v61 = vpop.f32.mrf.mxu2 }
 0x253   :  { %v1457_v7 = vmax.f32 %v1135_v60, 0.0  ;;  %v686_v11 = vadd.f32 %v2114_v59, %v685_v61 }
 0x254   :  { %v502_v62 = vpop.f32.mrf.mxu0  ;;  %v1317_v63 = vpop.f32.mrf.mxu3 }
 0x255   :  { %1607 = vst [vmem:[#allocation8 + $0x118] sm:$0xff] %v1457_v7  ;;  %v503_v1 = vadd.f32 %v2114_v59, %v502_v62  ;;  %v1318_v2 = vadd.f32 %v2160_v36, %v1317_v63  ;;  %v871_v21 = vmax.f32 %v686_v11, 0.0  ;;  %v217_v11 = vld [vmem:[#allocation2 + $0x4a8] sm:$0xff] }
 0x257   :  { %v798_v3 = vmax.f32 %v503_v1, 0.0  ;;  %v1530_v4 = vmax.f32 %v1318_v2, 0.0 }
 0x258   :  { %v1137_v6 = vpop.f32.mrf.mxu1 }
 0x259   :  { %v921_v12 = vpack.c.bf16 %v798_v3, %v797_v0  ;;  %1680 = vst [vmem:[#allocation8 + $0x360] sm:$0xff] %v1530_v4  ;;  %v1138_v13 = vadd.f32 %v2160_v36, %v1137_v6 }
 0x25a   :  { %v687_v14 = vpop.f32.mrf.mxu2 }
 0x25b   :  { %v1458_v15 = vmax.f32 %v1138_v13, 0.0  ;;  %v688_v16 = vadd.f32 %v2114_v59, %v687_v14  ;;  %1176 = vmatmul.bf16.gmra.mxu1 %v921_v12 }
 0x25c   :  { %v505_v19 = vpop.f32.mrf.mxu0  ;;  %v1319_v20 = vpop.f32.mrf.mxu3 }
 0x25d   :  { %1608 = vst [vmem:[#allocation8 + $0x120] sm:$0xff] %v1458_v15  ;;  %v872_v22 = vmax.f32 %v688_v16, 0.0  ;;  %v1320_v23 = vadd.f32 %v2160_v36, %v1319_v20  ;;  %v506_v28 = vadd.f32 %v2114_v59, %v505_v19 }
 0x25f   :  { %v958_v24 = vpack.c.bf16 %v872_v22, %v871_v21  ;;  %v1531_v25 = vmax.f32 %v1320_v23, 0.0  ;;  %544 = vmatmul.bf16.gmra.mxu0 %v253_v17  ;;  %729 = vmatmul.bf16.gmra.mxu2 %v290_v18  ;;  %v799_v34 = vmax.f32 %v506_v28, 0.0  ;;  %v292_v18 = vpack.c.bf16 %v217_v11, %v216_v10 }
 0x260   :  { %v1139_v26 = vpop.f32.mrf.mxu1 }
 0x261   :  { %1681 = vst [vmem:[#allocation8 + $0x368] sm:$0xff] %v1531_v25  ;;  %v1140_v29 = vadd.f32 %v2160_v36, %v1139_v26  ;;  %1361 = vmatmul.bf16.gmra.mxu3 %v958_v24 }
 0x262   :  { %v690_v30 = vpop.f32.mrf.mxu2 }
 0x263   :  { %v1459_v31 = vmax.f32 %v1140_v29, 0.0  ;;  %v691_v44 = vadd.f32 %v2114_v59, %v690_v30 }
 0x264   :  { %v507_v32 = vpop.f32.mrf.mxu0  ;;  %v1322_v33 = vpop.f32.mrf.mxu3 }
 0x265   :  { %1609 = vst [vmem:[#allocation8 + $0x128] sm:$0xff] %v1459_v31  ;;  %v508_v35 = vadd.f32 %v2114_v59, %v507_v32  ;;  %v1323_v37 = vadd.f32 %v2160_v36, %v1322_v33  ;;  %v873_v55 = vmax.f32 %v691_v44, 0.0 }
 0x267   :  { %v800_v38 = vmax.f32 %v508_v35, 0.0  ;;  %v1532_v39 = vmax.f32 %v1323_v37, 0.0 }
 0x268   :  { %v1142_v40 = vpop.f32.mrf.mxu1 }
 0x269   :  { %v922_v45 = vpack.c.bf16 %v800_v38, %v799_v34  ;;  %1682 = vst [vmem:[#allocation8 + $0x370] sm:$0xff] %v1532_v39  ;;  %v1143_v46 = vadd.f32 %v2160_v36, %v1142_v40  ;;  %v2228_v40 = vld [vmem:[%s2345_s2] ss:$0 sm:$0xff] }
 0x26a   :  { %v692_v47 = vpop.f32.mrf.mxu2 }
 0x26b   :  { %v1460_v48 = vmax.f32 %v1143_v46, 0.0  ;;  %v693_v50 = vadd.f32 %v2114_v59, %v692_v47  ;;  %1181 = vmatmul.bf16.gmra.mxu1 %v922_v45 }
 0x26c   :  { %v510_v53 = vpop.f32.mrf.mxu0  ;;  %v1324_v54 = vpop.f32.mrf.mxu3 }
 0x26d   :  { %1610 = vst [vmem:[#allocation8 + $0x130] sm:$0xff] %v1460_v48  ;;  %v874_v56 = vmax.f32 %v693_v50, 0.0  ;;  %v1325_v57 = vadd.f32 %v2160_v36, %v1324_v54  ;;  %v511_v7 = vadd.f32 %v2114_v59, %v510_v53 }
 0x26f   :  { %v959_v58 = vpack.c.bf16 %v874_v56, %v873_v55  ;;  %v1533_v60 = vmax.f32 %v1325_v57, 0.0  ;;  %549 = vmatmul.bf16.gmra.mxu0 %v254_v51  ;;  %734 = vmatmul.bf16.gmra.mxu2 %v291_v52  ;;  %v801_v3 = vmax.f32 %v511_v7, 0.0 }
 0x270   :  { %v1144_v61 = vpop.f32.mrf.mxu1 }
 0x271   :  { %1683 = vst [vmem:[#allocation8 + $0x378] sm:$0xff] %v1533_v60  ;;  %v1145_v62 = vadd.f32 %v2160_v36, %v1144_v61  ;;  %1366 = vmatmul.bf16.gmra.mxu3 %v959_v58 }
 0x272   :  { %v695_v63 = vpop.f32.mrf.mxu2 }
 0x273   :  { %v1461_v0 = vmax.f32 %v1145_v62, 0.0  ;;  %v696_v12 = vadd.f32 %v2114_v59, %v695_v63 }
 0x274   :  { %v512_v1 = vpop.f32.mrf.mxu0  ;;  %v1327_v2 = vpop.f32.mrf.mxu3 }
 0x275   :  { %1611 = vst [vmem:[#allocation8 + $0x138] sm:$0xff] %v1461_v0  ;;  %v513_v4 = vadd.f32 %v2114_v59, %v512_v1  ;;  %v1328_v5 = vadd.f32 %v2160_v36, %v1327_v2  ;;  %v875_v21 = vmax.f32 %v696_v12, 0.0 }
 0x277   :  { %v802_v6 = vmax.f32 %v513_v4, 0.0  ;;  %v1534_v8 = vmax.f32 %v1328_v5, 0.0 }
 0x278   :  { %v1147_v9 = vpop.f32.mrf.mxu1 }
 0x279   :  { %v923_v13 = vpack.c.bf16 %v802_v6, %v801_v3  ;;  %1684 = vst [vmem:[#allocation8 + $0x380] sm:$0xff] %v1534_v8  ;;  %v1148_v14 = vadd.f32 %v2160_v36, %v1147_v9 }
 0x27a   :  { %v697_v15 = vpop.f32.mrf.mxu2 }
 0x27b   :  { %v1462_v16 = vmax.f32 %v1148_v14, 0.0  ;;  %v698_v17 = vadd.f32 %v2114_v59, %v697_v15  ;;  %1186 = vmatmul.bf16.gmra.mxu1 %v923_v13 }
 0x27c   :  { %v515_v19 = vpop.f32.mrf.mxu0  ;;  %v1329_v20 = vpop.f32.mrf.mxu3 }
 0x27d   :  { %1612 = vst [vmem:[#allocation8 + $0x140] sm:$0xff] %v1462_v16  ;;  %v876_v22 = vmax.f32 %v698_v17, 0.0  ;;  %v1330_v23 = vadd.f32 %v2160_v36, %v1329_v20  ;;  %v516_v28 = vadd.f32 %v2114_v59, %v515_v19 }
 0x27f   :  { %v960_v24 = vpack.c.bf16 %v876_v22, %v875_v21  ;;  %v1535_v25 = vmax.f32 %v1330_v23, 0.0  ;;  %739 = vmatmul.bf16.gmra.mxu2 %v292_v18  ;;  %v803_v34 = vmax.f32 %v516_v28, 0.0 }
 0x280   :  { %v1149_v26 = vpop.f32.mrf.mxu1 }
 0x281   :  { %1685 = vst [vmem:[#allocation8 + $0x388] sm:$0xff] %v1535_v25  ;;  %v1150_v29 = vadd.f32 %v2160_v36, %v1149_v26  ;;  %1371 = vmatmul.bf16.gmra.mxu3 %v960_v24 }
 0x282   :  { %v700_v30 = vpop.f32.mrf.mxu2 }
 0x283   :  { %v1463_v31 = vmax.f32 %v1150_v29, 0.0  ;;  %v701_v41 = vadd.f32 %v2228_v40, %v700_v30 }
 0x284   :  { %v517_v32 = vpop.f32.mrf.mxu0  ;;  %v1332_v33 = vpop.f32.mrf.mxu3 }
 0x285   :  { %1613 = vst [vmem:[#allocation8 + $0x148] sm:$0xff] %v1463_v31  ;;  %v518_v35 = vadd.f32 %v2114_v59, %v517_v32  ;;  %v1333_v37 = vadd.f32 %v2160_v36, %v1332_v33  ;;  %v877_v48 = vmax.f32 %v701_v41, 0.0 }
 0x287   :  { %v804_v38 = vmax.f32 %v518_v35, 0.0  ;;  %v1536_v39 = vmax.f32 %v1333_v37, 0.0 }
 0x288   :  { %v1152_v49 = vpop.f32.mrf.mxu1 }
 0x289   :  { %v924_v42 = vpack.c.bf16 %v804_v38, %v803_v34  ;;  %1686 = vst [vmem:[#allocation8 + $0x390] sm:$0xff] %v1536_v39  ;;  %v1153_v43 = vadd.f32 %v2160_v36, %v1152_v49 }
 0x28a   :  { %v702_v44 = vpop.f32.mrf.mxu2 }
 0x28b   :  { %v1464_v45 = vmax.f32 %v1153_v43, 0.0  ;;  %v703_v59 = vadd.f32 %v2228_v40, %v702_v44  ;;  %1191 = vmatmul.bf16.gmra.mxu1 %v924_v42 }
 0x28c   :  { %v520_v46 = vpop.f32.mrf.mxu0  ;;  %v1334_v47 = vpop.f32.mrf.mxu3 }
 0x28d   :  { %1614 = vst [vmem:[#allocation8 + $0x150] sm:$0xff] %v1464_v45  ;;  %v878_v50 = vmax.f32 %v703_v59, 0.0  ;;  %v1335_v51 = vadd.f32 %v2160_v36, %v1334_v47  ;;  %v521_v55 = vadd.f32 %v2228_v40, %v520_v46 }
 0x28f   :  { %v961_v52 = vpack.c.bf16 %v878_v50, %v877_v48  ;;  %v1537_v53 = vmax.f32 %v1335_v51, 0.0  ;;  %v805_v7 = vmax.f32 %v521_v55, 0.0 }
 0x290   :  { %v1154_v54 = vpop.f32.mrf.mxu1 }
 0x291   :  { %1687 = vst [vmem:[#allocation8 + $0x398] sm:$0xff] %v1537_v53  ;;  %v1155_v56 = vadd.f32 %v2160_v36, %v1154_v54  ;;  %1376 = vmatmul.bf16.gmra.mxu3 %v961_v52 }
 0x292   :  { %v705_v57 = vpop.f32.mrf.mxu2 }
 0x293   :  { %v1465_v58 = vmax.f32 %v1155_v56, 0.0  ;;  %v706_v3 = vadd.f32 %v2228_v40, %v705_v57 }
 0x294   :  { %v522_v60 = vpop.f32.mrf.mxu0  ;;  %v1337_v61 = vpop.f32.mrf.mxu3 }
 0x295   :  { %1615 = vst [vmem:[#allocation8 + $0x158] sm:$0xff] %v1465_v58  ;;  %v523_v62 = vadd.f32 %v2228_v40, %v522_v60  ;;  %v1338_v63 = vadd.f32 %v2160_v36, %v1337_v61  ;;  %v879_v12 = vmax.f32 %v706_v3, 0.0 }
 0x297   :  { %v806_v0 = vmax.f32 %v523_v62, 0.0  ;;  %v1538_v1 = vmax.f32 %v1338_v63, 0.0 }
 0x298   :  { %v1157_v2 = vpop.f32.mrf.mxu1 }
 0x299   :  { %v925_v4 = vpack.c.bf16 %v806_v0, %v805_v7  ;;  %1688 = vst [vmem:[#allocation8 + $0x3a0] sm:$0xff] %v1538_v1  ;;  %v1158_v5 = vadd.f32 %v2160_v36, %v1157_v2 }
 0x29a   :  { %v707_v6 = vpop.f32.mrf.mxu2 }
 0x29b   :  { %v1466_v8 = vmax.f32 %v1158_v5, 0.0  ;;  %v708_v9 = vadd.f32 %v2228_v40, %v707_v6  ;;  %1196 = vmatmul.bf16.gmra.mxu1 %v925_v4 }
 0x29c   :  { %v525_v10 = vpop.f32.mrf.mxu0  ;;  %v1339_v11 = vpop.f32.mrf.mxu3 }
 0x29d   :  { %1616 = vst [vmem:[#allocation8 + $0x160] sm:$0xff] %v1466_v8  ;;  %v880_v13 = vmax.f32 %v708_v9, 0.0  ;;  %v1340_v14 = vadd.f32 %v2160_v36, %v1339_v11  ;;  %v526_v18 = vadd.f32 %v2228_v40, %v525_v10 }
 0x29f   :  { %v962_v15 = vpack.c.bf16 %v880_v13, %v879_v12  ;;  %v1539_v16 = vmax.f32 %v1340_v14, 0.0  ;;  %v807_v24 = vmax.f32 %v526_v18, 0.0 }
 0x2a0   :  { %v1159_v17 = vpop.f32.mrf.mxu1 }
 0x2a1   :  { %1689 = vst [vmem:[#allocation8 + $0x3a8] sm:$0xff] %v1539_v16  ;;  %v1160_v19 = vadd.f32 %v2160_v36, %v1159_v17  ;;  %1381 = vmatmul.bf16.gmra.mxu3 %v962_v15 }
 0x2a2   :  { %v710_v20 = vpop.f32.mrf.mxu2 }
 0x2a3   :  { %v1467_v21 = vmax.f32 %v1160_v19, 0.0  ;;  %v711_v31 = vadd.f32 %v2228_v40, %v710_v20 }
 0x2a4   :  { %v527_v22 = vpop.f32.mrf.mxu0  ;;  %v1342_v23 = vpop.f32.mrf.mxu3 }
 0x2a5   :  { %1617 = vst [vmem:[#allocation8 + $0x168] sm:$0xff] %v1467_v21  ;;  %v528_v25 = vadd.f32 %v2228_v40, %v527_v22  ;;  %v1343_v26 = vadd.f32 %v2160_v36, %v1342_v23  ;;  %v881_v49 = vmax.f32 %v711_v31, 0.0 }
 0x2a7   :  { %v808_v28 = vmax.f32 %v528_v25, 0.0  ;;  %v1540_v29 = vmax.f32 %v1343_v26, 0.0 }
 0x2a8   :  { %v1162_v30 = vpop.f32.mrf.mxu1 }
 0x2a9   :  { %v926_v32 = vpack.c.bf16 %v808_v28, %v807_v24  ;;  %1690 = vst [vmem:[#allocation8 + $0x3b0] sm:$0xff] %v1540_v29  ;;  %v1163_v33 = vadd.f32 %v2160_v36, %v1162_v30 }
 0x2aa   :  { %v712_v34 = vpop.f32.mrf.mxu2 }
 0x2ab   :  { %v1468_v35 = vmax.f32 %v1163_v33, 0.0  ;;  %v713_v37 = vadd.f32 %v2228_v40, %v712_v34  ;;  %1201 = vmatmul.bf16.gmra.mxu1 %v926_v32 }
 0x2ac   :  { %v530_v38 = vpop.f32.mrf.mxu0  ;;  %v1344_v39 = vpop.f32.mrf.mxu3 }
 0x2ad   :  { %1618 = vst [vmem:[#allocation8 + $0x170] sm:$0xff] %v1468_v35  ;;  %v882_v41 = vmax.f32 %v713_v37, 0.0  ;;  %v1345_v42 = vadd.f32 %v2160_v36, %v1344_v39  ;;  %v531_v59 = vadd.f32 %v2228_v40, %v530_v38 }
 0x2af   :  { %v963_v43 = vpack.c.bf16 %v882_v41, %v881_v49  ;;  %v1541_v44 = vmax.f32 %v1345_v42, 0.0  ;;  %v809_v52 = vmax.f32 %v531_v59, 0.0 }
 0x2b0   :  { %v1164_v45 = vpop.f32.mrf.mxu1 }
 0x2b1   :  { %1691 = vst [vmem:[#allocation8 + $0x3b8] sm:$0xff] %v1541_v44  ;;  %v1165_v46 = vadd.f32 %v2160_v36, %v1164_v45  ;;  %1386 = vmatmul.bf16.gmra.mxu3 %v963_v43 }
 0x2b2   :  { %v715_v47 = vpop.f32.mrf.mxu2 }
 0x2b3   :  { %v1469_v48 = vmax.f32 %v1165_v46, 0.0  ;;  %v716_v58 = vadd.f32 %v2228_v40, %v715_v47 }
 0x2b4   :  { %v532_v50 = vpop.f32.mrf.mxu0  ;;  %v1347_v51 = vpop.f32.mrf.mxu3 }
 0x2b5   :  { %1619 = vst [vmem:[#allocation8 + $0x178] sm:$0xff] %v1469_v48  ;;  %v533_v53 = vadd.f32 %v2228_v40, %v532_v50  ;;  %v1348_v54 = vadd.f32 %v2160_v36, %v1347_v51  ;;  %v883_v2 = vmax.f32 %v716_v58, 0.0 }
 0x2b7   :  { %v810_v55 = vmax.f32 %v533_v53, 0.0  ;;  %v1542_v56 = vmax.f32 %v1348_v54, 0.0 }
 0x2b8   :  { %v1167_v57 = vpop.f32.mrf.mxu1 }
 0x2b9   :  { %v927_v60 = vpack.c.bf16 %v810_v55, %v809_v52  ;;  %1692 = vst [vmem:[#allocation8 + $0x3c0] sm:$0xff] %v1542_v56  ;;  %v1168_v61 = vadd.f32 %v2160_v36, %v1167_v57 }
 0x2ba   :  { %v717_v7 = vpop.f32.mrf.mxu2 }
 0x2bb   :  { %v1470_v62 = vmax.f32 %v1168_v61, 0.0  ;;  %v718_v63 = vadd.f32 %v2228_v40, %v717_v7  ;;  %1206 = vmatmul.bf16.gmra.mxu1 %v927_v60 }
 0x2bc   :  { %v535_v0 = vpop.f32.mrf.mxu0  ;;  %v1349_v1 = vpop.f32.mrf.mxu3 }
 0x2bd   :  { %1620 = vst [vmem:[#allocation8 + $0x180] sm:$0xff] %v1470_v62  ;;  %v884_v3 = vmax.f32 %v718_v63, 0.0  ;;  %v1350_v4 = vadd.f32 %v2160_v36, %v1349_v1  ;;  %v536_v9 = vadd.f32 %v2228_v40, %v535_v0 }
 0x2bf   :  { %v964_v5 = vpack.c.bf16 %v884_v3, %v883_v2  ;;  %v1543_v6 = vmax.f32 %v1350_v4, 0.0  ;;  %v811_v15 = vmax.f32 %v536_v9, 0.0 }
 0x2c0   :  { %v1169_v8 = vpop.f32.mrf.mxu1 }
 0x2c1   :  { %1693 = vst [vmem:[#allocation8 + $0x3c8] sm:$0xff] %v1543_v6  ;;  %v1170_v10 = vadd.f32 %v2160_v36, %v1169_v8  ;;  %1391 = vmatmul.bf16.gmra.mxu3 %v964_v5 }
 0x2c2   :  { %v720_v11 = vpop.f32.mrf.mxu2 }
 0x2c3   :  { %v1471_v12 = vmax.f32 %v1170_v10, 0.0  ;;  %v721_v21 = vadd.f32 %v2228_v40, %v720_v11 }
 0x2c4   :  { %v537_v13 = vpop.f32.mrf.mxu0  ;;  %v1352_v14 = vpop.f32.mrf.mxu3 }
 0x2c5   :  { %1621 = vst [vmem:[#allocation8 + $0x188] sm:$0xff] %v1471_v12  ;;  %v538_v16 = vadd.f32 %v2228_v40, %v537_v13  ;;  %v1353_v17 = vadd.f32 %v2160_v36, %v1352_v14  ;;  %v885_v30 = vmax.f32 %v721_v21, 0.0 }
 0x2c7   :  { %v812_v18 = vmax.f32 %v538_v16, 0.0  ;;  %v1544_v19 = vmax.f32 %v1353_v17, 0.0 }
 0x2c8   :  { %v1172_v20 = vpop.f32.mrf.mxu1 }
 0x2c9   :  { %v928_v22 = vpack.c.bf16 %v812_v18, %v811_v15  ;;  %1694 = vst [vmem:[#allocation8 + $0x3d0] sm:$0xff] %v1544_v19  ;;  %v1173_v23 = vadd.f32 %v2160_v36, %v1172_v20 }
 0x2ca   :  { %v722_v24 = vpop.f32.mrf.mxu2 }
 0x2cb   :  { %v1472_v25 = vmax.f32 %v1173_v23, 0.0  ;;  %v723_v26 = vadd.f32 %v2228_v40, %v722_v24  ;;  %1211 = vmatmul.bf16.gmra.mxu1 %v928_v22  ;;  %v2284_v22 = vld [vmem:[%s2347_s4] ss:$0 sm:$0xff]  ;;  %s1961_s4 = smov [#allocation8]  }
 0x2cc   :  { %v540_v28 = vpop.f32.mrf.mxu0  ;;  %v1354_v29 = vpop.f32.mrf.mxu3  ;;  %s1726_s20 = sshll.u32 %s1961_s4, 4  ;;  %s1727_s20 = int_to_ptr.vmem [resolvable:$true] %s1726_s20 }
 0x2cd   :  { %1622 = vst [vmem:[#allocation8 + $0x190] sm:$0xff] %v1472_v25  ;;  %v886_v31 = vmax.f32 %v723_v26, 0.0  ;;  %v1355_v32 = vadd.f32 %v2160_v36, %v1354_v29  ;;  %v541_v37 = vadd.f32 %v2228_v40, %v540_v28 }
 0x2cf   :  { %v965_v33 = vpack.c.bf16 %v886_v31, %v885_v30  ;;  %v1545_v34 = vmax.f32 %v1355_v32, 0.0  ;;  %v813_v43 = vmax.f32 %v541_v37, 0.0 }
 0x2d0   :  { %v1174_v35 = vpop.f32.mrf.mxu1 }
 0x2d1   :  { %1695 = vst [vmem:[#allocation8 + $0x3d8] sm:$0xff] %v1545_v34  ;;  %v1175_v38 = vadd.f32 %v2160_v36, %v1174_v35  ;;  %1396 = vmatmul.bf16.gmra.mxu3 %v965_v33 }
 0x2d2   :  { %v725_v39 = vpop.f32.mrf.mxu2 }
 0x2d3   :  { %v1473_v49 = vmax.f32 %v1175_v38, 0.0  ;;  %v726_v48 = vadd.f32 %v2228_v40, %v725_v39 }
 0x2d4   :  { %v542_v41 = vpop.f32.mrf.mxu0  ;;  %v1357_v42 = vpop.f32.mrf.mxu3 }
 0x2d5   :  { %1623 = vst [vmem:[#allocation8 + $0x198] sm:$0xff] %v1473_v49  ;;  %v543_v44 = vadd.f32 %v2228_v40, %v542_v41  ;;  %v1358_v45 = vadd.f32 %v2160_v36, %v1357_v42  ;;  %v887_v57 = vmax.f32 %v726_v48, 0.0 }
 0x2d7   :  { %v814_v59 = vmax.f32 %v543_v44, 0.0  ;;  %v1546_v46 = vmax.f32 %v1358_v45, 0.0 }
 0x2d8   :  { %v1177_v47 = vpop.f32.mrf.mxu1 }
 0x2d9   :  { %v929_v50 = vpack.c.bf16 %v814_v59, %v813_v43  ;;  %1696 = vst [vmem:[#allocation8 + $0x3e0] sm:$0xff] %v1546_v46  ;;  %v1178_v51 = vadd.f32 %v2160_v36, %v1177_v47 }
 0x2da   :  { %v727_v52 = vpop.f32.mrf.mxu2 }
 0x2db   :  { %v1474_v53 = vmax.f32 %v1178_v51, 0.0  ;;  %v728_v54 = vadd.f32 %v2228_v40, %v727_v52  ;;  %1216 = vmatmul.bf16.gmra.mxu1 %v929_v50 }
 0x2dc   :  { %v545_v55 = vpop.f32.mrf.mxu0  ;;  %v1359_v56 = vpop.f32.mrf.mxu3 }
 0x2dd   :  { %1624 = vst [vmem:[#allocation8 + $0x1a0] sm:$0xff] %v1474_v53  ;;  %v888_v58 = vmax.f32 %v728_v54, 0.0  ;;  %v1360_v60 = vadd.f32 %v2160_v36, %v1359_v56  ;;  %v546_v63 = vadd.f32 %v2228_v40, %v545_v55 }
 0x2df   :  { %v966_v61 = vpack.c.bf16 %v888_v58, %v887_v57  ;;  %v1547_v7 = vmax.f32 %v1360_v60, 0.0  ;;  %v815_v5 = vmax.f32 %v546_v63, 0.0 }
 0x2e0   :  { %v1179_v62 = vpop.f32.mrf.mxu1 }
 0x2e1   :  { %1697 = vst [vmem:[#allocation8 + $0x3e8] sm:$0xff] %v1547_v7  ;;  %v1180_v0 = vadd.f32 %v2160_v36, %v1179_v62  ;;  %1401 = vmatmul.bf16.gmra.mxu3 %v966_v61 }
 0x2e2   :  { %v730_v1 = vpop.f32.mrf.mxu2 }
 0x2e3   :  { %v1475_v2 = vmax.f32 %v1180_v0, 0.0  ;;  %v731_v12 = vadd.f32 %v2228_v40, %v730_v1 }
 0x2e4   :  { %v547_v3 = vpop.f32.mrf.mxu0  ;;  %v1362_v4 = vpop.f32.mrf.mxu3 }
 0x2e5   :  { %1625 = vst [vmem:[#allocation8 + $0x1a8] sm:$0xff] %v1475_v2  ;;  %v548_v6 = vadd.f32 %v2228_v40, %v547_v3  ;;  %v1363_v8 = vadd.f32 %v2160_v36, %v1362_v4  ;;  %v889_v20 = vmax.f32 %v731_v12, 0.0 }
 0x2e7   :  { %v816_v9 = vmax.f32 %v548_v6, 0.0  ;;  %v1548_v10 = vmax.f32 %v1363_v8, 0.0 }
 0x2e8   :  { %v1182_v11 = vpop.f32.mrf.mxu1 }
 0x2e9   :  { %v930_v13 = vpack.c.bf16 %v816_v9, %v815_v5  ;;  %1698 = vst [vmem:[#allocation8 + $0x3f0] sm:$0xff] %v1548_v10  ;;  %v1183_v14 = vadd.f32 %v2160_v36, %v1182_v11 }
 0x2ea   :  { %v732_v15 = vpop.f32.mrf.mxu2 }
 0x2eb   :  { %v1476_v16 = vmax.f32 %v1183_v14, 0.0  ;;  %v733_v17 = vadd.f32 %v2228_v40, %v732_v15  ;;  %1221 = vmatmul.bf16.gmra.mxu1 %v930_v13 }
 0x2ec   :  { %v550_v18 = vpop.f32.mrf.mxu0  ;;  %v1364_v19 = vpop.f32.mrf.mxu3 }
 0x2ed   :  { %1626 = vst [vmem:[#allocation8 + $0x1b0] sm:$0xff] %v1476_v16  ;;  %v890_v21 = vmax.f32 %v733_v17, 0.0  ;;  %v1365_v23 = vadd.f32 %v2284_v22, %v1364_v19  ;;  %v551_v26 = vadd.f32 %v2228_v40, %v550_v18 }
 0x2ef   :  { %v967_v24 = vpack.c.bf16 %v890_v21, %v889_v20  ;;  %v1549_v25 = vmax.f32 %v1365_v23, 0.0  ;;  %v817_v33 = vmax.f32 %v551_v26, 0.0 }
 0x2f0   :  { %v1184_v36 = vpop.f32.mrf.mxu1 }
 0x2f1   :  { %1699 = vst [vmem:[#allocation8 + $0x3f8] sm:$0xff] %v1549_v25  ;;  %v1185_v28 = vadd.f32 %v2284_v22, %v1184_v36  ;;  %1406 = vmatmul.bf16.gmra.mxu3 %v967_v24 }
 0x2f2   :  { %v735_v29 = vpop.f32.mrf.mxu2 }
 0x2f3   :  { %v1477_v30 = vmax.f32 %v1185_v28, 0.0  ;;  %v736_v49 = vadd.f32 %v2228_v40, %v735_v29 }
 0x2f4   :  { %v552_v31 = vpop.f32.mrf.mxu0  ;;  %v1367_v32 = vpop.f32.mrf.mxu3 }
 0x2f5   :  { %1627 = vst [vmem:[#allocation8 + $0x1b8] sm:$0xff] %v1477_v30  ;;  %v553_v34 = vadd.f32 %v2228_v40, %v552_v31  ;;  %v1368_v35 = vadd.f32 %v2284_v22, %v1367_v32  ;;  %v891_v46 = vmax.f32 %v736_v49, 0.0 }
 0x2f7   :  { %v818_v37 = vmax.f32 %v553_v34, 0.0  ;;  %v1550_v38 = vmax.f32 %v1368_v35, 0.0 }
 0x2f8   :  { %v1187_v39 = vpop.f32.mrf.mxu1 }
 0x2f9   :  { %v931_v41 = vpack.c.bf16 %v818_v37, %v817_v33  ;;  %1700 = vst [vmem:[#allocation8 + $0x400] sm:$0xff] %v1550_v38  ;;  %v1188_v42 = vadd.f32 %v2284_v22, %v1187_v39 }
 0x2fa   :  { %v737_v43 = vpop.f32.mrf.mxu2 }
 0x2fb   :  { %v1478_v44 = vmax.f32 %v1188_v42, 0.0  ;;  %v738_v45 = vadd.f32 %v2228_v40, %v737_v43  ;;  %1226 = vmatmul.bf16.gmra.mxu1 %v931_v41 }
 0x2fc   :  { %v1369_v59 = vpop.f32.mrf.mxu3 }
 0x2fd   :  { %1628 = vst [vmem:[#allocation8 + $0x1c0] sm:$0xff] %v1478_v44  ;;  %v892_v47 = vmax.f32 %v738_v45, 0.0  ;;  %v1370_v48 = vadd.f32 %v2284_v22, %v1369_v59 }
 0x2ff   :  { %v968_v50 = vpack.c.bf16 %v892_v47, %v891_v46  ;;  %v1551_v51 = vmax.f32 %v1370_v48, 0.0 }
 0x300   :  { %v1189_v52 = vpop.f32.mrf.mxu1 }
 0x301   :  { %1701 = vst [vmem:[#allocation8 + $0x408] sm:$0xff] %v1551_v51  ;;  %v1190_v53 = vadd.f32 %v2284_v22, %v1189_v52  ;;  %1411 = vmatmul.bf16.gmra.mxu3 %v968_v50 }
 0x302   :  { %v740_v54 = vpop.f32.mrf.mxu2 }
 0x303   :  { %v1479_v55 = vmax.f32 %v1190_v53, 0.0  ;;  %v741_v61 = vadd.f32 %v2228_v40, %v740_v54 }
 0x304   :  { %v1372_v56 = vpop.f32.mrf.mxu3 }
 0x305   :  { %1629 = vst [vmem:[#allocation8 + $0x1c8] sm:$0xff] %v1479_v55  ;;  %v1373_v57 = vadd.f32 %v2284_v22, %v1372_v56  ;;  %v893_v2 = vmax.f32 %v741_v61, 0.0 }
 0x307   :  { %v1552_v58 = vmax.f32 %v1373_v57, 0.0 }
 0x308   :  { %v1192_v60 = vpop.f32.mrf.mxu1 }
 0x309   :  { %1702 = vst [vmem:[#allocation8 + $0x410] sm:$0xff] %v1552_v58  ;;  %v1193_v7 = vadd.f32 %v2284_v22, %v1192_v60 }
 0x30a   :  { %v742_v62 = vpop.f32.mrf.mxu2 }
 0x30b   :  { %v1480_v63 = vmax.f32 %v1193_v7, 0.0  ;;  %v743_v0 = vadd.f32 %v2228_v40, %v742_v62  ;;  %1231 = vmatmul.bf16.gmra.mxu1 %v2013_v27 }
 0x30c   :  { %v1374_v1 = vpop.f32.mrf.mxu3 }
 0x30d   :  { %1630 = vst [vmem:[#allocation8 + $0x1d0] sm:$0xff] %v1480_v63  ;;  %v894_v3 = vmax.f32 %v743_v0, 0.0  ;;  %v1375_v4 = vadd.f32 %v2284_v22, %v1374_v1 }
 0x30f   :  { %v969_v5 = vpack.c.bf16 %v894_v3, %v893_v2  ;;  %v1553_v6 = vmax.f32 %v1375_v4, 0.0 }
 0x310   :  { %v1194_v8 = vpop.f32.mrf.mxu1 }
 0x311   :  { %1703 = vst [vmem:[#allocation8 + $0x418] sm:$0xff] %v1553_v6  ;;  %v1195_v9 = vadd.f32 %v2284_v22, %v1194_v8  ;;  %1416 = vmatmul.bf16.gmra.mxu3 %v969_v5 }
 0x313   :  { %v1481_v10 = vmax.f32 %v1195_v9, 0.0 }
 0x314   :  { %v1377_v11 = vpop.f32.mrf.mxu3 }
 0x315   :  { %1631 = vst [vmem:[#allocation8 + $0x1d8] sm:$0xff] %v1481_v10  ;;  %v1378_v40 = vadd.f32 %v2284_v22, %v1377_v11 }
 0x317   :  { %v1554_v12 = vmax.f32 %v1378_v40, 0.0 }
 0x318   :  { %v1197_v27 = vpop.f32.mrf.mxu1 }
 0x319   :  { %1704 = vst [vmem:[#allocation8 + $0x420] sm:$0xff] %v1554_v12  ;;  %v1198_v13 = vadd.f32 %v2284_v22, %v1197_v27 }
 0x31b   :  { %v1482_v14 = vmax.f32 %v1198_v13, 0.0 }
 0x31c   :  { %v1379_v15 = vpop.f32.mrf.mxu3 }
 0x31d   :  { %1632 = vst [vmem:[#allocation8 + $0x1e0] sm:$0xff] %v1482_v14  ;;  %v1380_v16 = vadd.f32 %v2284_v22, %v1379_v15 }
 0x31f   :  { %v1555_v17 = vmax.f32 %v1380_v16, 0.0 }
 0x320   :  { %v1199_v18 = vpop.f32.mrf.mxu1 }
 0x321   :  { %1705 = vst [vmem:[#allocation8 + $0x428] sm:$0xff] %v1555_v17  ;;  %v1200_v19 = vadd.f32 %v2284_v22, %v1199_v18 }
 0x323   :  { %v1483_v20 = vmax.f32 %v1200_v19, 0.0 }
 0x324   :  { %v1382_v21 = vpop.f32.mrf.mxu3 }
 0x325   :  { %1633 = vst [vmem:[#allocation8 + $0x1e8] sm:$0xff] %v1483_v20  ;;  %v1383_v23 = vadd.f32 %v2284_v22, %v1382_v21 }
 0x327   :  { %v1556_v24 = vmax.f32 %v1383_v23, 0.0 }
 0x328   :  { %v1202_v25 = vpop.f32.mrf.mxu1 }
 0x329   :  { %1706 = vst [vmem:[#allocation8 + $0x430] sm:$0xff] %v1556_v24  ;;  %v1203_v36 = vadd.f32 %v2284_v22, %v1202_v25 }
 0x32b   :  { %v1484_v26 = vmax.f32 %v1203_v36, 0.0 }
 0x32c   :  { %v1384_v28 = vpop.f32.mrf.mxu3 }
 0x32d   :  { %1634 = vst [vmem:[#allocation8 + $0x1f0] sm:$0xff] %v1484_v26  ;;  %v1385_v29 = vadd.f32 %v2284_v22, %v1384_v28 }
 0x32f   :  { %v1557_v30 = vmax.f32 %v1385_v29, 0.0 }
 0x330   :  { %v1204_v31 = vpop.f32.mrf.mxu1 }
 0x331   :  { %1707 = vst [vmem:[#allocation8 + $0x438] sm:$0xff] %v1557_v30  ;;  %v1205_v32 = vadd.f32 %v2284_v22, %v1204_v31 }
 0x333   :  { %v1485_v33 = vmax.f32 %v1205_v32, 0.0 }
 0x334   :  { %v1387_v34 = vpop.f32.mrf.mxu3 }
 0x335   :  { %1635 = vst [vmem:[#allocation8 + $0x1f8] sm:$0xff] %v1485_v33  ;;  %v1388_v35 = vadd.f32 %v2284_v22, %v1387_v34 }
 0x337   :  { %v1558_v37 = vmax.f32 %v1388_v35, 0.0 }
 0x338   :  { %v1207_v38 = vpop.f32.mrf.mxu1 }
 0x339   :  { %1708 = vst [vmem:[#allocation8 + $0x440] sm:$0xff] %v1558_v37  ;;  %v1208_v39 = vadd.f32 %v2284_v22, %v1207_v38 }
 0x33b   :  { %v1486_v49 = vmax.f32 %v1208_v39, 0.0 }
 0x33c   :  { %v1389_v41 = vpop.f32.mrf.mxu3 }
 0x33d   :  { %1636 = vst [vmem:[#allocation8 + $0x200] sm:$0xff] %v1486_v49  ;;  %v1390_v42 = vadd.f32 %v2284_v22, %v1389_v41 }
 0x33f   :  { %v1559_v43 = vmax.f32 %v1390_v42, 0.0 }
 0x340   :  { %v1209_v44 = vpop.f32.mrf.mxu1 }
 0x341   :  { %1709 = vst [vmem:[#allocation8 + $0x448] sm:$0xff] %v1559_v43  ;;  %v1210_v45 = vadd.f32 %v2284_v22, %v1209_v44 }
 0x343   :  { %v1487_v59 = vmax.f32 %v1210_v45, 0.0 }
 0x344   :  { %v1392_v46 = vpop.f32.mrf.mxu3 }
 0x345   :  { %1637 = vst [vmem:[#allocation8 + $0x208] sm:$0xff] %v1487_v59  ;;  %v1393_v47 = vadd.f32 %v2284_v22, %v1392_v46 }
 0x347   :  { %v1560_v48 = vmax.f32 %v1393_v47, 0.0 }
 0x348   :  { %v1212_v50 = vpop.f32.mrf.mxu1 }
 0x349   :  { %1710 = vst [vmem:[#allocation8 + $0x450] sm:$0xff] %v1560_v48  ;;  %v1213_v51 = vadd.f32 %v2284_v22, %v1212_v50 }
 0x34b   :  { %v1488_v52 = vmax.f32 %v1213_v51, 0.0 }
 0x34c   :  { %v1394_v53 = vpop.f32.mrf.mxu3 }
 0x34d   :  { %1638 = vst [vmem:[#allocation8 + $0x210] sm:$0xff] %v1488_v52  ;;  %v1395_v54 = vadd.f32 %v2284_v22, %v1394_v53 }
 0x34f   :  { %v1561_v55 = vmax.f32 %v1395_v54, 0.0 }
 0x350   :  { %v1214_v56 = vpop.f32.mrf.mxu1 }
 0x351   :  { %1711 = vst [vmem:[#allocation8 + $0x458] sm:$0xff] %v1561_v55  ;;  %v1215_v57 = vadd.f32 %v2284_v22, %v1214_v56 }
 0x353   :  { %v1489_v58 = vmax.f32 %v1215_v57, 0.0 }
 0x354   :  { %v1397_v60 = vpop.f32.mrf.mxu3 }
 0x355   :  { %1639 = vst [vmem:[#allocation8 + $0x218] sm:$0xff] %v1489_v58  ;;  %v1398_v61 = vadd.f32 %v2284_v22, %v1397_v60 }
 0x357   :  { %v1562_v7 = vmax.f32 %v1398_v61, 0.0 }
 0x358   :  { %v1217_v62 = vpop.f32.mrf.mxu1 }
 0x359   :  { %1712 = vst [vmem:[#allocation8 + $0x460] sm:$0xff] %v1562_v7  ;;  %v1218_v63 = vadd.f32 %v2284_v22, %v1217_v62 }
 0x35b   :  { %v1490_v0 = vmax.f32 %v1218_v63, 0.0 }
 0x35c   :  { %v1399_v1 = vpop.f32.mrf.mxu3 }
 0x35d   :  { %1640 = vst [vmem:[#allocation8 + $0x220] sm:$0xff] %v1490_v0  ;;  %v1400_v2 = vadd.f32 %v2284_v22, %v1399_v1 }
 0x35f   :  { %v1563_v3 = vmax.f32 %v1400_v2, 0.0 }
 0x360   :  { %v1219_v4 = vpop.f32.mrf.mxu1 }
 0x361   :  { %1713 = vst [vmem:[#allocation8 + $0x468] sm:$0xff] %v1563_v3  ;;  %v1220_v5 = vadd.f32 %v2284_v22, %v1219_v4 }
 0x363   :  { %v1491_v6 = vmax.f32 %v1220_v5, 0.0 }
 0x364   :  { %v1402_v8 = vpop.f32.mrf.mxu3 }
 0x365   :  { %1641 = vst [vmem:[#allocation8 + $0x228] sm:$0xff] %v1491_v6  ;;  %v1403_v9 = vadd.f32 %v2284_v22, %v1402_v8 }
 0x367   :  { %v1564_v10 = vmax.f32 %v1403_v9, 0.0 }
 0x368   :  { %v1222_v11 = vpop.f32.mrf.mxu1 }
 0x369   :  { %1714 = vst [vmem:[#allocation8 + $0x470] sm:$0xff] %v1564_v10  ;;  %v1223_v40 = vadd.f32 %v2284_v22, %v1222_v11 }
 0x36b   :  { %v1492_v12 = vmax.f32 %v1223_v40, 0.0 }
 0x36c   :  { %v1404_v27 = vpop.f32.mrf.mxu3 }
 0x36d   :  { %1642 = vst [vmem:[#allocation8 + $0x230] sm:$0xff] %v1492_v12  ;;  %v1405_v13 = vadd.f32 %v2284_v22, %v1404_v27 }
 0x36f   :  { %v1565_v14 = vmax.f32 %v1405_v13, 0.0 }
 0x370   :  { %v1224_v15 = vpop.f32.mrf.mxu1 }
 0x371   :  { %1715 = vst [vmem:[#allocation8 + $0x478] sm:$0xff] %v1565_v14  ;;  %v1225_v16 = vadd.f32 %v2284_v22, %v1224_v15 }
 0x373   :  { %v1493_v17 = vmax.f32 %v1225_v16, 0.0 }
 0x374   :  { %v1407_v18 = vpop.f32.mrf.mxu3 }
 0x375   :  { %1643 = vst [vmem:[#allocation8 + $0x238] sm:$0xff] %v1493_v17  ;;  %v1408_v19 = vadd.f32 %v2284_v22, %v1407_v18 }
 0x377   :  { %v1566_v20 = vmax.f32 %v1408_v19, 0.0 }
 0x378   :  { %v1227_v21 = vpop.f32.mrf.mxu1 }
 0x379   :  { %1716 = vst [vmem:[#allocation8 + $0x480] sm:$0xff] %v1566_v20  ;;  %v1228_v23 = vadd.f32 %v2284_v22, %v1227_v21 }
 0x37b   :  { %v1494_v24 = vmax.f32 %v1228_v23, 0.0 }
 0x37c   :  { %v1409_v25 = vpop.f32.mrf.mxu3 }
 0x37d   :  { %1644 = vst [vmem:[#allocation8 + $0x240] sm:$0xff] %v1494_v24  ;;  %v1410_v36 = vadd.f32 %v2284_v22, %v1409_v25 }
 0x37f   :  { %v1567_v26 = vmax.f32 %v1410_v36, 0.0 }
 0x380   :  { %v1229_v28 = vpop.f32.mrf.mxu1 }
 0x381   :  { %1717 = vst [vmem:[#allocation8 + $0x488] sm:$0xff] %v1567_v26  ;;  %v1230_v29 = vadd.f32 %v2284_v22, %v1229_v28 }
 0x383   :  { %v1495_v30 = vmax.f32 %v1230_v29, 0.0 }
 0x384   :  { %v1412_v31 = vpop.f32.mrf.mxu3 }
 0x385   :  { %1645 = vst [vmem:[#allocation8 + $0x248] sm:$0xff] %v1495_v30  ;;  %v1413_v32 = vadd.f32 %v2284_v22, %v1412_v31 }
 0x387   :  { %v1568_v33 = vmax.f32 %v1413_v32, 0.0 }
 0x388   :  { %v1232_v34 = vpop.f32.mrf.mxu1 }
 0x389   :  { %1718 = vst [vmem:[#allocation8 + $0x490] sm:$0xff] %v1568_v33  ;;  %v1233_v35 = vadd.f32 %v2284_v22, %v1232_v34 }
 0x38b   :  { %v1496_v37 = vmax.f32 %v1233_v35, 0.0 }
 0x38c   :  { %v1414_v38 = vpop.f32.mrf.mxu3 }
 0x38d   :  { %1646 = vst [vmem:[#allocation8 + $0x250] sm:$0xff] %v1496_v37  ;;  %v1415_v39 = vadd.f32 %v2284_v22, %v1414_v38 }
 0x38f   :  { %v1569_v49 = vmax.f32 %v1415_v39, 0.0 }
 0x390   :  { %v1234_v41 = vpop.f32.mrf.mxu1 }
 0x391   :  { %1719 = vst [vmem:[#allocation8 + $0x498] sm:$0xff] %v1569_v49  ;;  %v1235_v42 = vadd.f32 %v2284_v22, %v1234_v41 }
 0x393   :  { %v1497_v43 = vmax.f32 %v1235_v42, 0.0 }
 0x394   :  { %v1417_v44 = vpop.f32.mrf.mxu3 }
 0x395   :  { %1647 = vst [vmem:[#allocation8 + $0x258] sm:$0xff] %v1497_v43  ;;  %v1418_v45 = vadd.f32 %v2284_v22, %v1417_v44 }
 0x397   :  { %v1570_v59 = vmax.f32 %v1418_v45, 0.0 }
 0x399   :  { %1720 = vst [vmem:[#allocation8 + $0x4a0] sm:$0xff] %v1570_v59 }
 0x39c   :  { %v1419_v46 = vpop.f32.mrf.mxu3 }
 0x39d   :  { %v1420_v47 = vadd.f32 %v2284_v22, %v1419_v46 }
 0x39f   :  { %v1571_v48 = vmax.f32 %v1420_v47, 0.0 }
 0x3a1   :  { %1721 = vst [vmem:[#allocation8 + $0x4a8] sm:$0xff] %v1571_v48 }
 0x3a2   :  { %1734 = dma.vmem_to_hbm [thread:$0]  %s1727_s20, 19200, %s1729_s23, [#allocation4], %s1958_s30, %s1958_s30, %s1959_s6  }
 0x3a3   :  { %1952 = dma.done.wait [#allocation4], 19200  }
 0x3a4   :  { %1953 = vsyncadd [#allocation4], 4294948096 }
 0x3a5   :  { %1739 = vsyncpa [#allocation3], 1 }
 0x3a6   :  { %1740 = vsyncpa [#allocation6], 1 }
 0x3a7   :  { %1741 = vsyncpa [#allocation4], 1 }

// kernel: tpu_custom_call.1
= control target key start
LH: loop header
LB: loop body
LE: loop exit
PB: predicated region body
PF: predicated region fallthrough
CT: control target
= control target key end

     0   :  { %10 = vsyncpa [#allocation3], 0  ;;  %s2343_s0 = inlined_call_operand.hbm [shape: f32[1200,128], index: 0, kind: input, shape index: {}]   ;;  %s2344_s1 = inlined_call_operand.hbm [shape: bf16[128,128], index: 1, kind: input, shape index: {}]   ;;  %s2345_s2 = inlined_call_operand.vmem [shape: f32[1,128], index: 2, kind: input, shape index: {}]   ;;  %s2346_s3 = inlined_call_operand.hbm [shape: bf16[128,128], index: 3, kind: input, shape index: {}]   ;;  %s2347_s4 = inlined_call_operand.vmem [shape: f32[1,128], index: 4, kind: input, shape index: {}]   ;;  %s2348_s5 = inlined_call_operand.hbm [shape: f32[1200,128], index: 5, kind: output, shape index: {}]  }
   0x1   :  { %11 = vsyncpa [#allocation6], 0  ;;  %s30_s20 = sshll.u32 %s2344_s1, 4  ;;  %s31_s20 = int_to_ptr.hbm [resolvable:$true] %s30_s20 }
   0x2   :  { %12 = vsyncpa [#allocation4], 0  ;;  %s1954_s21 = smov [#allocation5]   ;;  %s17_s25 = sshll.u32 %s2343_s0, 4  ;;  %s18_s25 = int_to_ptr.hbm [resolvable:$true] %s17_s25 }
   0x3   :  { %s32_s22 = sshll.u32 %s1954_s21, 4  ;;  %s1955_s26 = smov 64   ;;  %s33_s22 = int_to_ptr.vmem [resolvable:$true] %s32_s22 }
   0x4   :  { %s1956_s27 = smov 4   ;;  %s1957_s28 = smov [#allocation2]  }
   0x5   :  { %38 = dma.hbm_to_vmem [thread:$0]  %s31_s20, 1024, %s33_s22, [#allocation6], %s1955_s26, %s1955_s26, %s1956_s27  }
   0x6   :  { %s19_s29 = sshll.u32 %s1957_s28, 4  ;;  %s1958_s30 = smov 128   ;;  %s20_s29 = int_to_ptr.vmem [resolvable:$true] %s19_s29 }
   0x7   :  { %s1959_s6 = smov 8   ;;  %s45_s8 = sshll.u32 %s2346_s3, 4  ;;  %s46_s8 = int_to_ptr.hbm [resolvable:$true] %s45_s8 }
   0x8   :  { %25 = dma.hbm_to_vmem [thread:$0]  %s18_s25, 19200, %s20_s29, [#allocation3], %s1958_s30, %s1958_s30, %s1959_s6  }
   0x9   :  { %s1960_s9 = smov [#allocation7]  }
   0xa   :  { %s47_s0 = sshll.u32 %s1960_s9, 4  ;;  %s48_s0 = int_to_ptr.vmem [resolvable:$true] %s47_s0 }
   0xb   :  { %53 = dma.hbm_to_vmem [thread:$0]  %s46_s8, 1024, %s48_s0, [#allocation6], %s1955_s26, %s1955_s26, %s1956_s27  }
   0xc   :  { %1948 = dma.done.wait [#allocation3], 19200  }
   0xd   :  { %1949 = vsyncadd [#allocation3], 4294948096 }
   0xe   :  { %1950 = dma.done.wait [#allocation6], 2048  }
   0xf   :  { %1951 = vsyncadd [#allocation6], 4294965248  ;;  %v1813_v0 = vld [vmem:[#allocation5 + $0x38] sm:$0xff]  ;;  %v1812_v1 = vld [vmem:[#allocation5 + $0x30] sm:$0xff]  ;;  %s1728_s23 = sshll.u32 %s2348_s5, 4  ;;  %s1729_s23 = int_to_ptr.hbm [resolvable:$true] %s1728_s23 }
  0x10   :  { %361 = vmatpush.bf16.msra.mxu0 %v1813_v0  ;;  %1822 = vmatpush.bf16.msra.mxu2 %v1813_v0  ;;  %v1811_v2 = vld [vmem:[#allocation5 + $0x28] sm:$0xff]  ;;  %v1810_v3 = vld [vmem:[#allocation5 + $0x20] sm:$0xff]  ;;  %v1809_v4 = vld [vmem:[#allocation5 + $0x18] sm:$0xff] }
  0x11   :  { %v1808_v5 = vld [vmem:[#allocation5 + $0x10] sm:$0xff]  ;;  %v1807_v6 = vld [vmem:[#allocation5 + $0x8] sm:$0xff]  ;;  %v1806_v7 = vld [vmem:[#allocation5] sm:$0xff] }
  0x12   :  { %v68_v8 = vld [vmem:[#allocation2] sm:$0xff]  ;;  %v69_v9 = vld [vmem:[#allocation2 + $0x8] sm:$0xff]  ;;  %v142_v10 = vld [vmem:[#allocation2 + $0x250] sm:$0xff] }
  0x13   :  { %v143_v11 = vld [vmem:[#allocation2 + $0x258] sm:$0xff]  ;;  %v218_v12 = vpack.c.bf16 %v69_v9, %v68_v8  ;;  %v70_v14 = vld [vmem:[#allocation2 + $0x10] sm:$0xff]  ;;  %v144_v16 = vld [vmem:[#allocation2 + $0x260] sm:$0xff] }
  0x14   :  { %362 = vmatpush.bf16.msra.mxu0 %v1812_v1  ;;  %1823 = vmatpush.bf16.msra.mxu2 %v1812_v1  ;;  %v255_v13 = vpack.c.bf16 %v143_v11, %v142_v10  ;;  %v71_v15 = vld [vmem:[#allocation2 + $0x18] sm:$0xff]  ;;  %v145_v17 = vld [vmem:[#allocation2 + $0x268] sm:$0xff]  ;;  %v72_v20 = vld [vmem:[#allocation2 + $0x20] sm:$0xff] }
  0x15   :  { %v219_v18 = vpack.c.bf16 %v71_v15, %v70_v14  ;;  %v256_v19 = vpack.c.bf16 %v145_v17, %v144_v16  ;;  %v73_v21 = vld [vmem:[#allocation2 + $0x28] sm:$0xff]  ;;  %v146_v22 = vld [vmem:[#allocation2 + $0x270] sm:$0xff]  ;;  %v147_v23 = vld [vmem:[#allocation2 + $0x278] sm:$0xff] }
  0x16   :  { %v220_v24 = vpack.c.bf16 %v73_v21, %v72_v20  ;;  %v257_v25 = vpack.c.bf16 %v147_v23, %v146_v22  ;;  %v74_v26 = vld [vmem:[#allocation2 + $0x30] sm:$0xff]  ;;  %v75_v27 = vld [vmem:[#allocation2 + $0x38] sm:$0xff]  ;;  %v148_v28 = vld [vmem:[#allocation2 + $0x280] sm:$0xff] }
  0x17   :  { %v149_v29 = vld [vmem:[#allocation2 + $0x288] sm:$0xff]  ;;  %v221_v30 = vpack.c.bf16 %v75_v27, %v74_v26  ;;  %v76_v32 = vld [vmem:[#allocation2 + $0x40] sm:$0xff]  ;;  %v150_v34 = vld [vmem:[#allocation2 + $0x290] sm:$0xff] }
  0x18   :  { %363 = vmatpush.bf16.msra.mxu0 %v1811_v2  ;;  %1824 = vmatpush.bf16.msra.mxu2 %v1811_v2  ;;  %v258_v31 = vpack.c.bf16 %v149_v29, %v148_v28  ;;  %v77_v33 = vld [vmem:[#allocation2 + $0x48] sm:$0xff]  ;;  %v151_v35 = vld [vmem:[#allocation2 + $0x298] sm:$0xff]  ;;  %v78_v39 = vld [vmem:[#allocation2 + $0x50] sm:$0xff] }
  0x19   :  { %v222_v36 = vpack.c.bf16 %v77_v33, %v76_v32  ;;  %v259_v37 = vpack.c.bf16 %v151_v35, %v150_v34  ;;  %v1821_v38 = vld [vmem:[#allocation7 + $0x38] sm:$0xff]  ;;  %v79_v40 = vld [vmem:[#allocation2 + $0x58] sm:$0xff]  ;;  %v152_v41 = vld [vmem:[#allocation2 + $0x2a0] sm:$0xff] }
  0x1a   :  { %1038 = vmatpush.bf16.msra.mxu1 %v1821_v38  ;;  %1830 = vmatpush.bf16.msra.mxu3 %v1821_v38  ;;  %v153_v42 = vld [vmem:[#allocation2 + $0x2a8] sm:$0xff]  ;;  %v223_v43 = vpack.c.bf16 %v79_v40, %v78_v39  ;;  %v1820_v45 = vld [vmem:[#allocation7 + $0x30] sm:$0xff]  ;;  %v1819_v46 = vld [vmem:[#allocation7 + $0x28] sm:$0xff] }
  0x1b   :  { %v260_v44 = vpack.c.bf16 %v153_v42, %v152_v41  ;;  %v1818_v47 = vld [vmem:[#allocation7 + $0x20] sm:$0xff]  ;;  %v80_v48 = vld [vmem:[#allocation2 + $0x60] sm:$0xff]  ;;  %v81_v49 = vld [vmem:[#allocation2 + $0x68] sm:$0xff] }
  0x1c   :  { %364 = vmatpush.bf16.msra.mxu0 %v1810_v3  ;;  %1825 = vmatpush.bf16.msra.mxu2 %v1810_v3  ;;  %v154_v50 = vld [vmem:[#allocation2 + $0x2b0] sm:$0xff]  ;;  %v155_v51 = vld [vmem:[#allocation2 + $0x2b8] sm:$0xff]  ;;  %v1817_v52 = vld [vmem:[#allocation7 + $0x18] sm:$0xff]  ;;  %v224_v53 = vpack.c.bf16 %v81_v49, %v80_v48 }
  0x1d   :  { %v261_v54 = vpack.c.bf16 %v155_v51, %v154_v50  ;;  %v1816_v55 = vld [vmem:[#allocation7 + $0x10] sm:$0xff]  ;;  %v1815_v56 = vld [vmem:[#allocation7 + $0x8] sm:$0xff]  ;;  %v1814_v57 = vld [vmem:[#allocation7] sm:$0xff] }
  0x1e   :  { %1039 = vmatpush.bf16.msra.mxu1 %v1820_v45  ;;  %1831 = vmatpush.bf16.msra.mxu3 %v1820_v45  ;;  %v82_v58 = vld [vmem:[#allocation2 + $0x70] sm:$0xff]  ;;  %v83_v59 = vld [vmem:[#allocation2 + $0x78] sm:$0xff]  ;;  %v156_v60 = vld [vmem:[#allocation2 + $0x2c0] sm:$0xff] }
  0x1f   :  { %v157_v61 = vld [vmem:[#allocation2 + $0x2c8] sm:$0xff]  ;;  %v225_v62 = vpack.c.bf16 %v83_v59, %v82_v58  ;;  %v84_v0 = vld [vmem:[#allocation2 + $0x80] sm:$0xff]  ;;  %v158_v2 = vld [vmem:[#allocation2 + $0x2d0] sm:$0xff] }
  0x20   :  { %365 = vmatpush.bf16.msra.mxu0 %v1809_v4  ;;  %1826 = vmatpush.bf16.msra.mxu2 %v1809_v4  ;;  %v262_v63 = vpack.c.bf16 %v157_v61, %v156_v60  ;;  %v85_v1 = vld [vmem:[#allocation2 + $0x88] sm:$0xff]  ;;  %v159_v3 = vld [vmem:[#allocation2 + $0x2d8] sm:$0xff]  ;;  %v86_v14 = vld [vmem:[#allocation2 + $0x90] sm:$0xff] }
  0x21   :  { %v226_v4 = vpack.c.bf16 %v85_v1, %v84_v0  ;;  %v87_v15 = vld [vmem:[#allocation2 + $0x98] sm:$0xff]  ;;  %v160_v16 = vld [vmem:[#allocation2 + $0x2e0] sm:$0xff]  ;;  %v161_v17 = vld [vmem:[#allocation2 + $0x2e8] sm:$0xff] }
  0x22   :  { %1040 = vmatpush.bf16.msra.mxu1 %v1819_v46  ;;  %1832 = vmatpush.bf16.msra.mxu3 %v1819_v46  ;;  %v227_v22 = vpack.c.bf16 %v87_v15, %v86_v14  ;;  %v264_v23 = vpack.c.bf16 %v161_v17, %v160_v16  ;;  %v88_v34 = vld [vmem:[#allocation2 + $0xa0] sm:$0xff]  ;;  %v89_v35 = vld [vmem:[#allocation2 + $0xa8] sm:$0xff]  ;;  %v167_v14 = vld [vmem:[#allocation2 + $0x318] sm:$0xff] }
  0x23   :  { %v228_v42 = vpack.c.bf16 %v89_v35, %v88_v34  ;;  %v168_v34 = vld [vmem:[#allocation2 + $0x320] sm:$0xff]  ;;  %v169_v35 = vld [vmem:[#allocation2 + $0x328] sm:$0xff] }
  0x24   :  { %366 = vmatpush.bf16.msra.mxu0 %v1808_v5  ;;  %1827 = vmatpush.bf16.msra.mxu2 %v1808_v5  ;;  %v263_v5 = vpack.c.bf16 %v159_v3, %v158_v2 }
  0x26   :  { %1041 = vmatpush.bf16.msra.mxu1 %v1818_v47  ;;  %1833 = vmatpush.bf16.msra.mxu3 %v1818_v47 }
  0x28   :  { %367 = vmatpush.bf16.msra.mxu0 %v1807_v6  ;;  %1828 = vmatpush.bf16.msra.mxu2 %v1807_v6 }
  0x2a   :  { %1042 = vmatpush.bf16.msra.mxu1 %v1817_v52  ;;  %1834 = vmatpush.bf16.msra.mxu3 %v1817_v52 }
  0x2c   :  { %368 = vmatpush.bf16.msra.mxu0 %v1806_v7  ;;  %1829 = vmatpush.bf16.msra.mxu2 %v1806_v7  ;;  %v2007_v7 = vld [vmem:[%s2345_s2] ss:$0 sm:$0xff] }
  0x2e   :  { %1043 = vmatpush.bf16.msra.mxu1 %v1816_v55  ;;  %1835 = vmatpush.bf16.msra.mxu3 %v1816_v55  ;;  %v91_v55 = vld [vmem:[#allocation2 + $0xb8] sm:$0xff] }
  0x2f   :  { %369 = vmatmul.bf16.vlgmr.msra.gmra.mxu0 %v218_v12  ;;  %554 = vmatmul.bf16.vlgmr.msra.gmra.mxu2 %v255_v13 }
  0x32   :  { %1044 = vmatpush.bf16.msra.mxu1 %v1815_v56  ;;  %1836 = vmatpush.bf16.msra.mxu3 %v1815_v56  ;;  %v164_v56 = vld [vmem:[#allocation2 + $0x300] sm:$0xff] }
  0x36   :  { %1045 = vmatpush.bf16.msra.mxu1 %v1814_v57  ;;  %1837 = vmatpush.bf16.msra.mxu3 %v1814_v57  ;;  %v165_v57 = vld [vmem:[#allocation2 + $0x308] sm:$0xff] }
  0x3f   :  { %374 = vmatmul.bf16.gmra.mxu0 %v219_v18  ;;  %559 = vmatmul.bf16.gmra.mxu2 %v256_v19 }
  0x4f   :  { %379 = vmatmul.bf16.gmra.mxu0 %v220_v24  ;;  %564 = vmatmul.bf16.gmra.mxu2 %v257_v25 }
  0x5f   :  { %384 = vmatmul.bf16.gmra.mxu0 %v221_v30  ;;  %569 = vmatmul.bf16.gmra.mxu2 %v258_v31 }
  0x6f   :  { %389 = vmatmul.bf16.gmra.mxu0 %v222_v36  ;;  %574 = vmatmul.bf16.gmra.mxu2 %v259_v37  ;;  %v162_v36 = vld [vmem:[#allocation2 + $0x2f0] sm:$0xff]  ;;  %v163_v37 = vld [vmem:[#allocation2 + $0x2f8] sm:$0xff] }
  0x7f   :  { %394 = vmatmul.bf16.gmra.mxu0 %v223_v43  ;;  %579 = vmatmul.bf16.gmra.mxu2 %v260_v44  ;;  %v265_v43 = vpack.c.bf16 %v163_v37, %v162_v36 }
  0x8f   :  { %399 = vmatmul.bf16.gmra.mxu0 %v224_v53  ;;  %584 = vmatmul.bf16.gmra.mxu2 %v261_v54  ;;  %v90_v54 = vld [vmem:[#allocation2 + $0xb0] sm:$0xff] }
  0x9f   :  { %404 = vmatmul.bf16.gmra.mxu0 %v225_v62  ;;  %589 = vmatmul.bf16.gmra.mxu2 %v262_v63  ;;  %v229_v62 = vpack.c.bf16 %v91_v55, %v90_v54  ;;  %v266_v63 = vpack.c.bf16 %v165_v57, %v164_v56  ;;  %v170_v54 = vld [vmem:[#allocation2 + $0x330] sm:$0xff]  ;;  %v171_v55 = vld [vmem:[#allocation2 + $0x338] sm:$0xff] }
  0xac   :  { %v370_v6 = vpop.f32.mrf.mxu0 }
  0xad   :  { %v371_v8 = vadd.f32 %v2007_v7, %v370_v6 }
  0xaf   :  { %409 = vmatmul.bf16.gmra.mxu0 %v226_v4  ;;  %594 = vmatmul.bf16.gmra.mxu2 %v263_v5  ;;  %v745_v11 = vmax.f32 %v371_v8, 0.0 }
  0xb2   :  { %v555_v9 = vpop.f32.mrf.mxu2 }
  0xb3   :  { %v556_v18 = vadd.f32 %v2007_v7, %v555_v9 }
  0xb4   :  { %v372_v10 = vpop.f32.mrf.mxu0 }
  0xb5   :  { %v373_v12 = vadd.f32 %v2007_v7, %v372_v10  ;;  %v819_v25 = vmax.f32 %v556_v18, 0.0 }
  0xb7   :  { %v746_v13 = vmax.f32 %v373_v12, 0.0  ;;  %v93_v12 = vld [vmem:[#allocation2 + $0xc8] sm:$0xff] }
  0xb9   :  { %v895_v19 = vpack.c.bf16 %v746_v13, %v745_v11  ;;  %v92_v11 = vld [vmem:[#allocation2 + $0xc0] sm:$0xff]  ;;  %v166_v13 = vld [vmem:[#allocation2 + $0x310] sm:$0xff] }
  0xba   :  { %v557_v20 = vpop.f32.mrf.mxu2 }
  0xbb   :  { %v558_v21 = vadd.f32 %v2007_v7, %v557_v20  ;;  %1046 = vmatmul.bf16.vlgmr.msra.gmra.mxu1 %v895_v19  ;;  %v230_v19 = vpack.c.bf16 %v93_v12, %v92_v11  ;;  %v267_v20 = vpack.c.bf16 %v167_v14, %v166_v13  ;;  %v172_v11 = vld [vmem:[#allocation2 + $0x340] sm:$0xff]  ;;  %v173_v12 = vld [vmem:[#allocation2 + $0x348] sm:$0xff] }
  0xbc   :  { %v375_v24 = vpop.f32.mrf.mxu0 }
  0xbd   :  { %v820_v26 = vmax.f32 %v558_v21, 0.0  ;;  %v376_v28 = vadd.f32 %v2007_v7, %v375_v24 }
  0xbf   :  { %414 = vmatmul.bf16.gmra.mxu0 %v227_v22  ;;  %599 = vmatmul.bf16.gmra.mxu2 %v264_v23  ;;  %v2013_v27 = vpack.c.bf16 %v820_v26, %v819_v25  ;;  %v747_v31 = vmax.f32 %v376_v28, 0.0 }
  0xc2   :  { %v560_v29 = vpop.f32.mrf.mxu2 }
  0xc3   :  { %v561_v38 = vadd.f32 %v2007_v7, %v560_v29 }
  0xc4   :  { %v377_v30 = vpop.f32.mrf.mxu0 }
  0xc5   :  { %v378_v32 = vadd.f32 %v2007_v7, %v377_v30  ;;  %v821_v45 = vmax.f32 %v561_v38, 0.0 }
  0xc7   :  { %v748_v33 = vmax.f32 %v378_v32, 0.0  ;;  %v94_v32 = vld [vmem:[#allocation2 + $0xd0] sm:$0xff] }
  0xc9   :  { %v896_v39 = vpack.c.bf16 %v748_v33, %v747_v31  ;;  %v95_v33 = vld [vmem:[#allocation2 + $0xd8] sm:$0xff] }
  0xca   :  { %v562_v40 = vpop.f32.mrf.mxu2 }
  0xcb   :  { %v563_v41 = vadd.f32 %v2007_v7, %v562_v40  ;;  %1051 = vmatmul.bf16.gmra.mxu1 %v896_v39  ;;  %v231_v40 = vpack.c.bf16 %v95_v33, %v94_v32  ;;  %v174_v32 = vld [vmem:[#allocation2 + $0x350] sm:$0xff]  ;;  %v175_v33 = vld [vmem:[#allocation2 + $0x358] sm:$0xff] }
  0xcc   :  { %v380_v44 = vpop.f32.mrf.mxu0 }
  0xcd   :  { %v822_v46 = vmax.f32 %v563_v41, 0.0  ;;  %v381_v48 = vadd.f32 %v2007_v7, %v380_v44  ;;  %v268_v41 = vpack.c.bf16 %v169_v35, %v168_v34 }
  0xcf   :  { %419 = vmatmul.bf16.gmra.mxu0 %v228_v42  ;;  %604 = vmatmul.bf16.gmra.mxu2 %v265_v43  ;;  %v933_v47 = vpack.c.bf16 %v822_v46, %v821_v45  ;;  %v749_v51 = vmax.f32 %v381_v48, 0.0 }
  0xd1   :  { %1236 = vmatmul.bf16.vlgmr.msra.gmra.mxu3 %v933_v47 }
  0xd2   :  { %v565_v49 = vpop.f32.mrf.mxu2 }
  0xd3   :  { %v566_v58 = vadd.f32 %v2007_v7, %v565_v49 }
  0xd4   :  { %v382_v50 = vpop.f32.mrf.mxu0 }
  0xd5   :  { %v383_v52 = vadd.f32 %v2007_v7, %v382_v50  ;;  %v823_v1 = vmax.f32 %v566_v58, 0.0 }
  0xd7   :  { %v750_v53 = vmax.f32 %v383_v52, 0.0  ;;  %v96_v52 = vld [vmem:[#allocation2 + $0xe0] sm:$0xff] }
  0xd9   :  { %v897_v59 = vpack.c.bf16 %v750_v53, %v749_v51  ;;  %v97_v53 = vld [vmem:[#allocation2 + $0xe8] sm:$0xff] }
  0xda   :  { %v567_v60 = vpop.f32.mrf.mxu2 }
  0xdb   :  { %v568_v61 = vadd.f32 %v2007_v7, %v567_v60  ;;  %1056 = vmatmul.bf16.gmra.mxu1 %v897_v59  ;;  %v232_v60 = vpack.c.bf16 %v97_v53, %v96_v52  ;;  %v103_v53 = vld [vmem:[#allocation2 + $0x118] sm:$0xff] }
  0xdc   :  { %v385_v0 = vpop.f32.mrf.mxu0 }
  0xdd   :  { %v824_v2 = vmax.f32 %v568_v61, 0.0  ;;  %v386_v4 = vadd.f32 %v2007_v7, %v385_v0  ;;  %v269_v61 = vpack.c.bf16 %v171_v55, %v170_v54  ;;  %v176_v54 = vld [vmem:[#allocation2 + $0x360] sm:$0xff]  ;;  %v177_v55 = vld [vmem:[#allocation2 + $0x368] sm:$0xff] }
  0xdf   :  { %424 = vmatmul.bf16.gmra.mxu0 %v229_v62  ;;  %609 = vmatmul.bf16.gmra.mxu2 %v266_v63  ;;  %v934_v3 = vpack.c.bf16 %v824_v2, %v823_v1  ;;  %v751_v8 = vmax.f32 %v386_v4, 0.0 }
  0xe1   :  { %1241 = vmatmul.bf16.gmra.mxu3 %v934_v3 }
  0xe2   :  { %v570_v5 = vpop.f32.mrf.mxu2 }
  0xe3   :  { %v571_v15 = vadd.f32 %v2007_v7, %v570_v5 }
  0xe4   :  { %v387_v6 = vpop.f32.mrf.mxu0 }
  0xe5   :  { %v388_v9 = vadd.f32 %v2007_v7, %v387_v6  ;;  %v825_v22 = vmax.f32 %v571_v15, 0.0 }
  0xe7   :  { %v752_v10 = vmax.f32 %v388_v9, 0.0  ;;  %v98_v9 = vld [vmem:[#allocation2 + $0xf0] sm:$0xff] }
  0xe9   :  { %v898_v16 = vpack.c.bf16 %v752_v10, %v751_v8  ;;  %v99_v10 = vld [vmem:[#allocation2 + $0xf8] sm:$0xff] }
  0xea   :  { %v572_v17 = vpop.f32.mrf.mxu2 }
  0xeb   :  { %v573_v18 = vadd.f32 %v2007_v7, %v572_v17  ;;  %1061 = vmatmul.bf16.gmra.mxu1 %v898_v16  ;;  %v233_v17 = vpack.c.bf16 %v99_v10, %v98_v9 }
  0xec   :  { %v390_v21 = vpop.f32.mrf.mxu0 }
  0xed   :  { %v826_v23 = vmax.f32 %v573_v18, 0.0  ;;  %v391_v25 = vadd.f32 %v2007_v7, %v390_v21  ;;  %v270_v18 = vpack.c.bf16 %v173_v12, %v172_v11 }
  0xef   :  { %429 = vmatmul.bf16.gmra.mxu0 %v230_v19  ;;  %614 = vmatmul.bf16.gmra.mxu2 %v267_v20  ;;  %v935_v24 = vpack.c.bf16 %v826_v23, %v825_v22  ;;  %v753_v29 = vmax.f32 %v391_v25, 0.0 }
  0xf1   :  { %1246 = vmatmul.bf16.gmra.mxu3 %v935_v24 }
  0xf2   :  { %v575_v26 = vpop.f32.mrf.mxu2 }
  0xf3   :  { %v576_v36 = vadd.f32 %v2007_v7, %v575_v26 }
  0xf4   :  { %v392_v28 = vpop.f32.mrf.mxu0 }
  0xf5   :  { %v393_v30 = vadd.f32 %v2007_v7, %v392_v28  ;;  %v827_v43 = vmax.f32 %v576_v36, 0.0 }
  0xf7   :  { %v754_v31 = vmax.f32 %v393_v30, 0.0  ;;  %v100_v30 = vld [vmem:[#allocation2 + $0x100] sm:$0xff] }
  0xf9   :  { %v899_v37 = vpack.c.bf16 %v754_v31, %v753_v29  ;;  %v101_v31 = vld [vmem:[#allocation2 + $0x108] sm:$0xff] }
  0xfa   :  { %v577_v38 = vpop.f32.mrf.mxu2 }
  0xfb   :  { %v578_v39 = vadd.f32 %v2007_v7, %v577_v38  ;;  %1066 = vmatmul.bf16.gmra.mxu1 %v899_v37  ;;  %v234_v38 = vpack.c.bf16 %v101_v31, %v100_v30 }
  0xfc   :  { %v395_v42 = vpop.f32.mrf.mxu0 }
  0xfd   :  { %v828_v44 = vmax.f32 %v578_v39, 0.0  ;;  %v396_v46 = vadd.f32 %v2007_v7, %v395_v42  ;;  %v271_v39 = vpack.c.bf16 %v175_v33, %v174_v32 }
  0xff   :  { %434 = vmatmul.bf16.gmra.mxu0 %v231_v40  ;;  %619 = vmatmul.bf16.gmra.mxu2 %v268_v41  ;;  %v936_v45 = vpack.c.bf16 %v828_v44, %v827_v43  ;;  %v755_v49 = vmax.f32 %v396_v46, 0.0 }
 0x101   :  { %1251 = vmatmul.bf16.gmra.mxu3 %v936_v45 }
 0x102   :  { %v580_v47 = vpop.f32.mrf.mxu2 }
 0x103   :  { %v581_v56 = vadd.f32 %v2007_v7, %v580_v47 }
 0x104   :  { %v397_v48 = vpop.f32.mrf.mxu0 }
 0x105   :  { %v398_v50 = vadd.f32 %v2007_v7, %v397_v48  ;;  %v829_v63 = vmax.f32 %v581_v56, 0.0 }
 0x107   :  { %v756_v51 = vmax.f32 %v398_v50, 0.0 }
 0x109   :  { %v900_v57 = vpack.c.bf16 %v756_v51, %v755_v49  ;;  %v2048_v49 = vld [vmem:[%s2347_s4] ss:$0 sm:$0xff]  ;;  %v102_v51 = vld [vmem:[#allocation2 + $0x110] sm:$0xff] }
 0x10a   :  { %v582_v58 = vpop.f32.mrf.mxu2 }
 0x10b   :  { %v583_v59 = vadd.f32 %v2007_v7, %v582_v58  ;;  %1071 = vmatmul.bf16.gmra.mxu1 %v900_v57 }
 0x10c   :  { %v400_v62 = vpop.f32.mrf.mxu0 }
 0x10d   :  { %v830_v0 = vmax.f32 %v583_v59, 0.0  ;;  %v401_v2 = vadd.f32 %v2007_v7, %v400_v62  ;;  %v235_v62 = vpack.c.bf16 %v103_v53, %v102_v51 }
 0x10f   :  { %439 = vmatmul.bf16.gmra.mxu0 %v232_v60  ;;  %624 = vmatmul.bf16.gmra.mxu2 %v269_v61  ;;  %v937_v1 = vpack.c.bf16 %v830_v0, %v829_v63  ;;  %v757_v5 = vmax.f32 %v401_v2, 0.0  ;;  %v272_v63 = vpack.c.bf16 %v177_v55, %v176_v54 }
 0x111   :  { %1256 = vmatmul.bf16.gmra.mxu3 %v937_v1 }
 0x112   :  { %v585_v3 = vpop.f32.mrf.mxu2 }
 0x113   :  { %v586_v13 = vadd.f32 %v2007_v7, %v585_v3 }
 0x114   :  { %v402_v4 = vpop.f32.mrf.mxu0 }
 0x115   :  { %v403_v6 = vadd.f32 %v2007_v7, %v402_v4  ;;  %v831_v20 = vmax.f32 %v586_v13, 0.0 }
 0x117   :  { %v758_v8 = vmax.f32 %v403_v6, 0.0 }
 0x119   :  { %v901_v14 = vpack.c.bf16 %v758_v8, %v757_v5 }
 0x11a   :  { %v587_v15 = vpop.f32.mrf.mxu2 }
 0x11b   :  { %v588_v16 = vadd.f32 %v2007_v7, %v587_v15  ;;  %1076 = vmatmul.bf16.gmra.mxu1 %v901_v14  ;;  %v104_v14 = vld [vmem:[#allocation2 + $0x120] sm:$0xff] }
 0x11c   :  { %v405_v19 = vpop.f32.mrf.mxu0 }
 0x11d   :  { %v832_v21 = vmax.f32 %v588_v16, 0.0  ;;  %v406_v23 = vadd.f32 %v2007_v7, %v405_v19  ;;  %v105_v16 = vld [vmem:[#allocation2 + $0x128] sm:$0xff] }
 0x11f   :  { %444 = vmatmul.bf16.gmra.mxu0 %v233_v17  ;;  %629 = vmatmul.bf16.gmra.mxu2 %v270_v18  ;;  %v938_v22 = vpack.c.bf16 %v832_v21, %v831_v20  ;;  %v759_v26 = vmax.f32 %v406_v23, 0.0  ;;  %v178_v17 = vld [vmem:[#allocation2 + $0x370] sm:$0xff]  ;;  %v179_v18 = vld [vmem:[#allocation2 + $0x378] sm:$0xff] }
 0x121   :  { %1261 = vmatmul.bf16.gmra.mxu3 %v938_v22 }
 0x122   :  { %v590_v24 = vpop.f32.mrf.mxu2 }
 0x123   :  { %v591_v34 = vadd.f32 %v2007_v7, %v590_v24 }
 0x124   :  { %v407_v25 = vpop.f32.mrf.mxu0 }
 0x125   :  { %v408_v28 = vadd.f32 %v2007_v7, %v407_v25  ;;  %v833_v41 = vmax.f32 %v591_v34, 0.0  ;;  %v236_v25 = vpack.c.bf16 %v105_v16, %v104_v14  ;;  %v108_v14 = vld [vmem:[#allocation2 + $0x140] sm:$0xff]  ;;  %v109_v16 = vld [vmem:[#allocation2 + $0x148] sm:$0xff] }
 0x127   :  { %v760_v29 = vmax.f32 %v408_v28, 0.0 }
 0x129   :  { %v902_v35 = vpack.c.bf16 %v760_v29, %v759_v26  ;;  %v273_v26 = vpack.c.bf16 %v179_v18, %v178_v17  ;;  %v182_v17 = vld [vmem:[#allocation2 + $0x390] sm:$0xff]  ;;  %v183_v18 = vld [vmem:[#allocation2 + $0x398] sm:$0xff] }
 0x12a   :  { %v592_v36 = vpop.f32.mrf.mxu2 }
 0x12b   :  { %v593_v37 = vadd.f32 %v2007_v7, %v592_v36  ;;  %1081 = vmatmul.bf16.gmra.mxu1 %v902_v35 }
 0x12c   :  { %v410_v40 = vpop.f32.mrf.mxu0 }
 0x12d   :  { %v834_v42 = vmax.f32 %v593_v37, 0.0  ;;  %v411_v44 = vadd.f32 %v2007_v7, %v410_v40 }
 0x12f   :  { %449 = vmatmul.bf16.gmra.mxu0 %v234_v38  ;;  %634 = vmatmul.bf16.gmra.mxu2 %v271_v39  ;;  %v939_v43 = vpack.c.bf16 %v834_v42, %v833_v41  ;;  %v761_v47 = vmax.f32 %v411_v44, 0.0  ;;  %v106_v44 = vld [vmem:[#allocation2 + $0x130] sm:$0xff] }
 0x131   :  { %1266 = vmatmul.bf16.gmra.mxu3 %v939_v43 }
 0x132   :  { %v595_v45 = vpop.f32.mrf.mxu2 }
 0x133   :  { %v596_v56 = vadd.f32 %v2007_v7, %v595_v45 }
 0x134   :  { %v412_v46 = vpop.f32.mrf.mxu0 }
 0x135   :  { %v413_v48 = vadd.f32 %v2007_v7, %v412_v46  ;;  %v835_v1 = vmax.f32 %v596_v56, 0.0  ;;  %v107_v46 = vld [vmem:[#allocation2 + $0x138] sm:$0xff] }
 0x136   :  { %v237_v56 = vpack.c.bf16 %v107_v46, %v106_v44 }
 0x137   :  { %v762_v50 = vmax.f32 %v413_v48, 0.0  ;;  %v181_v48 = vld [vmem:[#allocation2 + $0x388] sm:$0xff] }
 0x138   :  { %v1047_v52 = vpop.f32.mrf.mxu1 }
 0x139   :  { %v1048_v57 = vadd.f32 %v2048_v49, %v1047_v52  ;;  %v903_v58 = vpack.c.bf16 %v762_v50, %v761_v47  ;;  %v180_v47 = vld [vmem:[#allocation2 + $0x380] sm:$0xff] }
 0x13a   :  { %v597_v59 = vpop.f32.mrf.mxu2 }
 0x13b   :  { %v1422_v60 = vmax.f32 %v1048_v57, 0.0  ;;  %v598_v61 = vadd.f32 %v2007_v7, %v597_v59  ;;  %1086 = vmatmul.bf16.gmra.mxu1 %v903_v58  ;;  %v274_v57 = vpack.c.bf16 %v181_v48, %v180_v47  ;;  %v110_v47 = vld [vmem:[#allocation2 + $0x150] sm:$0xff] }
 0x13c   :  { %v415_v0 = vpop.f32.mrf.mxu0 }
 0x13d   :  { %1572 = vst [vmem:[#allocation8] sm:$0xff] %v1422_v60  ;;  %v836_v2 = vmax.f32 %v598_v61, 0.0  ;;  %v416_v5 = vadd.f32 %v2007_v7, %v415_v0 }
 0x13f   :  { %454 = vmatmul.bf16.gmra.mxu0 %v235_v62  ;;  %639 = vmatmul.bf16.gmra.mxu2 %v272_v63  ;;  %v940_v3 = vpack.c.bf16 %v836_v2, %v835_v1  ;;  %v763_v11 = vmax.f32 %v416_v5, 0.0 }
 0x140   :  { %v1049_v4 = vpop.f32.mrf.mxu1 }
 0x141   :  { %v1050_v6 = vadd.f32 %v2048_v49, %v1049_v4  ;;  %1271 = vmatmul.bf16.gmra.mxu3 %v940_v3 }
 0x142   :  { %v600_v8 = vpop.f32.mrf.mxu2 }
 0x143   :  { %v1423_v9 = vmax.f32 %v1050_v6, 0.0  ;;  %v601_v19 = vadd.f32 %v2007_v7, %v600_v8 }
 0x144   :  { %v417_v10 = vpop.f32.mrf.mxu0 }
 0x145   :  { %1573 = vst [vmem:[#allocation8 + $0x8] sm:$0xff] %v1423_v9  ;;  %v418_v12 = vadd.f32 %v2007_v7, %v417_v10  ;;  %v837_v29 = vmax.f32 %v601_v19, 0.0 }
 0x147   :  { %v764_v13 = vmax.f32 %v418_v12, 0.0 }
 0x148   :  { %v1052_v15 = vpop.f32.mrf.mxu1 }
 0x149   :  { %v1053_v20 = vadd.f32 %v2048_v49, %v1052_v15  ;;  %v904_v21 = vpack.c.bf16 %v764_v13, %v763_v11 }
 0x14a   :  { %v602_v22 = vpop.f32.mrf.mxu2 }
 0x14b   :  { %v1424_v23 = vmax.f32 %v1053_v20, 0.0  ;;  %v603_v24 = vadd.f32 %v2007_v7, %v602_v22  ;;  %1091 = vmatmul.bf16.gmra.mxu1 %v904_v21 }
 0x14c   :  { %v420_v28 = vpop.f32.mrf.mxu0 }
 0x14d   :  { %1574 = vst [vmem:[#allocation8 + $0x10] sm:$0xff] %v1424_v23  ;;  %v838_v30 = vmax.f32 %v603_v24, 0.0  ;;  %v421_v33 = vadd.f32 %v2007_v7, %v420_v28 }
 0x14f   :  { %459 = vmatmul.bf16.gmra.mxu0 %v236_v25  ;;  %644 = vmatmul.bf16.gmra.mxu2 %v273_v26  ;;  %v941_v31 = vpack.c.bf16 %v838_v30, %v837_v29  ;;  %v765_v39 = vmax.f32 %v421_v33, 0.0  ;;  %v238_v25 = vpack.c.bf16 %v109_v16, %v108_v14  ;;  %v275_v26 = vpack.c.bf16 %v183_v18, %v182_v17  ;;  %v112_v17 = vld [vmem:[#allocation2 + $0x160] sm:$0xff] }
 0x150   :  { %v1054_v32 = vpop.f32.mrf.mxu1 }
 0x151   :  { %v1055_v34 = vadd.f32 %v2048_v49, %v1054_v32  ;;  %1276 = vmatmul.bf16.gmra.mxu3 %v941_v31 }
 0x152   :  { %v605_v35 = vpop.f32.mrf.mxu2 }
 0x153   :  { %v1425_v36 = vmax.f32 %v1055_v34, 0.0  ;;  %v606_v50 = vadd.f32 %v2007_v7, %v605_v35 }
 0x154   :  { %v422_v37 = vpop.f32.mrf.mxu0  ;;  %v1237_v38 = vpop.f32.mrf.mxu3 }
 0x155   :  { %1575 = vst [vmem:[#allocation8 + $0x18] sm:$0xff] %v1425_v36  ;;  %v423_v40 = vadd.f32 %v2007_v7, %v422_v37  ;;  %v1238_v41 = vadd.f32 %v2048_v49, %v1237_v38  ;;  %v839_v60 = vmax.f32 %v606_v50, 0.0  ;;  %v111_v50 = vld [vmem:[#allocation2 + $0x158] sm:$0xff] }
 0x157   :  { %v766_v42 = vmax.f32 %v423_v40, 0.0  ;;  %v1498_v43 = vmax.f32 %v1238_v41, 0.0 }
 0x158   :  { %v1057_v45 = vpop.f32.mrf.mxu1 }
 0x159   :  { %1648 = vst [vmem:[#allocation8 + $0x260] sm:$0xff] %v1498_v43  ;;  %v1058_v51 = vadd.f32 %v2048_v49, %v1057_v45  ;;  %v905_v52 = vpack.c.bf16 %v766_v42, %v765_v39 }
 0x15a   :  { %v607_v53 = vpop.f32.mrf.mxu2 }
 0x15b   :  { %v1426_v54 = vmax.f32 %v1058_v51, 0.0  ;;  %v608_v55 = vadd.f32 %v2007_v7, %v607_v53  ;;  %1096 = vmatmul.bf16.gmra.mxu1 %v905_v52  ;;  %v184_v51 = vld [vmem:[#allocation2 + $0x3a0] sm:$0xff]  ;;  %v185_v52 = vld [vmem:[#allocation2 + $0x3a8] sm:$0xff] }
 0x15c   :  { %v425_v58 = vpop.f32.mrf.mxu0  ;;  %v1239_v59 = vpop.f32.mrf.mxu3 }
 0x15d   :  { %1576 = vst [vmem:[#allocation8 + $0x20] sm:$0xff] %v1426_v54  ;;  %v840_v61 = vmax.f32 %v608_v55, 0.0  ;;  %v1240_v62 = vadd.f32 %v2048_v49, %v1239_v59  ;;  %v426_v2 = vadd.f32 %v2007_v7, %v425_v58  ;;  %v239_v59 = vpack.c.bf16 %v111_v50, %v110_v47 }
 0x15f   :  { %v1499_v63 = vmax.f32 %v1240_v62, 0.0  ;;  %464 = vmatmul.bf16.gmra.mxu0 %v237_v56  ;;  %649 = vmatmul.bf16.gmra.mxu2 %v274_v57  ;;  %v942_v0 = vpack.c.bf16 %v840_v61, %v839_v60  ;;  %v767_v9 = vmax.f32 %v426_v2, 0.0  ;;  %v276_v60 = vpack.c.bf16 %v185_v52, %v184_v51  ;;  %v114_v51 = vld [vmem:[#allocation2 + $0x170] sm:$0xff] }
 0x160   :  { %v1059_v1 = vpop.f32.mrf.mxu1 }
 0x161   :  { %1649 = vst [vmem:[#allocation8 + $0x268] sm:$0xff] %v1499_v63  ;;  %v1060_v3 = vadd.f32 %v2048_v49, %v1059_v1  ;;  %1281 = vmatmul.bf16.gmra.mxu3 %v942_v0 }
 0x162   :  { %v610_v4 = vpop.f32.mrf.mxu2 }
 0x163   :  { %v1427_v5 = vmax.f32 %v1060_v3, 0.0  ;;  %v611_v19 = vadd.f32 %v2007_v7, %v610_v4 }
 0x164   :  { %v427_v6 = vpop.f32.mrf.mxu0  ;;  %v1242_v8 = vpop.f32.mrf.mxu3 }
 0x165   :  { %1577 = vst [vmem:[#allocation8 + $0x28] sm:$0xff] %v1427_v5  ;;  %v428_v10 = vadd.f32 %v2007_v7, %v427_v6  ;;  %v1243_v11 = vadd.f32 %v2048_v49, %v1242_v8  ;;  %v841_v30 = vmax.f32 %v611_v19, 0.0  ;;  %v113_v19 = vld [vmem:[#allocation2 + $0x168] sm:$0xff] }
 0x167   :  { %v768_v12 = vmax.f32 %v428_v10, 0.0  ;;  %v1500_v13 = vmax.f32 %v1243_v11, 0.0 }
 0x168   :  { %v1062_v15 = vpop.f32.mrf.mxu1 }
 0x169   :  { %1650 = vst [vmem:[#allocation8 + $0x270] sm:$0xff] %v1500_v13  ;;  %v1063_v20 = vadd.f32 %v2048_v49, %v1062_v15  ;;  %v906_v21 = vpack.c.bf16 %v768_v12, %v767_v9 }
 0x16a   :  { %v612_v22 = vpop.f32.mrf.mxu2 }
 0x16b   :  { %v1428_v23 = vmax.f32 %v1063_v20, 0.0  ;;  %v613_v24 = vadd.f32 %v2007_v7, %v612_v22  ;;  %1101 = vmatmul.bf16.gmra.mxu1 %v906_v21  ;;  %v186_v20 = vld [vmem:[#allocation2 + $0x3b0] sm:$0xff]  ;;  %v187_v21 = vld [vmem:[#allocation2 + $0x3b8] sm:$0xff] }
 0x16c   :  { %v430_v28 = vpop.f32.mrf.mxu0  ;;  %v1244_v29 = vpop.f32.mrf.mxu3 }
 0x16d   :  { %1578 = vst [vmem:[#allocation8 + $0x30] sm:$0xff] %v1428_v23  ;;  %v842_v31 = vmax.f32 %v613_v24, 0.0  ;;  %v1245_v32 = vadd.f32 %v2048_v49, %v1244_v29  ;;  %v431_v36 = vadd.f32 %v2007_v7, %v430_v28  ;;  %v240_v29 = vpack.c.bf16 %v113_v19, %v112_v17 }
 0x16f   :  { %v1501_v33 = vmax.f32 %v1245_v32, 0.0  ;;  %469 = vmatmul.bf16.gmra.mxu0 %v238_v25  ;;  %654 = vmatmul.bf16.gmra.mxu2 %v275_v26  ;;  %v943_v34 = vpack.c.bf16 %v842_v31, %v841_v30  ;;  %v769_v42 = vmax.f32 %v431_v36, 0.0  ;;  %v277_v30 = vpack.c.bf16 %v187_v21, %v186_v20  ;;  %v116_v20 = vld [vmem:[#allocation2 + $0x180] sm:$0xff] }
 0x170   :  { %v1064_v35 = vpop.f32.mrf.mxu1 }
 0x171   :  { %1651 = vst [vmem:[#allocation8 + $0x278] sm:$0xff] %v1501_v33  ;;  %v1065_v37 = vadd.f32 %v2048_v49, %v1064_v35  ;;  %1286 = vmatmul.bf16.gmra.mxu3 %v943_v34 }
 0x172   :  { %v615_v38 = vpop.f32.mrf.mxu2 }
 0x173   :  { %v1429_v39 = vmax.f32 %v1065_v37, 0.0  ;;  %v616_v53 = vadd.f32 %v2007_v7, %v615_v38 }
 0x174   :  { %v432_v40 = vpop.f32.mrf.mxu0  ;;  %v1247_v41 = vpop.f32.mrf.mxu3 }
 0x175   :  { %1579 = vst [vmem:[#allocation8 + $0x38] sm:$0xff] %v1429_v39  ;;  %v433_v43 = vadd.f32 %v2007_v7, %v432_v40  ;;  %v1248_v44 = vadd.f32 %v2048_v49, %v1247_v41  ;;  %v843_v63 = vmax.f32 %v616_v53, 0.0  ;;  %v115_v53 = vld [vmem:[#allocation2 + $0x178] sm:$0xff] }
 0x177   :  { %v770_v45 = vmax.f32 %v433_v43, 0.0  ;;  %v1502_v46 = vmax.f32 %v1248_v44, 0.0 }
 0x178   :  { %v1067_v48 = vpop.f32.mrf.mxu1 }
 0x179   :  { %1652 = vst [vmem:[#allocation8 + $0x280] sm:$0xff] %v1502_v46  ;;  %v1068_v54 = vadd.f32 %v2048_v49, %v1067_v48  ;;  %v907_v55 = vpack.c.bf16 %v770_v45, %v769_v42 }
 0x17a   :  { %v617_v56 = vpop.f32.mrf.mxu2 }
 0x17b   :  { %v1430_v57 = vmax.f32 %v1068_v54, 0.0  ;;  %v618_v58 = vadd.f32 %v2007_v7, %v617_v56  ;;  %1106 = vmatmul.bf16.gmra.mxu1 %v907_v55  ;;  %v188_v54 = vld [vmem:[#allocation2 + $0x3c0] sm:$0xff]  ;;  %v189_v55 = vld [vmem:[#allocation2 + $0x3c8] sm:$0xff] }
 0x17c   :  { %v435_v61 = vpop.f32.mrf.mxu0  ;;  %v1249_v62 = vpop.f32.mrf.mxu3 }
 0x17d   :  { %1580 = vst [vmem:[#allocation8 + $0x40] sm:$0xff] %v1430_v57  ;;  %v844_v0 = vmax.f32 %v618_v58, 0.0  ;;  %v1250_v1 = vadd.f32 %v2048_v49, %v1249_v62  ;;  %v436_v5 = vadd.f32 %v2007_v7, %v435_v61  ;;  %v241_v62 = vpack.c.bf16 %v115_v53, %v114_v51 }
 0x17f   :  { %v1503_v2 = vmax.f32 %v1250_v1, 0.0  ;;  %474 = vmatmul.bf16.gmra.mxu0 %v239_v59  ;;  %659 = vmatmul.bf16.gmra.mxu2 %v276_v60  ;;  %v944_v3 = vpack.c.bf16 %v844_v0, %v843_v63  ;;  %v771_v12 = vmax.f32 %v436_v5, 0.0  ;;  %v278_v63 = vpack.c.bf16 %v189_v55, %v188_v54  ;;  %v118_v54 = vld [vmem:[#allocation2 + $0x190] sm:$0xff] }
 0x180   :  { %v1069_v4 = vpop.f32.mrf.mxu1 }
 0x181   :  { %1653 = vst [vmem:[#allocation8 + $0x288] sm:$0xff] %v1503_v2  ;;  %v1070_v6 = vadd.f32 %v2048_v49, %v1069_v4  ;;  %1291 = vmatmul.bf16.gmra.mxu3 %v944_v3 }
 0x182   :  { %v620_v8 = vpop.f32.mrf.mxu2 }
 0x183   :  { %v1431_v9 = vmax.f32 %v1070_v6, 0.0  ;;  %v621_v22 = vadd.f32 %v2007_v7, %v620_v8 }
 0x184   :  { %v437_v10 = vpop.f32.mrf.mxu0  ;;  %v1252_v11 = vpop.f32.mrf.mxu3 }
 0x185   :  { %1581 = vst [vmem:[#allocation8 + $0x48] sm:$0xff] %v1431_v9  ;;  %v438_v13 = vadd.f32 %v2007_v7, %v437_v10  ;;  %v1253_v14 = vadd.f32 %v2048_v49, %v1252_v11  ;;  %v845_v33 = vmax.f32 %v621_v22, 0.0  ;;  %v117_v22 = vld [vmem:[#allocation2 + $0x188] sm:$0xff] }
 0x187   :  { %v772_v15 = vmax.f32 %v438_v13, 0.0  ;;  %v1504_v16 = vmax.f32 %v1253_v14, 0.0 }
 0x188   :  { %v1072_v18 = vpop.f32.mrf.mxu1 }
 0x189   :  { %1654 = vst [vmem:[#allocation8 + $0x290] sm:$0xff] %v1504_v16  ;;  %v1073_v23 = vadd.f32 %v2048_v49, %v1072_v18  ;;  %v908_v24 = vpack.c.bf16 %v772_v15, %v771_v12 }
 0x18a   :  { %v622_v25 = vpop.f32.mrf.mxu2 }
 0x18b   :  { %v1432_v26 = vmax.f32 %v1073_v23, 0.0  ;;  %v623_v28 = vadd.f32 %v2007_v7, %v622_v25  ;;  %1111 = vmatmul.bf16.gmra.mxu1 %v908_v24  ;;  %v190_v23 = vld [vmem:[#allocation2 + $0x3d0] sm:$0xff]  ;;  %v191_v24 = vld [vmem:[#allocation2 + $0x3d8] sm:$0xff] }
 0x18c   :  { %v440_v31 = vpop.f32.mrf.mxu0  ;;  %v1254_v32 = vpop.f32.mrf.mxu3 }
 0x18d   :  { %1582 = vst [vmem:[#allocation8 + $0x50] sm:$0xff] %v1432_v26  ;;  %v846_v34 = vmax.f32 %v623_v28, 0.0  ;;  %v1255_v35 = vadd.f32 %v2048_v49, %v1254_v32  ;;  %v441_v39 = vadd.f32 %v2007_v7, %v440_v31  ;;  %v242_v32 = vpack.c.bf16 %v117_v22, %v116_v20 }
 0x18f   :  { %v1505_v36 = vmax.f32 %v1255_v35, 0.0  ;;  %479 = vmatmul.bf16.gmra.mxu0 %v240_v29  ;;  %664 = vmatmul.bf16.gmra.mxu2 %v277_v30  ;;  %v945_v37 = vpack.c.bf16 %v846_v34, %v845_v33  ;;  %v773_v45 = vmax.f32 %v441_v39, 0.0  ;;  %v279_v33 = vpack.c.bf16 %v191_v24, %v190_v23  ;;  %v120_v23 = vld [vmem:[#allocation2 + $0x1a0] sm:$0xff] }
 0x190   :  { %v1074_v38 = vpop.f32.mrf.mxu1 }
 0x191   :  { %1655 = vst [vmem:[#allocation8 + $0x298] sm:$0xff] %v1505_v36  ;;  %v1075_v40 = vadd.f32 %v2048_v49, %v1074_v38  ;;  %1296 = vmatmul.bf16.gmra.mxu3 %v945_v37 }
 0x192   :  { %v625_v41 = vpop.f32.mrf.mxu2 }
 0x193   :  { %v1433_v42 = vmax.f32 %v1075_v40, 0.0  ;;  %v626_v56 = vadd.f32 %v2007_v7, %v625_v41 }
 0x194   :  { %v442_v43 = vpop.f32.mrf.mxu0  ;;  %v1257_v44 = vpop.f32.mrf.mxu3 }
 0x195   :  { %1583 = vst [vmem:[#allocation8 + $0x58] sm:$0xff] %v1433_v42  ;;  %v443_v46 = vadd.f32 %v2007_v7, %v442_v43  ;;  %v1258_v47 = vadd.f32 %v2048_v49, %v1257_v44  ;;  %v847_v2 = vmax.f32 %v626_v56, 0.0  ;;  %v119_v56 = vld [vmem:[#allocation2 + $0x198] sm:$0xff] }
 0x197   :  { %v774_v48 = vmax.f32 %v443_v46, 0.0  ;;  %v1506_v50 = vmax.f32 %v1258_v47, 0.0 }
 0x198   :  { %v1077_v52 = vpop.f32.mrf.mxu1 }
 0x199   :  { %1656 = vst [vmem:[#allocation8 + $0x2a0] sm:$0xff] %v1506_v50  ;;  %v1078_v57 = vadd.f32 %v2048_v49, %v1077_v52  ;;  %v909_v58 = vpack.c.bf16 %v774_v48, %v773_v45 }
 0x19a   :  { %v627_v59 = vpop.f32.mrf.mxu2 }
 0x19b   :  { %v1434_v60 = vmax.f32 %v1078_v57, 0.0  ;;  %v628_v61 = vadd.f32 %v2007_v7, %v627_v59  ;;  %1116 = vmatmul.bf16.gmra.mxu1 %v909_v58  ;;  %v192_v57 = vld [vmem:[#allocation2 + $0x3e0] sm:$0xff]  ;;  %v193_v58 = vld [vmem:[#allocation2 + $0x3e8] sm:$0xff] }
 0x19c   :  { %v445_v0 = vpop.f32.mrf.mxu0  ;;  %v1259_v1 = vpop.f32.mrf.mxu3  ;;  %v2114_v59 = vld [vmem:[%s2345_s2] ss:$0 sm:$0xff] }
 0x19d   :  { %1584 = vst [vmem:[#allocation8 + $0x60] sm:$0xff] %v1434_v60  ;;  %v848_v3 = vmax.f32 %v628_v61, 0.0  ;;  %v1260_v4 = vadd.f32 %v2048_v49, %v1259_v1  ;;  %v446_v9 = vadd.f32 %v2007_v7, %v445_v0  ;;  %v243_v1 = vpack.c.bf16 %v119_v56, %v118_v54 }
 0x19f   :  { %v1507_v5 = vmax.f32 %v1260_v4, 0.0  ;;  %484 = vmatmul.bf16.gmra.mxu0 %v241_v62  ;;  %669 = vmatmul.bf16.gmra.mxu2 %v278_v63  ;;  %v946_v6 = vpack.c.bf16 %v848_v3, %v847_v2  ;;  %v775_v15 = vmax.f32 %v446_v9, 0.0  ;;  %v280_v2 = vpack.c.bf16 %v193_v58, %v192_v57  ;;  %v122_v57 = vld [vmem:[#allocation2 + $0x1b0] sm:$0xff] }
 0x1a0   :  { %v1079_v8 = vpop.f32.mrf.mxu1 }
 0x1a1   :  { %1657 = vst [vmem:[#allocation8 + $0x2a8] sm:$0xff] %v1507_v5  ;;  %v1080_v10 = vadd.f32 %v2048_v49, %v1079_v8  ;;  %1301 = vmatmul.bf16.gmra.mxu3 %v946_v6 }
 0x1a2   :  { %v630_v11 = vpop.f32.mrf.mxu2 }
 0x1a3   :  { %v1435_v12 = vmax.f32 %v1080_v10, 0.0  ;;  %v631_v25 = vadd.f32 %v2007_v7, %v630_v11 }
 0x1a4   :  { %v447_v13 = vpop.f32.mrf.mxu0  ;;  %v1262_v14 = vpop.f32.mrf.mxu3 }
 0x1a5   :  { %1585 = vst [vmem:[#allocation8 + $0x68] sm:$0xff] %v1435_v12  ;;  %v448_v16 = vadd.f32 %v2007_v7, %v447_v13  ;;  %v1263_v17 = vadd.f32 %v2048_v49, %v1262_v14  ;;  %v849_v36 = vmax.f32 %v631_v25, 0.0  ;;  %v121_v25 = vld [vmem:[#allocation2 + $0x1a8] sm:$0xff] }
 0x1a7   :  { %v776_v18 = vmax.f32 %v448_v16, 0.0  ;;  %v1508_v19 = vmax.f32 %v1263_v17, 0.0 }
 0x1a8   :  { %v1082_v21 = vpop.f32.mrf.mxu1 }
 0x1a9   :  { %1658 = vst [vmem:[#allocation8 + $0x2b0] sm:$0xff] %v1508_v19  ;;  %v1083_v26 = vadd.f32 %v2048_v49, %v1082_v21  ;;  %v910_v28 = vpack.c.bf16 %v776_v18, %v775_v15 }
 0x1aa   :  { %v632_v29 = vpop.f32.mrf.mxu2 }
 0x1ab   :  { %v1436_v30 = vmax.f32 %v1083_v26, 0.0  ;;  %v633_v31 = vadd.f32 %v2007_v7, %v632_v29  ;;  %1121 = vmatmul.bf16.gmra.mxu1 %v910_v28  ;;  %v194_v26 = vld [vmem:[#allocation2 + $0x3f0] sm:$0xff]  ;;  %v195_v28 = vld [vmem:[#allocation2 + $0x3f8] sm:$0xff] }
 0x1ac   :  { %v450_v34 = vpop.f32.mrf.mxu0  ;;  %v1264_v35 = vpop.f32.mrf.mxu3 }
 0x1ad   :  { %1586 = vst [vmem:[#allocation8 + $0x70] sm:$0xff] %v1436_v30  ;;  %v850_v37 = vmax.f32 %v633_v31, 0.0  ;;  %v1265_v38 = vadd.f32 %v2048_v49, %v1264_v35  ;;  %v451_v42 = vadd.f32 %v2007_v7, %v450_v34  ;;  %v244_v35 = vpack.c.bf16 %v121_v25, %v120_v23 }
 0x1af   :  { %v1509_v39 = vmax.f32 %v1265_v38, 0.0  ;;  %489 = vmatmul.bf16.gmra.mxu0 %v242_v32  ;;  %674 = vmatmul.bf16.gmra.mxu2 %v279_v33  ;;  %v947_v40 = vpack.c.bf16 %v850_v37, %v849_v36  ;;  %v777_v48 = vmax.f32 %v451_v42, 0.0  ;;  %v281_v36 = vpack.c.bf16 %v195_v28, %v194_v26  ;;  %v124_v26 = vld [vmem:[#allocation2 + $0x1c0] sm:$0xff] }
 0x1b0   :  { %v1084_v41 = vpop.f32.mrf.mxu1 }
 0x1b1   :  { %1659 = vst [vmem:[#allocation8 + $0x2b8] sm:$0xff] %v1509_v39  ;;  %v1085_v43 = vadd.f32 %v2048_v49, %v1084_v41  ;;  %1306 = vmatmul.bf16.gmra.mxu3 %v947_v40 }
 0x1b2   :  { %v635_v44 = vpop.f32.mrf.mxu2 }
 0x1b3   :  { %v1437_v45 = vmax.f32 %v1085_v43, 0.0  ;;  %v636_v60 = vadd.f32 %v2114_v59, %v635_v44 }
 0x1b4   :  { %v452_v46 = vpop.f32.mrf.mxu0  ;;  %v1267_v47 = vpop.f32.mrf.mxu3 }
 0x1b5   :  { %1587 = vst [vmem:[#allocation8 + $0x78] sm:$0xff] %v1437_v45  ;;  %v453_v50 = vadd.f32 %v2007_v7, %v452_v46  ;;  %v1268_v51 = vadd.f32 %v2048_v49, %v1267_v47  ;;  %v851_v5 = vmax.f32 %v636_v60, 0.0  ;;  %v123_v60 = vld [vmem:[#allocation2 + $0x1b8] sm:$0xff] }
 0x1b7   :  { %v778_v52 = vmax.f32 %v453_v50, 0.0  ;;  %v1510_v53 = vmax.f32 %v1268_v51, 0.0 }
 0x1b8   :  { %v1087_v55 = vpop.f32.mrf.mxu1 }
 0x1b9   :  { %1660 = vst [vmem:[#allocation8 + $0x2c0] sm:$0xff] %v1510_v53  ;;  %v1088_v61 = vadd.f32 %v2048_v49, %v1087_v55  ;;  %v911_v7 = vpack.c.bf16 %v778_v52, %v777_v48 }
 0x1ba   :  { %v637_v62 = vpop.f32.mrf.mxu2 }
 0x1bb   :  { %v1438_v63 = vmax.f32 %v1088_v61, 0.0  ;;  %v638_v0 = vadd.f32 %v2114_v59, %v637_v62  ;;  %1126 = vmatmul.bf16.gmra.mxu1 %v911_v7  ;;  %v196_v61 = vld [vmem:[#allocation2 + $0x400] sm:$0xff]  ;;  %v197_v7 = vld [vmem:[#allocation2 + $0x408] sm:$0xff] }
 0x1bc   :  { %v455_v3 = vpop.f32.mrf.mxu0  ;;  %v1269_v4 = vpop.f32.mrf.mxu3 }
 0x1bd   :  { %1588 = vst [vmem:[#allocation8 + $0x80] sm:$0xff] %v1438_v63  ;;  %v852_v6 = vmax.f32 %v638_v0, 0.0  ;;  %v1270_v8 = vadd.f32 %v2048_v49, %v1269_v4  ;;  %v456_v12 = vadd.f32 %v2114_v59, %v455_v3  ;;  %v245_v4 = vpack.c.bf16 %v123_v60, %v122_v57 }
 0x1bf   :  { %v1511_v9 = vmax.f32 %v1270_v8, 0.0  ;;  %494 = vmatmul.bf16.gmra.mxu0 %v243_v1  ;;  %679 = vmatmul.bf16.gmra.mxu2 %v280_v2  ;;  %v948_v10 = vpack.c.bf16 %v852_v6, %v851_v5  ;;  %v779_v18 = vmax.f32 %v456_v12, 0.0  ;;  %v282_v5 = vpack.c.bf16 %v197_v7, %v196_v61  ;;  %v126_v61 = vld [vmem:[#allocation2 + $0x1d0] sm:$0xff] }
 0x1c0   :  { %v1089_v11 = vpop.f32.mrf.mxu1 }
 0x1c1   :  { %1661 = vst [vmem:[#allocation8 + $0x2c8] sm:$0xff] %v1511_v9  ;;  %v1090_v13 = vadd.f32 %v2048_v49, %v1089_v11  ;;  %1311 = vmatmul.bf16.gmra.mxu3 %v948_v10 }
 0x1c2   :  { %v640_v14 = vpop.f32.mrf.mxu2 }
 0x1c3   :  { %v1439_v15 = vmax.f32 %v1090_v13, 0.0  ;;  %v641_v29 = vadd.f32 %v2114_v59, %v640_v14 }
 0x1c4   :  { %v457_v16 = vpop.f32.mrf.mxu0  ;;  %v1272_v17 = vpop.f32.mrf.mxu3 }
 0x1c5   :  { %1589 = vst [vmem:[#allocation8 + $0x88] sm:$0xff] %v1439_v15  ;;  %v458_v19 = vadd.f32 %v2114_v59, %v457_v16  ;;  %v1273_v20 = vadd.f32 %v2048_v49, %v1272_v17  ;;  %v853_v39 = vmax.f32 %v641_v29, 0.0  ;;  %v125_v29 = vld [vmem:[#allocation2 + $0x1c8] sm:$0xff] }
 0x1c7   :  { %v780_v21 = vmax.f32 %v458_v19, 0.0  ;;  %v1512_v22 = vmax.f32 %v1273_v20, 0.0 }
 0x1c8   :  { %v1092_v24 = vpop.f32.mrf.mxu1 }
 0x1c9   :  { %1662 = vst [vmem:[#allocation8 + $0x2d0] sm:$0xff] %v1512_v22  ;;  %v1093_v30 = vadd.f32 %v2048_v49, %v1092_v24  ;;  %v912_v31 = vpack.c.bf16 %v780_v21, %v779_v18 }
 0x1ca   :  { %v642_v32 = vpop.f32.mrf.mxu2 }
 0x1cb   :  { %v1440_v33 = vmax.f32 %v1093_v30, 0.0  ;;  %v643_v34 = vadd.f32 %v2114_v59, %v642_v32  ;;  %1131 = vmatmul.bf16.gmra.mxu1 %v912_v31  ;;  %v198_v30 = vld [vmem:[#allocation2 + $0x410] sm:$0xff]  ;;  %v199_v31 = vld [vmem:[#allocation2 + $0x418] sm:$0xff] }
 0x1cc   :  { %v460_v37 = vpop.f32.mrf.mxu0  ;;  %v1274_v38 = vpop.f32.mrf.mxu3 }
 0x1cd   :  { %1590 = vst [vmem:[#allocation8 + $0x90] sm:$0xff] %v1440_v33  ;;  %v854_v40 = vmax.f32 %v643_v34, 0.0  ;;  %v1275_v41 = vadd.f32 %v2048_v49, %v1274_v38  ;;  %v461_v45 = vadd.f32 %v2114_v59, %v460_v37  ;;  %v246_v38 = vpack.c.bf16 %v125_v29, %v124_v26 }
 0x1cf   :  { %v1513_v42 = vmax.f32 %v1275_v41, 0.0  ;;  %499 = vmatmul.bf16.gmra.mxu0 %v244_v35  ;;  %684 = vmatmul.bf16.gmra.mxu2 %v281_v36  ;;  %v949_v43 = vpack.c.bf16 %v854_v40, %v853_v39  ;;  %v781_v52 = vmax.f32 %v461_v45, 0.0  ;;  %v283_v39 = vpack.c.bf16 %v199_v31, %v198_v30  ;;  %v128_v30 = vld [vmem:[#allocation2 + $0x1e0] sm:$0xff] }
 0x1d0   :  { %v1094_v44 = vpop.f32.mrf.mxu1 }
 0x1d1   :  { %1663 = vst [vmem:[#allocation8 + $0x2d8] sm:$0xff] %v1513_v42  ;;  %v1095_v46 = vadd.f32 %v2048_v49, %v1094_v44  ;;  %1316 = vmatmul.bf16.gmra.mxu3 %v949_v43 }
 0x1d2   :  { %v645_v47 = vpop.f32.mrf.mxu2 }
 0x1d3   :  { %v1441_v48 = vmax.f32 %v1095_v46, 0.0  ;;  %v646_v62 = vadd.f32 %v2114_v59, %v645_v47 }
 0x1d4   :  { %v462_v50 = vpop.f32.mrf.mxu0  ;;  %v1277_v51 = vpop.f32.mrf.mxu3 }
 0x1d5   :  { %1591 = vst [vmem:[#allocation8 + $0x98] sm:$0xff] %v1441_v48  ;;  %v463_v53 = vadd.f32 %v2114_v59, %v462_v50  ;;  %v1278_v54 = vadd.f32 %v2048_v49, %v1277_v51  ;;  %v855_v9 = vmax.f32 %v646_v62, 0.0  ;;  %v127_v62 = vld [vmem:[#allocation2 + $0x1d8] sm:$0xff] }
 0x1d7   :  { %v782_v55 = vmax.f32 %v463_v53, 0.0  ;;  %v1514_v56 = vmax.f32 %v1278_v54, 0.0 }
 0x1d8   :  { %v1097_v58 = vpop.f32.mrf.mxu1 }
 0x1d9   :  { %1664 = vst [vmem:[#allocation8 + $0x2e0] sm:$0xff] %v1514_v56  ;;  %v1098_v63 = vadd.f32 %v2048_v49, %v1097_v58  ;;  %v913_v0 = vpack.c.bf16 %v782_v55, %v781_v52 }
 0x1da   :  { %v647_v1 = vpop.f32.mrf.mxu2 }
 0x1db   :  { %v1442_v2 = vmax.f32 %v1098_v63, 0.0  ;;  %v648_v3 = vadd.f32 %v2114_v59, %v647_v1  ;;  %1136 = vmatmul.bf16.gmra.mxu1 %v913_v0  ;;  %v200_v63 = vld [vmem:[#allocation2 + $0x420] sm:$0xff]  ;;  %v201_v0 = vld [vmem:[#allocation2 + $0x428] sm:$0xff] }
 0x1dc   :  { %v465_v6 = vpop.f32.mrf.mxu0  ;;  %v1279_v8 = vpop.f32.mrf.mxu3 }
 0x1dd   :  { %1592 = vst [vmem:[#allocation8 + $0xa0] sm:$0xff] %v1442_v2  ;;  %v856_v10 = vmax.f32 %v648_v3, 0.0  ;;  %v1280_v11 = vadd.f32 %v2048_v49, %v1279_v8  ;;  %v466_v15 = vadd.f32 %v2114_v59, %v465_v6  ;;  %v247_v8 = vpack.c.bf16 %v127_v62, %v126_v61 }
 0x1df   :  { %v1515_v12 = vmax.f32 %v1280_v11, 0.0  ;;  %504 = vmatmul.bf16.gmra.mxu0 %v245_v4  ;;  %689 = vmatmul.bf16.gmra.mxu2 %v282_v5  ;;  %v950_v13 = vpack.c.bf16 %v856_v10, %v855_v9  ;;  %v783_v21 = vmax.f32 %v466_v15, 0.0  ;;  %v284_v9 = vpack.c.bf16 %v201_v0, %v200_v63  ;;  %v130_v63 = vld [vmem:[#allocation2 + $0x1f0] sm:$0xff] }
 0x1e0   :  { %v1099_v14 = vpop.f32.mrf.mxu1 }
 0x1e1   :  { %1665 = vst [vmem:[#allocation8 + $0x2e8] sm:$0xff] %v1515_v12  ;;  %v1100_v16 = vadd.f32 %v2048_v49, %v1099_v14  ;;  %1321 = vmatmul.bf16.gmra.mxu3 %v950_v13 }
 0x1e2   :  { %v650_v17 = vpop.f32.mrf.mxu2 }
 0x1e3   :  { %v1443_v18 = vmax.f32 %v1100_v16, 0.0  ;;  %v651_v32 = vadd.f32 %v2114_v59, %v650_v17 }
 0x1e4   :  { %v467_v19 = vpop.f32.mrf.mxu0  ;;  %v1282_v20 = vpop.f32.mrf.mxu3 }
 0x1e5   :  { %1593 = vst [vmem:[#allocation8 + $0xa8] sm:$0xff] %v1443_v18  ;;  %v468_v22 = vadd.f32 %v2114_v59, %v467_v19  ;;  %v1283_v23 = vadd.f32 %v2048_v49, %v1282_v20  ;;  %v857_v42 = vmax.f32 %v651_v32, 0.0  ;;  %v129_v32 = vld [vmem:[#allocation2 + $0x1e8] sm:$0xff] }
 0x1e7   :  { %v784_v24 = vmax.f32 %v468_v22, 0.0  ;;  %v1516_v25 = vmax.f32 %v1283_v23, 0.0 }
 0x1e8   :  { %v1102_v28 = vpop.f32.mrf.mxu1 }
 0x1e9   :  { %1666 = vst [vmem:[#allocation8 + $0x2f0] sm:$0xff] %v1516_v25  ;;  %v1103_v33 = vadd.f32 %v2048_v49, %v1102_v28  ;;  %v914_v34 = vpack.c.bf16 %v784_v24, %v783_v21 }
 0x1ea   :  { %v652_v35 = vpop.f32.mrf.mxu2 }
 0x1eb   :  { %v1444_v36 = vmax.f32 %v1103_v33, 0.0  ;;  %v653_v37 = vadd.f32 %v2114_v59, %v652_v35  ;;  %1141 = vmatmul.bf16.gmra.mxu1 %v914_v34  ;;  %v202_v33 = vld [vmem:[#allocation2 + $0x430] sm:$0xff]  ;;  %v203_v34 = vld [vmem:[#allocation2 + $0x438] sm:$0xff] }
 0x1ec   :  { %v470_v40 = vpop.f32.mrf.mxu0  ;;  %v1284_v41 = vpop.f32.mrf.mxu3 }
 0x1ed   :  { %1594 = vst [vmem:[#allocation8 + $0xb0] sm:$0xff] %v1444_v36  ;;  %v858_v43 = vmax.f32 %v653_v37, 0.0  ;;  %v1285_v44 = vadd.f32 %v2048_v49, %v1284_v41  ;;  %v471_v48 = vadd.f32 %v2114_v59, %v470_v40  ;;  %v2160_v36 = vld [vmem:[%s2347_s4] ss:$0 sm:$0xff]  ;;  %v248_v41 = vpack.c.bf16 %v129_v32, %v128_v30 }
 0x1ef   :  { %v1517_v45 = vmax.f32 %v1285_v44, 0.0  ;;  %509 = vmatmul.bf16.gmra.mxu0 %v246_v38  ;;  %694 = vmatmul.bf16.gmra.mxu2 %v283_v39  ;;  %v951_v46 = vpack.c.bf16 %v858_v43, %v857_v42  ;;  %v785_v55 = vmax.f32 %v471_v48, 0.0  ;;  %v285_v42 = vpack.c.bf16 %v203_v34, %v202_v33  ;;  %v132_v33 = vld [vmem:[#allocation2 + $0x200] sm:$0xff] }
 0x1f0   :  { %v1104_v47 = vpop.f32.mrf.mxu1 }
 0x1f1   :  { %1667 = vst [vmem:[#allocation8 + $0x2f8] sm:$0xff] %v1517_v45  ;;  %v1105_v50 = vadd.f32 %v2048_v49, %v1104_v47  ;;  %1326 = vmatmul.bf16.gmra.mxu3 %v951_v46 }
 0x1f2   :  { %v655_v51 = vpop.f32.mrf.mxu2 }
 0x1f3   :  { %v1445_v52 = vmax.f32 %v1105_v50, 0.0  ;;  %v656_v1 = vadd.f32 %v2114_v59, %v655_v51 }
 0x1f4   :  { %v472_v53 = vpop.f32.mrf.mxu0  ;;  %v1287_v54 = vpop.f32.mrf.mxu3 }
 0x1f5   :  { %1595 = vst [vmem:[#allocation8 + $0xb8] sm:$0xff] %v1445_v52  ;;  %v473_v56 = vadd.f32 %v2114_v59, %v472_v53  ;;  %v1288_v57 = vadd.f32 %v2048_v49, %v1287_v54  ;;  %v859_v12 = vmax.f32 %v656_v1, 0.0  ;;  %v131_v1 = vld [vmem:[#allocation2 + $0x1f8] sm:$0xff] }
 0x1f7   :  { %v786_v58 = vmax.f32 %v473_v56, 0.0  ;;  %v1518_v60 = vmax.f32 %v1288_v57, 0.0 }
 0x1f8   :  { %v1107_v7 = vpop.f32.mrf.mxu1 }
 0x1f9   :  { %1668 = vst [vmem:[#allocation8 + $0x300] sm:$0xff] %v1518_v60  ;;  %v1108_v2 = vadd.f32 %v2048_v49, %v1107_v7  ;;  %v915_v3 = vpack.c.bf16 %v786_v58, %v785_v55 }
 0x1fa   :  { %v657_v4 = vpop.f32.mrf.mxu2 }
 0x1fb   :  { %v1446_v5 = vmax.f32 %v1108_v2, 0.0  ;;  %v658_v6 = vadd.f32 %v2114_v59, %v657_v4  ;;  %1146 = vmatmul.bf16.gmra.mxu1 %v915_v3  ;;  %v204_v2 = vld [vmem:[#allocation2 + $0x440] sm:$0xff]  ;;  %v205_v3 = vld [vmem:[#allocation2 + $0x448] sm:$0xff] }
 0x1fc   :  { %v475_v10 = vpop.f32.mrf.mxu0  ;;  %v1289_v11 = vpop.f32.mrf.mxu3 }
 0x1fd   :  { %1596 = vst [vmem:[#allocation8 + $0xc0] sm:$0xff] %v1446_v5  ;;  %v860_v13 = vmax.f32 %v658_v6, 0.0  ;;  %v1290_v14 = vadd.f32 %v2048_v49, %v1289_v11  ;;  %v476_v18 = vadd.f32 %v2114_v59, %v475_v10  ;;  %v249_v11 = vpack.c.bf16 %v131_v1, %v130_v63 }
 0x1ff   :  { %v1519_v15 = vmax.f32 %v1290_v14, 0.0  ;;  %514 = vmatmul.bf16.gmra.mxu0 %v247_v8  ;;  %699 = vmatmul.bf16.gmra.mxu2 %v284_v9  ;;  %v952_v16 = vpack.c.bf16 %v860_v13, %v859_v12  ;;  %v787_v24 = vmax.f32 %v476_v18, 0.0  ;;  %v286_v12 = vpack.c.bf16 %v205_v3, %v204_v2  ;;  %v134_v2 = vld [vmem:[#allocation2 + $0x210] sm:$0xff] }
 0x200   :  { %v1109_v17 = vpop.f32.mrf.mxu1 }
 0x201   :  { %1669 = vst [vmem:[#allocation8 + $0x308] sm:$0xff] %v1519_v15  ;;  %v1110_v19 = vadd.f32 %v2048_v49, %v1109_v17  ;;  %1331 = vmatmul.bf16.gmra.mxu3 %v952_v16 }
 0x202   :  { %v660_v20 = vpop.f32.mrf.mxu2 }
 0x203   :  { %v1447_v21 = vmax.f32 %v1110_v19, 0.0  ;;  %v661_v35 = vadd.f32 %v2114_v59, %v660_v20 }
 0x204   :  { %v477_v22 = vpop.f32.mrf.mxu0  ;;  %v1292_v23 = vpop.f32.mrf.mxu3 }
 0x205   :  { %1597 = vst [vmem:[#allocation8 + $0xc8] sm:$0xff] %v1447_v21  ;;  %v478_v25 = vadd.f32 %v2114_v59, %v477_v22  ;;  %v1293_v26 = vadd.f32 %v2048_v49, %v1292_v23  ;;  %v861_v45 = vmax.f32 %v661_v35, 0.0  ;;  %v133_v35 = vld [vmem:[#allocation2 + $0x208] sm:$0xff] }
 0x207   :  { %v788_v28 = vmax.f32 %v478_v25, 0.0  ;;  %v1520_v29 = vmax.f32 %v1293_v26, 0.0 }
 0x208   :  { %v1112_v31 = vpop.f32.mrf.mxu1 }
 0x209   :  { %1670 = vst [vmem:[#allocation8 + $0x310] sm:$0xff] %v1520_v29  ;;  %v1113_v37 = vadd.f32 %v2160_v36, %v1112_v31  ;;  %v916_v38 = vpack.c.bf16 %v788_v28, %v787_v24 }
 0x20a   :  { %v662_v39 = vpop.f32.mrf.mxu2 }
 0x20b   :  { %v1448_v49 = vmax.f32 %v1113_v37, 0.0  ;;  %v663_v40 = vadd.f32 %v2114_v59, %v662_v39  ;;  %1151 = vmatmul.bf16.gmra.mxu1 %v916_v38  ;;  %v206_v37 = vld [vmem:[#allocation2 + $0x450] sm:$0xff]  ;;  %v207_v38 = vld [vmem:[#allocation2 + $0x458] sm:$0xff] }
 0x20c   :  { %v480_v43 = vpop.f32.mrf.mxu0  ;;  %v1294_v44 = vpop.f32.mrf.mxu3 }
 0x20d   :  { %1598 = vst [vmem:[#allocation8 + $0xd0] sm:$0xff] %v1448_v49  ;;  %v862_v46 = vmax.f32 %v663_v40, 0.0  ;;  %v1295_v47 = vadd.f32 %v2160_v36, %v1294_v44  ;;  %v481_v52 = vadd.f32 %v2114_v59, %v480_v43  ;;  %v250_v44 = vpack.c.bf16 %v133_v35, %v132_v33 }
 0x20f   :  { %v1521_v48 = vmax.f32 %v1295_v47, 0.0  ;;  %519 = vmatmul.bf16.gmra.mxu0 %v248_v41  ;;  %704 = vmatmul.bf16.gmra.mxu2 %v285_v42  ;;  %v953_v50 = vpack.c.bf16 %v862_v46, %v861_v45  ;;  %v789_v58 = vmax.f32 %v481_v52, 0.0  ;;  %v287_v45 = vpack.c.bf16 %v207_v38, %v206_v37  ;;  %v136_v37 = vld [vmem:[#allocation2 + $0x220] sm:$0xff] }
 0x210   :  { %v1114_v51 = vpop.f32.mrf.mxu1 }
 0x211   :  { %1671 = vst [vmem:[#allocation8 + $0x318] sm:$0xff] %v1521_v48  ;;  %v1115_v53 = vadd.f32 %v2160_v36, %v1114_v51  ;;  %1336 = vmatmul.bf16.gmra.mxu3 %v953_v50 }
 0x212   :  { %v665_v54 = vpop.f32.mrf.mxu2 }
 0x213   :  { %v1449_v55 = vmax.f32 %v1115_v53, 0.0  ;;  %v666_v4 = vadd.f32 %v2114_v59, %v665_v54 }
 0x214   :  { %v482_v56 = vpop.f32.mrf.mxu0  ;;  %v1297_v57 = vpop.f32.mrf.mxu3 }
 0x215   :  { %1599 = vst [vmem:[#allocation8 + $0xd8] sm:$0xff] %v1449_v55  ;;  %v483_v60 = vadd.f32 %v2114_v59, %v482_v56  ;;  %v1298_v61 = vadd.f32 %v2160_v36, %v1297_v57  ;;  %v863_v15 = vmax.f32 %v666_v4, 0.0  ;;  %v135_v4 = vld [vmem:[#allocation2 + $0x218] sm:$0xff] }
 0x217   :  { %v790_v7 = vmax.f32 %v483_v60, 0.0  ;;  %v1522_v62 = vmax.f32 %v1298_v61, 0.0 }
 0x218   :  { %v1117_v0 = vpop.f32.mrf.mxu1 }
 0x219   :  { %1672 = vst [vmem:[#allocation8 + $0x320] sm:$0xff] %v1522_v62  ;;  %v1118_v5 = vadd.f32 %v2160_v36, %v1117_v0  ;;  %v917_v6 = vpack.c.bf16 %v790_v7, %v789_v58 }
 0x21a   :  { %v667_v8 = vpop.f32.mrf.mxu2 }
 0x21b   :  { %v1450_v9 = vmax.f32 %v1118_v5, 0.0  ;;  %v668_v10 = vadd.f32 %v2114_v59, %v667_v8  ;;  %1156 = vmatmul.bf16.gmra.mxu1 %v917_v6  ;;  %v208_v5 = vld [vmem:[#allocation2 + $0x460] sm:$0xff]  ;;  %v209_v6 = vld [vmem:[#allocation2 + $0x468] sm:$0xff] }
 0x21c   :  { %v485_v13 = vpop.f32.mrf.mxu0  ;;  %v1299_v14 = vpop.f32.mrf.mxu3 }
 0x21d   :  { %1600 = vst [vmem:[#allocation8 + $0xe0] sm:$0xff] %v1450_v9  ;;  %v864_v16 = vmax.f32 %v668_v10, 0.0  ;;  %v1300_v17 = vadd.f32 %v2160_v36, %v1299_v14  ;;  %v486_v21 = vadd.f32 %v2114_v59, %v485_v13  ;;  %v251_v14 = vpack.c.bf16 %v135_v4, %v134_v2 }
 0x21f   :  { %v1523_v18 = vmax.f32 %v1300_v17, 0.0  ;;  %524 = vmatmul.bf16.gmra.mxu0 %v249_v11  ;;  %709 = vmatmul.bf16.gmra.mxu2 %v286_v12  ;;  %v954_v19 = vpack.c.bf16 %v864_v16, %v863_v15  ;;  %v791_v28 = vmax.f32 %v486_v21, 0.0  ;;  %v288_v15 = vpack.c.bf16 %v209_v6, %v208_v5  ;;  %v138_v5 = vld [vmem:[#allocation2 + $0x230] sm:$0xff] }
 0x220   :  { %v1119_v20 = vpop.f32.mrf.mxu1 }
 0x221   :  { %1673 = vst [vmem:[#allocation8 + $0x328] sm:$0xff] %v1523_v18  ;;  %v1120_v22 = vadd.f32 %v2160_v36, %v1119_v20  ;;  %1341 = vmatmul.bf16.gmra.mxu3 %v954_v19 }
 0x222   :  { %v670_v23 = vpop.f32.mrf.mxu2 }
 0x223   :  { %v1451_v24 = vmax.f32 %v1120_v22, 0.0  ;;  %v671_v39 = vadd.f32 %v2114_v59, %v670_v23 }
 0x224   :  { %v487_v25 = vpop.f32.mrf.mxu0  ;;  %v1302_v26 = vpop.f32.mrf.mxu3 }
 0x225   :  { %1601 = vst [vmem:[#allocation8 + $0xe8] sm:$0xff] %v1451_v24  ;;  %v488_v29 = vadd.f32 %v2114_v59, %v487_v25  ;;  %v1303_v30 = vadd.f32 %v2160_v36, %v1302_v26  ;;  %v865_v48 = vmax.f32 %v671_v39, 0.0  ;;  %v137_v39 = vld [vmem:[#allocation2 + $0x228] sm:$0xff] }
 0x227   :  { %v792_v31 = vmax.f32 %v488_v29, 0.0  ;;  %v1524_v32 = vmax.f32 %v1303_v30, 0.0 }
 0x228   :  { %v1122_v34 = vpop.f32.mrf.mxu1 }
 0x229   :  { %1674 = vst [vmem:[#allocation8 + $0x330] sm:$0xff] %v1524_v32  ;;  %v1123_v49 = vadd.f32 %v2160_v36, %v1122_v34  ;;  %v918_v40 = vpack.c.bf16 %v792_v31, %v791_v28 }
 0x22a   :  { %v672_v41 = vpop.f32.mrf.mxu2 }
 0x22b   :  { %v1452_v42 = vmax.f32 %v1123_v49, 0.0  ;;  %v673_v43 = vadd.f32 %v2114_v59, %v672_v41  ;;  %1161 = vmatmul.bf16.gmra.mxu1 %v918_v40  ;;  %v210_v49 = vld [vmem:[#allocation2 + $0x470] sm:$0xff]  ;;  %v211_v40 = vld [vmem:[#allocation2 + $0x478] sm:$0xff] }
 0x22c   :  { %v490_v46 = vpop.f32.mrf.mxu0  ;;  %v1304_v47 = vpop.f32.mrf.mxu3 }
 0x22d   :  { %1602 = vst [vmem:[#allocation8 + $0xf0] sm:$0xff] %v1452_v42  ;;  %v866_v50 = vmax.f32 %v673_v43, 0.0  ;;  %v1305_v51 = vadd.f32 %v2160_v36, %v1304_v47  ;;  %v491_v55 = vadd.f32 %v2114_v59, %v490_v46  ;;  %v252_v47 = vpack.c.bf16 %v137_v39, %v136_v37 }
 0x22f   :  { %v1525_v52 = vmax.f32 %v1305_v51, 0.0  ;;  %529 = vmatmul.bf16.gmra.mxu0 %v250_v44  ;;  %714 = vmatmul.bf16.gmra.mxu2 %v287_v45  ;;  %v955_v53 = vpack.c.bf16 %v866_v50, %v865_v48  ;;  %v793_v7 = vmax.f32 %v491_v55, 0.0  ;;  %v289_v48 = vpack.c.bf16 %v211_v40, %v210_v49  ;;  %v140_v49 = vld [vmem:[#allocation2 + $0x240] sm:$0xff] }
 0x230   :  { %v1124_v54 = vpop.f32.mrf.mxu1 }
 0x231   :  { %1675 = vst [vmem:[#allocation8 + $0x338] sm:$0xff] %v1525_v52  ;;  %v1125_v56 = vadd.f32 %v2160_v36, %v1124_v54  ;;  %1346 = vmatmul.bf16.gmra.mxu3 %v955_v53 }
 0x232   :  { %v675_v57 = vpop.f32.mrf.mxu2 }
 0x233   :  { %v1453_v58 = vmax.f32 %v1125_v56, 0.0  ;;  %v676_v8 = vadd.f32 %v2114_v59, %v675_v57 }
 0x234   :  { %v492_v60 = vpop.f32.mrf.mxu0  ;;  %v1307_v61 = vpop.f32.mrf.mxu3 }
 0x235   :  { %1603 = vst [vmem:[#allocation8 + $0xf8] sm:$0xff] %v1453_v58  ;;  %v493_v62 = vadd.f32 %v2114_v59, %v492_v60  ;;  %v1308_v63 = vadd.f32 %v2160_v36, %v1307_v61  ;;  %v867_v18 = vmax.f32 %v676_v8, 0.0  ;;  %v139_v8 = vld [vmem:[#allocation2 + $0x238] sm:$0xff] }
 0x237   :  { %v794_v0 = vmax.f32 %v493_v62, 0.0  ;;  %v1526_v1 = vmax.f32 %v1308_v63, 0.0 }
 0x238   :  { %v1127_v3 = vpop.f32.mrf.mxu1 }
 0x239   :  { %1676 = vst [vmem:[#allocation8 + $0x340] sm:$0xff] %v1526_v1  ;;  %v1128_v9 = vadd.f32 %v2160_v36, %v1127_v3  ;;  %v919_v10 = vpack.c.bf16 %v794_v0, %v793_v7 }
 0x23a   :  { %v677_v11 = vpop.f32.mrf.mxu2 }
 0x23b   :  { %v1454_v12 = vmax.f32 %v1128_v9, 0.0  ;;  %v678_v13 = vadd.f32 %v2114_v59, %v677_v11  ;;  %1166 = vmatmul.bf16.gmra.mxu1 %v919_v10  ;;  %v212_v9 = vld [vmem:[#allocation2 + $0x480] sm:$0xff]  ;;  %v213_v10 = vld [vmem:[#allocation2 + $0x488] sm:$0xff] }
 0x23c   :  { %v495_v16 = vpop.f32.mrf.mxu0  ;;  %v1309_v17 = vpop.f32.mrf.mxu3 }
 0x23d   :  { %1604 = vst [vmem:[#allocation8 + $0x100] sm:$0xff] %v1454_v12  ;;  %v868_v19 = vmax.f32 %v678_v13, 0.0  ;;  %v1310_v20 = vadd.f32 %v2160_v36, %v1309_v17  ;;  %v496_v24 = vadd.f32 %v2114_v59, %v495_v16  ;;  %v253_v17 = vpack.c.bf16 %v139_v8, %v138_v5 }
 0x23f   :  { %v1527_v21 = vmax.f32 %v1310_v20, 0.0  ;;  %534 = vmatmul.bf16.gmra.mxu0 %v251_v14  ;;  %719 = vmatmul.bf16.gmra.mxu2 %v288_v15  ;;  %v956_v22 = vpack.c.bf16 %v868_v19, %v867_v18  ;;  %v795_v31 = vmax.f32 %v496_v24, 0.0  ;;  %v290_v18 = vpack.c.bf16 %v213_v10, %v212_v9  ;;  %v216_v10 = vld [vmem:[#allocation2 + $0x4a0] sm:$0xff] }
 0x240   :  { %v1129_v23 = vpop.f32.mrf.mxu1 }
 0x241   :  { %1677 = vst [vmem:[#allocation8 + $0x348] sm:$0xff] %v1527_v21  ;;  %v1130_v25 = vadd.f32 %v2160_v36, %v1129_v23  ;;  %1351 = vmatmul.bf16.gmra.mxu3 %v956_v22 }
 0x242   :  { %v680_v26 = vpop.f32.mrf.mxu2 }
 0x243   :  { %v1455_v28 = vmax.f32 %v1130_v25, 0.0  ;;  %v681_v41 = vadd.f32 %v2114_v59, %v680_v26 }
 0x244   :  { %v497_v29 = vpop.f32.mrf.mxu0  ;;  %v1312_v30 = vpop.f32.mrf.mxu3 }
 0x245   :  { %1605 = vst [vmem:[#allocation8 + $0x108] sm:$0xff] %v1455_v28  ;;  %v498_v32 = vadd.f32 %v2114_v59, %v497_v29  ;;  %v1313_v33 = vadd.f32 %v2160_v36, %v1312_v30  ;;  %v869_v52 = vmax.f32 %v681_v41, 0.0  ;;  %v141_v41 = vld [vmem:[#allocation2 + $0x248] sm:$0xff] }
 0x247   :  { %v796_v34 = vmax.f32 %v498_v32, 0.0  ;;  %v1528_v35 = vmax.f32 %v1313_v33, 0.0 }
 0x248   :  { %v1132_v38 = vpop.f32.mrf.mxu1 }
 0x249   :  { %v920_v42 = vpack.c.bf16 %v796_v34, %v795_v31  ;;  %1678 = vst [vmem:[#allocation8 + $0x350] sm:$0xff] %v1528_v35  ;;  %v1133_v43 = vadd.f32 %v2160_v36, %v1132_v38 }
 0x24a   :  { %v682_v44 = vpop.f32.mrf.mxu2 }
 0x24b   :  { %v1456_v45 = vmax.f32 %v1133_v43, 0.0  ;;  %v683_v46 = vadd.f32 %v2114_v59, %v682_v44  ;;  %1171 = vmatmul.bf16.gmra.mxu1 %v920_v42  ;;  %v214_v42 = vld [vmem:[#allocation2 + $0x490] sm:$0xff]  ;;  %v215_v43 = vld [vmem:[#allocation2 + $0x498] sm:$0xff] }
 0x24c   :  { %v500_v50 = vpop.f32.mrf.mxu0  ;;  %v1314_v51 = vpop.f32.mrf.mxu3 }
 0x24d   :  { %1606 = vst [vmem:[#allocation8 + $0x110] sm:$0xff] %v1456_v45  ;;  %v870_v53 = vmax.f32 %v683_v46, 0.0  ;;  %v1315_v54 = vadd.f32 %v2160_v36, %v1314_v51  ;;  %v501_v58 = vadd.f32 %v2114_v59, %v500_v50  ;;  %v254_v51 = vpack.c.bf16 %v141_v41, %v140_v49 }
 0x24f   :  { %v1529_v55 = vmax.f32 %v1315_v54, 0.0  ;;  %539 = vmatmul.bf16.gmra.mxu0 %v252_v47  ;;  %724 = vmatmul.bf16.gmra.mxu2 %v289_v48  ;;  %v957_v56 = vpack.c.bf16 %v870_v53, %v869_v52  ;;  %v797_v0 = vmax.f32 %v501_v58, 0.0  ;;  %v291_v52 = vpack.c.bf16 %v215_v43, %v214_v42 }
 0x250   :  { %v1134_v57 = vpop.f32.mrf.mxu1 }
 0x251   :  { %1679 = vst [vmem:[#allocation8 + $0x358] sm:$0xff] %v1529_v55  ;;  %v1135_v60 = vadd.f32 %v2160_v36, %v1134_v57  ;;  %1356 = vmatmul.bf16.gmra.mxu3 %v957_v56 }
 0x252   :  { %v685_v61 = vpop.f32.mrf.mxu2 }
 0x253   :  { %v1457_v7 = vmax.f32 %v1135_v60, 0.0  ;;  %v686_v11 = vadd.f32 %v2114_v59, %v685_v61 }
 0x254   :  { %v502_v62 = vpop.f32.mrf.mxu0  ;;  %v1317_v63 = vpop.f32.mrf.mxu3 }
 0x255   :  { %1607 = vst [vmem:[#allocation8 + $0x118] sm:$0xff] %v1457_v7  ;;  %v503_v1 = vadd.f32 %v2114_v59, %v502_v62  ;;  %v1318_v2 = vadd.f32 %v2160_v36, %v1317_v63  ;;  %v871_v21 = vmax.f32 %v686_v11, 0.0  ;;  %v217_v11 = vld [vmem:[#allocation2 + $0x4a8] sm:$0xff] }
 0x257   :  { %v798_v3 = vmax.f32 %v503_v1, 0.0  ;;  %v1530_v4 = vmax.f32 %v1318_v2, 0.0 }
 0x258   :  { %v1137_v6 = vpop.f32.mrf.mxu1 }
 0x259   :  { %v921_v12 = vpack.c.bf16 %v798_v3, %v797_v0  ;;  %1680 = vst [vmem:[#allocation8 + $0x360] sm:$0xff] %v1530_v4  ;;  %v1138_v13 = vadd.f32 %v2160_v36, %v1137_v6 }
 0x25a   :  { %v687_v14 = vpop.f32.mrf.mxu2 }
 0x25b   :  { %v1458_v15 = vmax.f32 %v1138_v13, 0.0  ;;  %v688_v16 = vadd.f32 %v2114_v59, %v687_v14  ;;  %1176 = vmatmul.bf16.gmra.mxu1 %v921_v12 }
 0x25c   :  { %v505_v19 = vpop.f32.mrf.mxu0  ;;  %v1319_v20 = vpop.f32.mrf.mxu3 }
 0x25d   :  { %1608 = vst [vmem:[#allocation8 + $0x120] sm:$0xff] %v1458_v15  ;;  %v872_v22 = vmax.f32 %v688_v16, 0.0  ;;  %v1320_v23 = vadd.f32 %v2160_v36, %v1319_v20  ;;  %v506_v28 = vadd.f32 %v2114_v59, %v505_v19 }
 0x25f   :  { %v958_v24 = vpack.c.bf16 %v872_v22, %v871_v21  ;;  %v1531_v25 = vmax.f32 %v1320_v23, 0.0  ;;  %544 = vmatmul.bf16.gmra.mxu0 %v253_v17  ;;  %729 = vmatmul.bf16.gmra.mxu2 %v290_v18  ;;  %v799_v34 = vmax.f32 %v506_v28, 0.0  ;;  %v292_v18 = vpack.c.bf16 %v217_v11, %v216_v10 }
 0x260   :  { %v1139_v26 = vpop.f32.mrf.mxu1 }
 0x261   :  { %1681 = vst [vmem:[#allocation8 + $0x368] sm:$0xff] %v1531_v25  ;;  %v1140_v29 = vadd.f32 %v2160_v36, %v1139_v26  ;;  %1361 = vmatmul.bf16.gmra.mxu3 %v958_v24 }
 0x262   :  { %v690_v30 = vpop.f32.mrf.mxu2 }
 0x263   :  { %v1459_v31 = vmax.f32 %v1140_v29, 0.0  ;;  %v691_v44 = vadd.f32 %v2114_v59, %v690_v30 }
 0x264   :  { %v507_v32 = vpop.f32.mrf.mxu0  ;;  %v1322_v33 = vpop.f32.mrf.mxu3 }
 0x265   :  { %1609 = vst [vmem:[#allocation8 + $0x128] sm:$0xff] %v1459_v31  ;;  %v508_v35 = vadd.f32 %v2114_v59, %v507_v32  ;;  %v1323_v37 = vadd.f32 %v2160_v36, %v1322_v33  ;;  %v873_v55 = vmax.f32 %v691_v44, 0.0 }
 0x267   :  { %v800_v38 = vmax.f32 %v508_v35, 0.0  ;;  %v1532_v39 = vmax.f32 %v1323_v37, 0.0 }
 0x268   :  { %v1142_v40 = vpop.f32.mrf.mxu1 }
 0x269   :  { %v922_v45 = vpack.c.bf16 %v800_v38, %v799_v34  ;;  %1682 = vst [vmem:[#allocation8 + $0x370] sm:$0xff] %v1532_v39  ;;  %v1143_v46 = vadd.f32 %v2160_v36, %v1142_v40  ;;  %v2228_v40 = vld [vmem:[%s2345_s2] ss:$0 sm:$0xff] }
 0x26a   :  { %v692_v47 = vpop.f32.mrf.mxu2 }
 0x26b   :  { %v1460_v48 = vmax.f32 %v1143_v46, 0.0  ;;  %v693_v50 = vadd.f32 %v2114_v59, %v692_v47  ;;  %1181 = vmatmul.bf16.gmra.mxu1 %v922_v45 }
 0x26c   :  { %v510_v53 = vpop.f32.mrf.mxu0  ;;  %v1324_v54 = vpop.f32.mrf.mxu3 }
 0x26d   :  { %1610 = vst [vmem:[#allocation8 + $0x130] sm:$0xff] %v1460_v48  ;;  %v874_v56 = vmax.f32 %v693_v50, 0.0  ;;  %v1325_v57 = vadd.f32 %v2160_v36, %v1324_v54  ;;  %v511_v7 = vadd.f32 %v2114_v59, %v510_v53 }
 0x26f   :  { %v959_v58 = vpack.c.bf16 %v874_v56, %v873_v55  ;;  %v1533_v60 = vmax.f32 %v1325_v57, 0.0  ;;  %549 = vmatmul.bf16.gmra.mxu0 %v254_v51  ;;  %734 = vmatmul.bf16.gmra.mxu2 %v291_v52  ;;  %v801_v3 = vmax.f32 %v511_v7, 0.0 }
 0x270   :  { %v1144_v61 = vpop.f32.mrf.mxu1 }
 0x271   :  { %1683 = vst [vmem:[#allocation8 + $0x378] sm:$0xff] %v1533_v60  ;;  %v1145_v62 = vadd.f32 %v2160_v36, %v1144_v61  ;;  %1366 = vmatmul.bf16.gmra.mxu3 %v959_v58 }
 0x272   :  { %v695_v63 = vpop.f32.mrf.mxu2 }
 0x273   :  { %v1461_v0 = vmax.f32 %v1145_v62, 0.0  ;;  %v696_v12 = vadd.f32 %v2114_v59, %v695_v63 }
 0x274   :  { %v512_v1 = vpop.f32.mrf.mxu0  ;;  %v1327_v2 = vpop.f32.mrf.mxu3 }
 0x275   :  { %1611 = vst [vmem:[#allocation8 + $0x138] sm:$0xff] %v1461_v0  ;;  %v513_v4 = vadd.f32 %v2114_v59, %v512_v1  ;;  %v1328_v5 = vadd.f32 %v2160_v36, %v1327_v2  ;;  %v875_v21 = vmax.f32 %v696_v12, 0.0 }
 0x277   :  { %v802_v6 = vmax.f32 %v513_v4, 0.0  ;;  %v1534_v8 = vmax.f32 %v1328_v5, 0.0 }
 0x278   :  { %v1147_v9 = vpop.f32.mrf.mxu1 }
 0x279   :  { %v923_v13 = vpack.c.bf16 %v802_v6, %v801_v3  ;;  %1684 = vst [vmem:[#allocation8 + $0x380] sm:$0xff] %v1534_v8  ;;  %v1148_v14 = vadd.f32 %v2160_v36, %v1147_v9 }
 0x27a   :  { %v697_v15 = vpop.f32.mrf.mxu2 }
 0x27b   :  { %v1462_v16 = vmax.f32 %v1148_v14, 0.0  ;;  %v698_v17 = vadd.f32 %v2114_v59, %v697_v15  ;;  %1186 = vmatmul.bf16.gmra.mxu1 %v923_v13 }
 0x27c   :  { %v515_v19 = vpop.f32.mrf.mxu0  ;;  %v1329_v20 = vpop.f32.mrf.mxu3 }
 0x27d   :  { %1612 = vst [vmem:[#allocation8 + $0x140] sm:$0xff] %v1462_v16  ;;  %v876_v22 = vmax.f32 %v698_v17, 0.0  ;;  %v1330_v23 = vadd.f32 %v2160_v36, %v1329_v20  ;;  %v516_v28 = vadd.f32 %v2114_v59, %v515_v19 }
 0x27f   :  { %v960_v24 = vpack.c.bf16 %v876_v22, %v875_v21  ;;  %v1535_v25 = vmax.f32 %v1330_v23, 0.0  ;;  %739 = vmatmul.bf16.gmra.mxu2 %v292_v18  ;;  %v803_v34 = vmax.f32 %v516_v28, 0.0 }
 0x280   :  { %v1149_v26 = vpop.f32.mrf.mxu1 }
 0x281   :  { %1685 = vst [vmem:[#allocation8 + $0x388] sm:$0xff] %v1535_v25  ;;  %v1150_v29 = vadd.f32 %v2160_v36, %v1149_v26  ;;  %1371 = vmatmul.bf16.gmra.mxu3 %v960_v24 }
 0x282   :  { %v700_v30 = vpop.f32.mrf.mxu2 }
 0x283   :  { %v1463_v31 = vmax.f32 %v1150_v29, 0.0  ;;  %v701_v41 = vadd.f32 %v2228_v40, %v700_v30 }
 0x284   :  { %v517_v32 = vpop.f32.mrf.mxu0  ;;  %v1332_v33 = vpop.f32.mrf.mxu3 }
 0x285   :  { %1613 = vst [vmem:[#allocation8 + $0x148] sm:$0xff] %v1463_v31  ;;  %v518_v35 = vadd.f32 %v2114_v59, %v517_v32  ;;  %v1333_v37 = vadd.f32 %v2160_v36, %v1332_v33  ;;  %v877_v48 = vmax.f32 %v701_v41, 0.0 }
 0x287   :  { %v804_v38 = vmax.f32 %v518_v35, 0.0  ;;  %v1536_v39 = vmax.f32 %v1333_v37, 0.0 }
 0x288   :  { %v1152_v49 = vpop.f32.mrf.mxu1 }
 0x289   :  { %v924_v42 = vpack.c.bf16 %v804_v38, %v803_v34  ;;  %1686 = vst [vmem:[#allocation8 + $0x390] sm:$0xff] %v1536_v39  ;;  %v1153_v43 = vadd.f32 %v2160_v36, %v1152_v49 }
 0x28a   :  { %v702_v44 = vpop.f32.mrf.mxu2 }
 0x28b   :  { %v1464_v45 = vmax.f32 %v1153_v43, 0.0  ;;  %v703_v59 = vadd.f32 %v2228_v40, %v702_v44  ;;  %1191 = vmatmul.bf16.gmra.mxu1 %v924_v42 }
 0x28c   :  { %v520_v46 = vpop.f32.mrf.mxu0  ;;  %v1334_v47 = vpop.f32.mrf.mxu3 }
 0x28d   :  { %1614 = vst [vmem:[#allocation8 + $0x150] sm:$0xff] %v1464_v45  ;;  %v878_v50 = vmax.f32 %v703_v59, 0.0  ;;  %v1335_v51 = vadd.f32 %v2160_v36, %v1334_v47  ;;  %v521_v55 = vadd.f32 %v2228_v40, %v520_v46 }
 0x28f   :  { %v961_v52 = vpack.c.bf16 %v878_v50, %v877_v48  ;;  %v1537_v53 = vmax.f32 %v1335_v51, 0.0  ;;  %v805_v7 = vmax.f32 %v521_v55, 0.0 }
 0x290   :  { %v1154_v54 = vpop.f32.mrf.mxu1 }
 0x291   :  { %1687 = vst [vmem:[#allocation8 + $0x398] sm:$0xff] %v1537_v53  ;;  %v1155_v56 = vadd.f32 %v2160_v36, %v1154_v54  ;;  %1376 = vmatmul.bf16.gmra.mxu3 %v961_v52 }
 0x292   :  { %v705_v57 = vpop.f32.mrf.mxu2 }
 0x293   :  { %v1465_v58 = vmax.f32 %v1155_v56, 0.0  ;;  %v706_v3 = vadd.f32 %v2228_v40, %v705_v57 }
 0x294   :  { %v522_v60 = vpop.f32.mrf.mxu0  ;;  %v1337_v61 = vpop.f32.mrf.mxu3 }
 0x295   :  { %1615 = vst [vmem:[#allocation8 + $0x158] sm:$0xff] %v1465_v58  ;;  %v523_v62 = vadd.f32 %v2228_v40, %v522_v60  ;;  %v1338_v63 = vadd.f32 %v2160_v36, %v1337_v61  ;;  %v879_v12 = vmax.f32 %v706_v3, 0.0 }
 0x297   :  { %v806_v0 = vmax.f32 %v523_v62, 0.0  ;;  %v1538_v1 = vmax.f32 %v1338_v63, 0.0 }
 0x298   :  { %v1157_v2 = vpop.f32.mrf.mxu1 }
 0x299   :  { %v925_v4 = vpack.c.bf16 %v806_v0, %v805_v7  ;;  %1688 = vst [vmem:[#allocation8 + $0x3a0] sm:$0xff] %v1538_v1  ;;  %v1158_v5 = vadd.f32 %v2160_v36, %v1157_v2 }
 0x29a   :  { %v707_v6 = vpop.f32.mrf.mxu2 }
 0x29b   :  { %v1466_v8 = vmax.f32 %v1158_v5, 0.0  ;;  %v708_v9 = vadd.f32 %v2228_v40, %v707_v6  ;;  %1196 = vmatmul.bf16.gmra.mxu1 %v925_v4 }
 0x29c   :  { %v525_v10 = vpop.f32.mrf.mxu0  ;;  %v1339_v11 = vpop.f32.mrf.mxu3 }
 0x29d   :  { %1616 = vst [vmem:[#allocation8 + $0x160] sm:$0xff] %v1466_v8  ;;  %v880_v13 = vmax.f32 %v708_v9, 0.0  ;;  %v1340_v14 = vadd.f32 %v2160_v36, %v1339_v11  ;;  %v526_v18 = vadd.f32 %v2228_v40, %v525_v10 }
 0x29f   :  { %v962_v15 = vpack.c.bf16 %v880_v13, %v879_v12  ;;  %v1539_v16 = vmax.f32 %v1340_v14, 0.0  ;;  %v807_v24 = vmax.f32 %v526_v18, 0.0 }
 0x2a0   :  { %v1159_v17 = vpop.f32.mrf.mxu1 }
 0x2a1   :  { %1689 = vst [vmem:[#allocation8 + $0x3a8] sm:$0xff] %v1539_v16  ;;  %v1160_v19 = vadd.f32 %v2160_v36, %v1159_v17  ;;  %1381 = vmatmul.bf16.gmra.mxu3 %v962_v15 }
 0x2a2   :  { %v710_v20 = vpop.f32.mrf.mxu2 }
 0x2a3   :  { %v1467_v21 = vmax.f32 %v1160_v19, 0.0  ;;  %v711_v31 = vadd.f32 %v2228_v40, %v710_v20 }
 0x2a4   :  { %v527_v22 = vpop.f32.mrf.mxu0  ;;  %v1342_v23 = vpop.f32.mrf.mxu3 }
 0x2a5   :  { %1617 = vst [vmem:[#allocation8 + $0x168] sm:$0xff] %v1467_v21  ;;  %v528_v25 = vadd.f32 %v2228_v40, %v527_v22  ;;  %v1343_v26 = vadd.f32 %v2160_v36, %v1342_v23  ;;  %v881_v49 = vmax.f32 %v711_v31, 0.0 }
 0x2a7   :  { %v808_v28 = vmax.f32 %v528_v25, 0.0  ;;  %v1540_v29 = vmax.f32 %v1343_v26, 0.0 }
 0x2a8   :  { %v1162_v30 = vpop.f32.mrf.mxu1 }
 0x2a9   :  { %v926_v32 = vpack.c.bf16 %v808_v28, %v807_v24  ;;  %1690 = vst [vmem:[#allocation8 + $0x3b0] sm:$0xff] %v1540_v29  ;;  %v1163_v33 = vadd.f32 %v2160_v36, %v1162_v30 }
 0x2aa   :  { %v712_v34 = vpop.f32.mrf.mxu2 }
 0x2ab   :  { %v1468_v35 = vmax.f32 %v1163_v33, 0.0  ;;  %v713_v37 = vadd.f32 %v2228_v40, %v712_v34  ;;  %1201 = vmatmul.bf16.gmra.mxu1 %v926_v32 }
 0x2ac   :  { %v530_v38 = vpop.f32.mrf.mxu0  ;;  %v1344_v39 = vpop.f32.mrf.mxu3 }
 0x2ad   :  { %1618 = vst [vmem:[#allocation8 + $0x170] sm:$0xff] %v1468_v35  ;;  %v882_v41 = vmax.f32 %v713_v37, 0.0  ;;  %v1345_v42 = vadd.f32 %v2160_v36, %v1344_v39  ;;  %v531_v59 = vadd.f32 %v2228_v40, %v530_v38 }
 0x2af   :  { %v963_v43 = vpack.c.bf16 %v882_v41, %v881_v49  ;;  %v1541_v44 = vmax.f32 %v1345_v42, 0.0  ;;  %v809_v52 = vmax.f32 %v531_v59, 0.0 }
 0x2b0   :  { %v1164_v45 = vpop.f32.mrf.mxu1 }
 0x2b1   :  { %1691 = vst [vmem:[#allocation8 + $0x3b8] sm:$0xff] %v1541_v44  ;;  %v1165_v46 = vadd.f32 %v2160_v36, %v1164_v45  ;;  %1386 = vmatmul.bf16.gmra.mxu3 %v963_v43 }
 0x2b2   :  { %v715_v47 = vpop.f32.mrf.mxu2 }
 0x2b3   :  { %v1469_v48 = vmax.f32 %v1165_v46, 0.0  ;;  %v716_v58 = vadd.f32 %v2228_v40, %v715_v47 }
 0x2b4   :  { %v532_v50 = vpop.f32.mrf.mxu0  ;;  %v1347_v51 = vpop.f32.mrf.mxu3 }
 0x2b5   :  { %1619 = vst [vmem:[#allocation8 + $0x178] sm:$0xff] %v1469_v48  ;;  %v533_v53 = vadd.f32 %v2228_v40, %v532_v50  ;;  %v1348_v54 = vadd.f32 %v2160_v36, %v1347_v51  ;;  %v883_v2 = vmax.f32 %v716_v58, 0.0 }
 0x2b7   :  { %v810_v55 = vmax.f32 %v533_v53, 0.0  ;;  %v1542_v56 = vmax.f32 %v1348_v54, 0.0 }
 0x2b8   :  { %v1167_v57 = vpop.f32.mrf.mxu1 }
 0x2b9   :  { %v927_v60 = vpack.c.bf16 %v810_v55, %v809_v52  ;;  %1692 = vst [vmem:[#allocation8 + $0x3c0] sm:$0xff] %v1542_v56  ;;  %v1168_v61 = vadd.f32 %v2160_v36, %v1167_v57 }
 0x2ba   :  { %v717_v7 = vpop.f32.mrf.mxu2 }
 0x2bb   :  { %v1470_v62 = vmax.f32 %v1168_v61, 0.0  ;;  %v718_v63 = vadd.f32 %v2228_v40, %v717_v7  ;;  %1206 = vmatmul.bf16.gmra.mxu1 %v927_v60 }
 0x2bc   :  { %v535_v0 = vpop.f32.mrf.mxu0  ;;  %v1349_v1 = vpop.f32.mrf.mxu3 }
 0x2bd   :  { %1620 = vst [vmem:[#allocation8 + $0x180] sm:$0xff] %v1470_v62  ;;  %v884_v3 = vmax.f32 %v718_v63, 0.0  ;;  %v1350_v4 = vadd.f32 %v2160_v36, %v1349_v1  ;;  %v536_v9 = vadd.f32 %v2228_v40, %v535_v0 }
 0x2bf   :  { %v964_v5 = vpack.c.bf16 %v884_v3, %v883_v2  ;;  %v1543_v6 = vmax.f32 %v1350_v4, 0.0  ;;  %v811_v15 = vmax.f32 %v536_v9, 0.0 }
 0x2c0   :  { %v1169_v8 = vpop.f32.mrf.mxu1 }
 0x2c1   :  { %1693 = vst [vmem:[#allocation8 + $0x3c8] sm:$0xff] %v1543_v6  ;;  %v1170_v10 = vadd.f32 %v2160_v36, %v1169_v8  ;;  %1391 = vmatmul.bf16.gmra.mxu3 %v964_v5 }
 0x2c2   :  { %v720_v11 = vpop.f32.mrf.mxu2 }
 0x2c3   :  { %v1471_v12 = vmax.f32 %v1170_v10, 0.0  ;;  %v721_v21 = vadd.f32 %v2228_v40, %v720_v11 }
 0x2c4   :  { %v537_v13 = vpop.f32.mrf.mxu0  ;;  %v1352_v14 = vpop.f32.mrf.mxu3 }
 0x2c5   :  { %1621 = vst [vmem:[#allocation8 + $0x188] sm:$0xff] %v1471_v12  ;;  %v538_v16 = vadd.f32 %v2228_v40, %v537_v13  ;;  %v1353_v17 = vadd.f32 %v2160_v36, %v1352_v14  ;;  %v885_v30 = vmax.f32 %v721_v21, 0.0 }
 0x2c7   :  { %v812_v18 = vmax.f32 %v538_v16, 0.0  ;;  %v1544_v19 = vmax.f32 %v1353_v17, 0.0 }
 0x2c8   :  { %v1172_v20 = vpop.f32.mrf.mxu1 }
 0x2c9   :  { %v928_v22 = vpack.c.bf16 %v812_v18, %v811_v15  ;;  %1694 = vst [vmem:[#allocation8 + $0x3d0] sm:$0xff] %v1544_v19  ;;  %v1173_v23 = vadd.f32 %v2160_v36, %v1172_v20 }
 0x2ca   :  { %v722_v24 = vpop.f32.mrf.mxu2 }
 0x2cb   :  { %v1472_v25 = vmax.f32 %v1173_v23, 0.0  ;;  %v723_v26 = vadd.f32 %v2228_v40, %v722_v24  ;;  %1211 = vmatmul.bf16.gmra.mxu1 %v928_v22  ;;  %v2284_v22 = vld [vmem:[%s2347_s4] ss:$0 sm:$0xff]  ;;  %s1961_s4 = smov [#allocation8]  }
 0x2cc   :  { %v540_v28 = vpop.f32.mrf.mxu0  ;;  %v1354_v29 = vpop.f32.mrf.mxu3  ;;  %s1726_s20 = sshll.u32 %s1961_s4, 4  ;;  %s1727_s20 = int_to_ptr.vmem [resolvable:$true] %s1726_s20 }
 0x2cd   :  { %1622 = vst [vmem:[#allocation8 + $0x190] sm:$0xff] %v1472_v25  ;;  %v886_v31 = vmax.f32 %v723_v26, 0.0  ;;  %v1355_v32 = vadd.f32 %v2160_v36, %v1354_v29  ;;  %v541_v37 = vadd.f32 %v2228_v40, %v540_v28 }
 0x2cf   :  { %v965_v33 = vpack.c.bf16 %v886_v31, %v885_v30  ;;  %v1545_v34 = vmax.f32 %v1355_v32, 0.0  ;;  %v813_v43 = vmax.f32 %v541_v37, 0.0 }
 0x2d0   :  { %v1174_v35 = vpop.f32.mrf.mxu1 }
 0x2d1   :  { %1695 = vst [vmem:[#allocation8 + $0x3d8] sm:$0xff] %v1545_v34  ;;  %v1175_v38 = vadd.f32 %v2160_v36, %v1174_v35  ;;  %1396 = vmatmul.bf16.gmra.mxu3 %v965_v33 }
 0x2d2   :  { %v725_v39 = vpop.f32.mrf.mxu2 }
 0x2d3   :  { %v1473_v49 = vmax.f32 %v1175_v38, 0.0  ;;  %v726_v48 = vadd.f32 %v2228_v40, %v725_v39 }
 0x2d4   :  { %v542_v41 = vpop.f32.mrf.mxu0  ;;  %v1357_v42 = vpop.f32.mrf.mxu3 }
 0x2d5   :  { %1623 = vst [vmem:[#allocation8 + $0x198] sm:$0xff] %v1473_v49  ;;  %v543_v44 = vadd.f32 %v2228_v40, %v542_v41  ;;  %v1358_v45 = vadd.f32 %v2160_v36, %v1357_v42  ;;  %v887_v57 = vmax.f32 %v726_v48, 0.0 }
 0x2d7   :  { %v814_v59 = vmax.f32 %v543_v44, 0.0  ;;  %v1546_v46 = vmax.f32 %v1358_v45, 0.0 }
 0x2d8   :  { %v1177_v47 = vpop.f32.mrf.mxu1 }
 0x2d9   :  { %v929_v50 = vpack.c.bf16 %v814_v59, %v813_v43  ;;  %1696 = vst [vmem:[#allocation8 + $0x3e0] sm:$0xff] %v1546_v46  ;;  %v1178_v51 = vadd.f32 %v2160_v36, %v1177_v47 }
 0x2da   :  { %v727_v52 = vpop.f32.mrf.mxu2 }
 0x2db   :  { %v1474_v53 = vmax.f32 %v1178_v51, 0.0  ;;  %v728_v54 = vadd.f32 %v2228_v40, %v727_v52  ;;  %1216 = vmatmul.bf16.gmra.mxu1 %v929_v50 }
 0x2dc   :  { %v545_v55 = vpop.f32.mrf.mxu0  ;;  %v1359_v56 = vpop.f32.mrf.mxu3 }
 0x2dd   :  { %1624 = vst [vmem:[#allocation8 + $0x1a0] sm:$0xff] %v1474_v53  ;;  %v888_v58 = vmax.f32 %v728_v54, 0.0  ;;  %v1360_v60 = vadd.f32 %v2160_v36, %v1359_v56  ;;  %v546_v63 = vadd.f32 %v2228_v40, %v545_v55 }
 0x2df   :  { %v966_v61 = vpack.c.bf16 %v888_v58, %v887_v57  ;;  %v1547_v7 = vmax.f32 %v1360_v60, 0.0  ;;  %v815_v5 = vmax.f32 %v546_v63, 0.0 }
 0x2e0   :  { %v1179_v62 = vpop.f32.mrf.mxu1 }
 0x2e1   :  { %1697 = vst [vmem:[#allocation8 + $0x3e8] sm:$0xff] %v1547_v7  ;;  %v1180_v0 = vadd.f32 %v2160_v36, %v1179_v62  ;;  %1401 = vmatmul.bf16.gmra.mxu3 %v966_v61 }
 0x2e2   :  { %v730_v1 = vpop.f32.mrf.mxu2 }
 0x2e3   :  { %v1475_v2 = vmax.f32 %v1180_v0, 0.0  ;;  %v731_v12 = vadd.f32 %v2228_v40, %v730_v1 }
 0x2e4   :  { %v547_v3 = vpop.f32.mrf.mxu0  ;;  %v1362_v4 = vpop.f32.mrf.mxu3 }
 0x2e5   :  { %1625 = vst [vmem:[#allocation8 + $0x1a8] sm:$0xff] %v1475_v2  ;;  %v548_v6 = vadd.f32 %v2228_v40, %v547_v3  ;;  %v1363_v8 = vadd.f32 %v2160_v36, %v1362_v4  ;;  %v889_v20 = vmax.f32 %v731_v12, 0.0 }
 0x2e7   :  { %v816_v9 = vmax.f32 %v548_v6, 0.0  ;;  %v1548_v10 = vmax.f32 %v1363_v8, 0.0 }
 0x2e8   :  { %v1182_v11 = vpop.f32.mrf.mxu1 }
 0x2e9   :  { %v930_v13 = vpack.c.bf16 %v816_v9, %v815_v5  ;;  %1698 = vst [vmem:[#allocation8 + $0x3f0] sm:$0xff] %v1548_v10  ;;  %v1183_v14 = vadd.f32 %v2160_v36, %v1182_v11 }
 0x2ea   :  { %v732_v15 = vpop.f32.mrf.mxu2 }
 0x2eb   :  { %v1476_v16 = vmax.f32 %v1183_v14, 0.0  ;;  %v733_v17 = vadd.f32 %v2228_v40, %v732_v15  ;;  %1221 = vmatmul.bf16.gmra.mxu1 %v930_v13 }
 0x2ec   :  { %v550_v18 = vpop.f32.mrf.mxu0  ;;  %v1364_v19 = vpop.f32.mrf.mxu3 }
 0x2ed   :  { %1626 = vst [vmem:[#allocation8 + $0x1b0] sm:$0xff] %v1476_v16  ;;  %v890_v21 = vmax.f32 %v733_v17, 0.0  ;;  %v1365_v23 = vadd.f32 %v2284_v22, %v1364_v19  ;;  %v551_v26 = vadd.f32 %v2228_v40, %v550_v18 }
 0x2ef   :  { %v967_v24 = vpack.c.bf16 %v890_v21, %v889_v20  ;;  %v1549_v25 = vmax.f32 %v1365_v23, 0.0  ;;  %v817_v33 = vmax.f32 %v551_v26, 0.0 }
 0x2f0   :  { %v1184_v36 = vpop.f32.mrf.mxu1 }
 0x2f1   :  { %1699 = vst [vmem:[#allocation8 + $0x3f8] sm:$0xff] %v1549_v25  ;;  %v1185_v28 = vadd.f32 %v2284_v22, %v1184_v36  ;;  %1406 = vmatmul.bf16.gmra.mxu3 %v967_v24 }
 0x2f2   :  { %v735_v29 = vpop.f32.mrf.mxu2 }
 0x2f3   :  { %v1477_v30 = vmax.f32 %v1185_v28, 0.0  ;;  %v736_v49 = vadd.f32 %v2228_v40, %v735_v29 }
 0x2f4   :  { %v552_v31 = vpop.f32.mrf.mxu0  ;;  %v1367_v32 = vpop.f32.mrf.mxu3 }
 0x2f5   :  { %1627 = vst [vmem:[#allocation8 + $0x1b8] sm:$0xff] %v1477_v30  ;;  %v553_v34 = vadd.f32 %v2228_v40, %v552_v31  ;;  %v1368_v35 = vadd.f32 %v2284_v22, %v1367_v32  ;;  %v891_v46 = vmax.f32 %v736_v49, 0.0 }
 0x2f7   :  { %v818_v37 = vmax.f32 %v553_v34, 0.0  ;;  %v1550_v38 = vmax.f32 %v1368_v35, 0.0 }
 0x2f8   :  { %v1187_v39 = vpop.f32.mrf.mxu1 }
 0x2f9   :  { %v931_v41 = vpack.c.bf16 %v818_v37, %v817_v33  ;;  %1700 = vst [vmem:[#allocation8 + $0x400] sm:$0xff] %v1550_v38  ;;  %v1188_v42 = vadd.f32 %v2284_v22, %v1187_v39 }
 0x2fa   :  { %v737_v43 = vpop.f32.mrf.mxu2 }
 0x2fb   :  { %v1478_v44 = vmax.f32 %v1188_v42, 0.0  ;;  %v738_v45 = vadd.f32 %v2228_v40, %v737_v43  ;;  %1226 = vmatmul.bf16.gmra.mxu1 %v931_v41 }
 0x2fc   :  { %v1369_v59 = vpop.f32.mrf.mxu3 }
 0x2fd   :  { %1628 = vst [vmem:[#allocation8 + $0x1c0] sm:$0xff] %v1478_v44  ;;  %v892_v47 = vmax.f32 %v738_v45, 0.0  ;;  %v1370_v48 = vadd.f32 %v2284_v22, %v1369_v59 }
 0x2ff   :  { %v968_v50 = vpack.c.bf16 %v892_v47, %v891_v46  ;;  %v1551_v51 = vmax.f32 %v1370_v48, 0.0 }
 0x300   :  { %v1189_v52 = vpop.f32.mrf.mxu1 }
 0x301   :  { %1701 = vst [vmem:[#allocation8 + $0x408] sm:$0xff] %v1551_v51  ;;  %v1190_v53 = vadd.f32 %v2284_v22, %v1189_v52  ;;  %1411 = vmatmul.bf16.gmra.mxu3 %v968_v50 }
 0x302   :  { %v740_v54 = vpop.f32.mrf.mxu2 }
 0x303   :  { %v1479_v55 = vmax.f32 %v1190_v53, 0.0  ;;  %v741_v61 = vadd.f32 %v2228_v40, %v740_v54 }
 0x304   :  { %v1372_v56 = vpop.f32.mrf.mxu3 }
 0x305   :  { %1629 = vst [vmem:[#allocation8 + $0x1c8] sm:$0xff] %v1479_v55  ;;  %v1373_v57 = vadd.f32 %v2284_v22, %v1372_v56  ;;  %v893_v2 = vmax.f32 %v741_v61, 0.0 }
 0x307   :  { %v1552_v58 = vmax.f32 %v1373_v57, 0.0 }
 0x308   :  { %v1192_v60 = vpop.f32.mrf.mxu1 }
 0x309   :  { %1702 = vst [vmem:[#allocation8 + $0x410] sm:$0xff] %v1552_v58  ;;  %v1193_v7 = vadd.f32 %v2284_v22, %v1192_v60 }
 0x30a   :  { %v742_v62 = vpop.f32.mrf.mxu2 }
 0x30b   :  { %v1480_v63 = vmax.f32 %v1193_v7, 0.0  ;;  %v743_v0 = vadd.f32 %v2228_v40, %v742_v62  ;;  %1231 = vmatmul.bf16.gmra.mxu1 %v2013_v27 }
 0x30c   :  { %v1374_v1 = vpop.f32.mrf.mxu3 }
 0x30d   :  { %1630 = vst [vmem:[#allocation8 + $0x1d0] sm:$0xff] %v1480_v63  ;;  %v894_v3 = vmax.f32 %v743_v0, 0.0  ;;  %v1375_v4 = vadd.f32 %v2284_v22, %v1374_v1 }
 0x30f   :  { %v969_v5 = vpack.c.bf16 %v894_v3, %v893_v2  ;;  %v1553_v6 = vmax.f32 %v1375_v4, 0.0 }
 0x310   :  { %v1194_v8 = vpop.f32.mrf.mxu1 }
 0x311   :  { %1703 = vst [vmem:[#allocation8 + $0x418] sm:$0xff] %v1553_v6  ;;  %v1195_v9 = vadd.f32 %v2284_v22, %v1194_v8  ;;  %1416 = vmatmul.bf16.gmra.mxu3 %v969_v5 }
 0x313   :  { %v1481_v10 = vmax.f32 %v1195_v9, 0.0 }
 0x314   :  { %v1377_v11 = vpop.f32.mrf.mxu3 }
 0x315   :  { %1631 = vst [vmem:[#allocation8 + $0x1d8] sm:$0xff] %v1481_v10  ;;  %v1378_v40 = vadd.f32 %v2284_v22, %v1377_v11 }
 0x317   :  { %v1554_v12 = vmax.f32 %v1378_v40, 0.0 }
 0x318   :  { %v1197_v27 = vpop.f32.mrf.mxu1 }
 0x319   :  { %1704 = vst [vmem:[#allocation8 + $0x420] sm:$0xff] %v1554_v12  ;;  %v1198_v13 = vadd.f32 %v2284_v22, %v1197_v27 }
 0x31b   :  { %v1482_v14 = vmax.f32 %v1198_v13, 0.0 }
 0x31c   :  { %v1379_v15 = vpop.f32.mrf.mxu3 }
 0x31d   :  { %1632 = vst [vmem:[#allocation8 + $0x1e0] sm:$0xff] %v1482_v14  ;;  %v1380_v16 = vadd.f32 %v2284_v22, %v1379_v15 }
 0x31f   :  { %v1555_v17 = vmax.f32 %v1380_v16, 0.0 }
 0x320   :  { %v1199_v18 = vpop.f32.mrf.mxu1 }
 0x321   :  { %1705 = vst [vmem:[#allocation8 + $0x428] sm:$0xff] %v1555_v17  ;;  %v1200_v19 = vadd.f32 %v2284_v22, %v1199_v18 }
 0x323   :  { %v1483_v20 = vmax.f32 %v1200_v19, 0.0 }
 0x324   :  { %v1382_v21 = vpop.f32.mrf.mxu3 }
 0x325   :  { %1633 = vst [vmem:[#allocation8 + $0x1e8] sm:$0xff] %v1483_v20  ;;  %v1383_v23 = vadd.f32 %v2284_v22, %v1382_v21 }
 0x327   :  { %v1556_v24 = vmax.f32 %v1383_v23, 0.0 }
 0x328   :  { %v1202_v25 = vpop.f32.mrf.mxu1 }
 0x329   :  { %1706 = vst [vmem:[#allocation8 + $0x430] sm:$0xff] %v1556_v24  ;;  %v1203_v36 = vadd.f32 %v2284_v22, %v1202_v25 }
 0x32b   :  { %v1484_v26 = vmax.f32 %v1203_v36, 0.0 }
 0x32c   :  { %v1384_v28 = vpop.f32.mrf.mxu3 }
 0x32d   :  { %1634 = vst [vmem:[#allocation8 + $0x1f0] sm:$0xff] %v1484_v26  ;;  %v1385_v29 = vadd.f32 %v2284_v22, %v1384_v28 }
 0x32f   :  { %v1557_v30 = vmax.f32 %v1385_v29, 0.0 }
 0x330   :  { %v1204_v31 = vpop.f32.mrf.mxu1 }
 0x331   :  { %1707 = vst [vmem:[#allocation8 + $0x438] sm:$0xff] %v1557_v30  ;;  %v1205_v32 = vadd.f32 %v2284_v22, %v1204_v31 }
 0x333   :  { %v1485_v33 = vmax.f32 %v1205_v32, 0.0 }
 0x334   :  { %v1387_v34 = vpop.f32.mrf.mxu3 }
 0x335   :  { %1635 = vst [vmem:[#allocation8 + $0x1f8] sm:$0xff] %v1485_v33  ;;  %v1388_v35 = vadd.f32 %v2284_v22, %v1387_v34 }
 0x337   :  { %v1558_v37 = vmax.f32 %v1388_v35, 0.0 }
 0x338   :  { %v1207_v38 = vpop.f32.mrf.mxu1 }
 0x339   :  { %1708 = vst [vmem:[#allocation8 + $0x440] sm:$0xff] %v1558_v37  ;;  %v1208_v39 = vadd.f32 %v2284_v22, %v1207_v38 }
 0x33b   :  { %v1486_v49 = vmax.f32 %v1208_v39, 0.0 }
 0x33c   :  { %v1389_v41 = vpop.f32.mrf.mxu3 }
 0x33d   :  { %1636 = vst [vmem:[#allocation8 + $0x200] sm:$0xff] %v1486_v49  ;;  %v1390_v42 = vadd.f32 %v2284_v22, %v1389_v41 }
 0x33f   :  { %v1559_v43 = vmax.f32 %v1390_v42, 0.0 }
 0x340   :  { %v1209_v44 = vpop.f32.mrf.mxu1 }
 0x341   :  { %1709 = vst [vmem:[#allocation8 + $0x448] sm:$0xff] %v1559_v43  ;;  %v1210_v45 = vadd.f32 %v2284_v22, %v1209_v44 }
 0x343   :  { %v1487_v59 = vmax.f32 %v1210_v45, 0.0 }
 0x344   :  { %v1392_v46 = vpop.f32.mrf.mxu3 }
 0x345   :  { %1637 = vst [vmem:[#allocation8 + $0x208] sm:$0xff] %v1487_v59  ;;  %v1393_v47 = vadd.f32 %v2284_v22, %v1392_v46 }
 0x347   :  { %v1560_v48 = vmax.f32 %v1393_v47, 0.0 }
 0x348   :  { %v1212_v50 = vpop.f32.mrf.mxu1 }
 0x349   :  { %1710 = vst [vmem:[#allocation8 + $0x450] sm:$0xff] %v1560_v48  ;;  %v1213_v51 = vadd.f32 %v2284_v22, %v1212_v50 }
 0x34b   :  { %v1488_v52 = vmax.f32 %v1213_v51, 0.0 }
 0x34c   :  { %v1394_v53 = vpop.f32.mrf.mxu3 }
 0x34d   :  { %1638 = vst [vmem:[#allocation8 + $0x210] sm:$0xff] %v1488_v52  ;;  %v1395_v54 = vadd.f32 %v2284_v22, %v1394_v53 }
 0x34f   :  { %v1561_v55 = vmax.f32 %v1395_v54, 0.0 }
 0x350   :  { %v1214_v56 = vpop.f32.mrf.mxu1 }
 0x351   :  { %1711 = vst [vmem:[#allocation8 + $0x458] sm:$0xff] %v1561_v55  ;;  %v1215_v57 = vadd.f32 %v2284_v22, %v1214_v56 }
 0x353   :  { %v1489_v58 = vmax.f32 %v1215_v57, 0.0 }
 0x354   :  { %v1397_v60 = vpop.f32.mrf.mxu3 }
 0x355   :  { %1639 = vst [vmem:[#allocation8 + $0x218] sm:$0xff] %v1489_v58  ;;  %v1398_v61 = vadd.f32 %v2284_v22, %v1397_v60 }
 0x357   :  { %v1562_v7 = vmax.f32 %v1398_v61, 0.0 }
 0x358   :  { %v1217_v62 = vpop.f32.mrf.mxu1 }
 0x359   :  { %1712 = vst [vmem:[#allocation8 + $0x460] sm:$0xff] %v1562_v7  ;;  %v1218_v63 = vadd.f32 %v2284_v22, %v1217_v62 }
 0x35b   :  { %v1490_v0 = vmax.f32 %v1218_v63, 0.0 }
 0x35c   :  { %v1399_v1 = vpop.f32.mrf.mxu3 }
 0x35d   :  { %1640 = vst [vmem:[#allocation8 + $0x220] sm:$0xff] %v1490_v0  ;;  %v1400_v2 = vadd.f32 %v2284_v22, %v1399_v1 }
 0x35f   :  { %v1563_v3 = vmax.f32 %v1400_v2, 0.0 }
 0x360   :  { %v1219_v4 = vpop.f32.mrf.mxu1 }
 0x361   :  { %1713 = vst [vmem:[#allocation8 + $0x468] sm:$0xff] %v1563_v3  ;;  %v1220_v5 = vadd.f32 %v2284_v22, %v1219_v4 }
 0x363   :  { %v1491_v6 = vmax.f32 %v1220_v5, 0.0 }
 0x364   :  { %v1402_v8 = vpop.f32.mrf.mxu3 }
 0x365   :  { %1641 = vst [vmem:[#allocation8 + $0x228] sm:$0xff] %v1491_v6  ;;  %v1403_v9 = vadd.f32 %v2284_v22, %v1402_v8 }
 0x367   :  { %v1564_v10 = vmax.f32 %v1403_v9, 0.0 }
 0x368   :  { %v1222_v11 = vpop.f32.mrf.mxu1 }
 0x369   :  { %1714 = vst [vmem:[#allocation8 + $0x470] sm:$0xff] %v1564_v10  ;;  %v1223_v40 = vadd.f32 %v2284_v22, %v1222_v11 }
 0x36b   :  { %v1492_v12 = vmax.f32 %v1223_v40, 0.0 }
 0x36c   :  { %v1404_v27 = vpop.f32.mrf.mxu3 }
 0x36d   :  { %1642 = vst [vmem:[#allocation8 + $0x230] sm:$0xff] %v1492_v12  ;;  %v1405_v13 = vadd.f32 %v2284_v22, %v1404_v27 }
 0x36f   :  { %v1565_v14 = vmax.f32 %v1405_v13, 0.0 }
 0x370   :  { %v1224_v15 = vpop.f32.mrf.mxu1 }
 0x371   :  { %1715 = vst [vmem:[#allocation8 + $0x478] sm:$0xff] %v1565_v14  ;;  %v1225_v16 = vadd.f32 %v2284_v22, %v1224_v15 }
 0x373   :  { %v1493_v17 = vmax.f32 %v1225_v16, 0.0 }
 0x374   :  { %v1407_v18 = vpop.f32.mrf.mxu3 }
 0x375   :  { %1643 = vst [vmem:[#allocation8 + $0x238] sm:$0xff] %v1493_v17  ;;  %v1408_v19 = vadd.f32 %v2284_v22, %v1407_v18 }
 0x377   :  { %v1566_v20 = vmax.f32 %v1408_v19, 0.0 }
 0x378   :  { %v1227_v21 = vpop.f32.mrf.mxu1 }
 0x379   :  { %1716 = vst [vmem:[#allocation8 + $0x480] sm:$0xff] %v1566_v20  ;;  %v1228_v23 = vadd.f32 %v2284_v22, %v1227_v21 }
 0x37b   :  { %v1494_v24 = vmax.f32 %v1228_v23, 0.0 }
 0x37c   :  { %v1409_v25 = vpop.f32.mrf.mxu3 }
 0x37d   :  { %1644 = vst [vmem:[#allocation8 + $0x240] sm:$0xff] %v1494_v24  ;;  %v1410_v36 = vadd.f32 %v2284_v22, %v1409_v25 }
 0x37f   :  { %v1567_v26 = vmax.f32 %v1410_v36, 0.0 }
 0x380   :  { %v1229_v28 = vpop.f32.mrf.mxu1 }
 0x381   :  { %1717 = vst [vmem:[#allocation8 + $0x488] sm:$0xff] %v1567_v26  ;;  %v1230_v29 = vadd.f32 %v2284_v22, %v1229_v28 }
 0x383   :  { %v1495_v30 = vmax.f32 %v1230_v29, 0.0 }
 0x384   :  { %v1412_v31 = vpop.f32.mrf.mxu3 }
 0x385   :  { %1645 = vst [vmem:[#allocation8 + $0x248] sm:$0xff] %v1495_v30  ;;  %v1413_v32 = vadd.f32 %v2284_v22, %v1412_v31 }
 0x387   :  { %v1568_v33 = vmax.f32 %v1413_v32, 0.0 }
 0x388   :  { %v1232_v34 = vpop.f32.mrf.mxu1 }
 0x389   :  { %1718 = vst [vmem:[#allocation8 + $0x490] sm:$0xff] %v1568_v33  ;;  %v1233_v35 = vadd.f32 %v2284_v22, %v1232_v34 }
 0x38b   :  { %v1496_v37 = vmax.f32 %v1233_v35, 0.0 }
 0x38c   :  { %v1414_v38 = vpop.f32.mrf.mxu3 }
 0x38d   :  { %1646 = vst [vmem:[#allocation8 + $0x250] sm:$0xff] %v1496_v37  ;;  %v1415_v39 = vadd.f32 %v2284_v22, %v1414_v38 }
 0x38f   :  { %v1569_v49 = vmax.f32 %v1415_v39, 0.0 }
 0x390   :  { %v1234_v41 = vpop.f32.mrf.mxu1 }
 0x391   :  { %1719 = vst [vmem:[#allocation8 + $0x498] sm:$0xff] %v1569_v49  ;;  %v1235_v42 = vadd.f32 %v2284_v22, %v1234_v41 }
 0x393   :  { %v1497_v43 = vmax.f32 %v1235_v42, 0.0 }
 0x394   :  { %v1417_v44 = vpop.f32.mrf.mxu3 }
 0x395   :  { %1647 = vst [vmem:[#allocation8 + $0x258] sm:$0xff] %v1497_v43  ;;  %v1418_v45 = vadd.f32 %v2284_v22, %v1417_v44 }
 0x397   :  { %v1570_v59 = vmax.f32 %v1418_v45, 0.0 }
 0x399   :  { %1720 = vst [vmem:[#allocation8 + $0x4a0] sm:$0xff] %v1570_v59 }
 0x39c   :  { %v1419_v46 = vpop.f32.mrf.mxu3 }
 0x39d   :  { %v1420_v47 = vadd.f32 %v2284_v22, %v1419_v46 }
 0x39f   :  { %v1571_v48 = vmax.f32 %v1420_v47, 0.0 }
 0x3a1   :  { %1721 = vst [vmem:[#allocation8 + $0x4a8] sm:$0xff] %v1571_v48 }
 0x3a2   :  { %1734 = dma.vmem_to_hbm [thread:$0]  %s1727_s20, 19200, %s1729_s23, [#allocation4], %s1958_s30, %s1958_s30, %s1959_s6  }
 0x3a3   :  { %1952 = dma.done.wait [#allocation4], 19200  }
 0x3a4   :  { %1953 = vsyncadd [#allocation4], 4294948096 }
 0x3a5   :  { %1739 = vsyncpa [#allocation3], 1 }
 0x3a6   :  { %1740 = vsyncpa [#allocation6], 1 }
 0x3a7   :  { %1741 = vsyncpa [#allocation4], 1 }

</bundles_post_ra>
